<compile_context>
chip_gen: v7x
topology: tpu7x:2x2x1
jax: 0.10.0
libtpu: 0.0.40
codegen_flags: <defaults>
</compile_context>

<pallas_src>
import functools

import jax
import jax.numpy as jnp
from jax.experimental import pallas as pl
from jax.experimental.pallas import tpu as pltpu

NEG_SLOPE = 0.01  # torch.nn.functional.leaky_relu default slope
OUT_LANES = 128   # lane-dense output slab width


def _leaky_relu(x):
    return jnp.where(x > 0, x, NEG_SLOPE * x)


def critic_kernel(state_ref, action_ref,
                  w1_ref, b1_ref,
                  w2a_ref, w2b_ref, b2_ref,
                  w3_ref, b3_ref,
                  w4_ref, b4_ref,
                  out_ref):
    # ---- layer 1: Linear(S -> L1) + leaky_relu  (MXU bf16 operands, f32 acc)
    h1 = jnp.dot(state_ref[...], w1_ref[...],
                 preferred_element_type=jnp.float32)
    h1 = _leaky_relu(h1 + b1_ref[...])                       # f32 (TB, L1)

    # ---- layer 2: Linear(L1 + A -> L2) over concat([h1, action]) + leaky_relu
    # h1 part on the MXU; the tiny K=A action part as unrolled VPU FMAs.
    h2 = jnp.dot(h1.astype(jnp.bfloat16), w2a_ref[...],
                 preferred_element_type=jnp.float32)          # f32 (TB, L2)
    act = action_ref[...]                                     # f32 (TB, A)
    w2b = w2b_ref[...]                                        # f32 (A,  L2)
    acc = b2_ref[...]                                         # f32 (1,  L2)
    for k in range(act.shape[1]):                             # static unroll (A small)
        acc = acc + act[:, k:k + 1] * w2b[k:k + 1, :]
    h2 = _leaky_relu(h2 + acc)

    # ---- layer 3: Linear(L2 -> L3) + leaky_relu
    h3 = jnp.dot(h2.astype(jnp.bfloat16), w3_ref[...],
                 preferred_element_type=jnp.float32)
    h3 = _leaky_relu(h3 + b3_ref[...])

    # ---- output layer: Linear(L3 -> 1); w4 is zero-padded to (L3, 128) so the
    # store is a full-lane vst; column 0 carries the Q value. b4 is SMEM scalar.
    q = jnp.dot(h3.astype(jnp.bfloat16), w4_ref[...],
                preferred_element_type=jnp.float32)
    out_ref[...] = q + b4_ref[0]


@functools.partial(jax.jit, static_argnames=("block_b",))
def critic_forward(state, action, params, *, block_b=256):
    """Batch-tiled Pallas forward. Returns (B, 1) float32 Q values."""
    B, S = state.shape
    A = action.shape[1]
    L1 = params["w1"].shape[1]
    L2 = params["w2a"].shape[1]
    L3 = params["w3"].shape[1]

    # Pad the batch up to a whole number of MXU-filling tiles.
    Bp = max(block_b, ((B + block_b - 1) // block_b) * block_b)
    if Bp != B:
        state = jnp.pad(state, ((0, Bp - B), (0, 0)))
        action = jnp.pad(action, ((0, Bp - B), (0, 0)))

    # bf16 MXU operands; biases / the tiny action weight stay f32 (VPU path).
    state_bf = state.astype(jnp.bfloat16)
    w1 = params["w1"].astype(jnp.bfloat16)
    w2a = params["w2a"].astype(jnp.bfloat16)
    w3 = params["w3"].astype(jnp.bfloat16)
    w4_pad = jnp.zeros((L3, OUT_LANES), jnp.bfloat16)
    w4_pad = w4_pad.at[:, 0].set(params["w4"][:, 0].astype(jnp.bfloat16))
    b4_smem = params["b4"].reshape((1,)).astype(jnp.float32)

    grid = (Bp // block_b,)

    def const(shape):
        return pl.BlockSpec(shape, lambda i: (0,) * len(shape))

    out = pl.pallas_call(
        critic_kernel,
        out_shape=jax.ShapeDtypeStruct((Bp, OUT_LANES), jnp.float32),
        grid=grid,
        in_specs=[
            pl.BlockSpec((block_b, S), lambda i: (i, 0)),        # state tile
            pl.BlockSpec((block_b, A), lambda i: (i, 0)),        # action tile
            const((S, L1)),                                      # w1 (resident)
            const((1, L1)),                                      # b1
            const((L1, L2)),                                     # w2a
            const((A, L2)),                                      # w2b (f32, VPU)
            const((1, L2)),                                      # b2
            const((L2, L3)),                                     # w3
            const((1, L3)),                                      # b3
            const((L3, OUT_LANES)),                              # w4 (lane-padded)
            pl.BlockSpec(memory_space=pltpu.MemorySpace.SMEM),   # b4 scalar
        ],
        out_specs=pl.BlockSpec((block_b, OUT_LANES), lambda i: (i, 0)),
        compiler_params=pltpu.CompilerParams(
            dimension_semantics=("parallel",)),
    )(state_bf, action, w1, params["b1"], w2a, params["w2b"], params["b2"],
      params["w3"], params["b3"], w4_pad, b4_smem)

    return out[:B, :1]


def init_critic_params(key, state_size, action_size,
                       layer1_units=256, layer2_units=256, layer3_units=128):
    """Deterministic synthetic init mirroring the PyTorch module's shapes.
    (hidden_init's fan_in = weight.size()[0] == out_features, as in the
    original code; reproduced here for fidelity of the bounds.)"""
    ks = jax.random.split(key, 8)

    def uniform(k, shape, lim):
        return jax.random.uniform(k, shape, jnp.float32, -lim, lim)

    lim1 = 1.0 / jnp.sqrt(float(layer1_units))
    lim2 = 1.0 / jnp.sqrt(float(layer2_units))
    lim3 = 1.0 / jnp.sqrt(float(layer3_units))

    # weights stored as (in, out); PyTorch Linear stores (out, in) -> transposed view
    w1 = uniform(ks[0], (state_size, layer1_units), lim1)
    b1 = uniform(ks[1], (1, layer1_units), lim1)

    w2_full = uniform(ks[2], (layer1_units + action_size, layer2_units), lim2)
    w2a, w2b = w2_full[:layer1_units], w2_full[layer1_units:]
    b2 = uniform(ks[3], (1, layer2_units), lim2)

    w3 = uniform(ks[4], (layer2_units, layer3_units), lim3)
    b3 = uniform(ks[5], (1, layer3_units), lim3)

    w4 = uniform(ks[6], (layer3_units, 1), 0.003)
    b4 = uniform(ks[7], (1, 1), 0.003)

    return dict(w1=w1, b1=b1, w2a=w2a, w2b=w2b, b2=b2, w3=w3, b3=b3, w4=w4, b4=b4)


def critic_reference_f32(state, action, p):
    """Pure-JAX f32 reference mirroring the PyTorch forward exactly."""
    h1 = _leaky_relu(state @ p["w1"] + p["b1"])
    cat = jnp.concatenate([h1, action], axis=1)
    w2 = jnp.concatenate([p["w2a"], p["w2b"]], axis=0)
    h2 = _leaky_relu(cat @ w2 + p["b2"])
    h3 = _leaky_relu(h2 @ p["w3"] + p["b3"])
    return h3 @ p["w4"] + p["b4"]


def critic_reference_bf16(state, action, p):
    """Pure-JAX reference with the same bf16-operand / f32-accumulate numerics
    as the kernel (for a tight correctness check)."""
    f32 = jnp.float32
    bf = jnp.bfloat16
    h1 = _leaky_relu(jnp.dot(state.astype(bf), p["w1"].astype(bf),
                             preferred_element_type=f32) + p["b1"])
    h2 = jnp.dot(h1.astype(bf), p["w2a"].astype(bf), preferred_element_type=f32)
    h2 = _leaky_relu(h2 + action @ p["w2b"] + p["b2"])
    h3 = _leaky_relu(jnp.dot(h2.astype(bf), p["w3"].astype(bf),
                             preferred_element_type=f32) + p["b3"])
    return (jnp.dot(h3.astype(bf), p["w4"].astype(bf),
                    preferred_element_type=f32) + p["b4"])


if __name__ == "__main__":
    B, STATE, ACTION = 8, 16, 4

    key = jax.random.PRNGKey(0)
    k_params, k_state, k_action = jax.random.split(key, 3)

    params = init_critic_params(k_params, STATE, ACTION)
    state = jax.random.normal(k_state, (B, STATE), jnp.float32)
    action = jax.random.normal(k_action, (B, ACTION), jnp.float32)

    out = jax.block_until_ready(critic_forward(state, action, params))
    assert out.shape == (B, 1), out.shape

    ref_bf = critic_reference_bf16(state, action, params)
    ref_32 = critic_reference_f32(state, action, params)
    assert jnp.allclose(out, ref_bf, atol=1e-3, rtol=1e-3), "mismatch vs bf16 mirror"
    assert jnp.allclose(out, ref_32, atol=5e-3, rtol=5e-3), "mismatch vs f32 reference"

    # Ragged, multi-tile batch: exercises the batch grid + padding path.
    B2 = 300
    k2s, k2a = jax.random.split(jax.random.PRNGKey(1))
    state2 = jax.random.normal(k2s, (B2, STATE), jnp.float32)
    action2 = jax.random.normal(k2a, (B2, ACTION), jnp.float32)
    out2 = jax.block_until_ready(critic_forward(state2, action2, params))
    assert out2.shape == (B2, 1), out2.shape
    assert jnp.allclose(out2, critic_reference_bf16(state2, action2, params),
                        atol=1e-3, rtol=1e-3), "mismatch on multi-tile batch"

    print("KERNEL_OK")
</pallas_src>

<mosaic_0001>
module attributes {stable_mosaic.version = 11 : i64} {
  func.func @critic_kernel(%arg0: i32, %arg1: memref<256x16xbf16, #tpu.memory_space<vmem>>, %arg2: memref<256x4xf32, #tpu.memory_space<vmem>>, %arg3: memref<16x256xbf16, #tpu.memory_space<vmem>>, %arg4: memref<1x256xf32, #tpu.memory_space<vmem>>, %arg5: memref<256x256xbf16, #tpu.memory_space<vmem>>, %arg6: memref<4x256xf32, #tpu.memory_space<vmem>>, %arg7: memref<1x256xf32, #tpu.memory_space<vmem>>, %arg8: memref<256x128xf32, #tpu.memory_space<vmem>>, %arg9: memref<1x128xf32, #tpu.memory_space<vmem>>, %arg10: memref<128x128xbf16, #tpu.memory_space<vmem>>, %arg11: memref<1xf32, #tpu.memory_space<smem>>, %arg12: memref<256x128xf32, #tpu.memory_space<vmem>>) attributes {dimension_semantics = [#tpu.dimension_semantics<parallel>], iteration_bounds = array<i64: 1>, scalar_prefetch = 0 : i64, scratch_operands = 0 : i64, tpu.core_type = #tpu.core_type<tc>, window_params = [{transform_indices = @transform_0, window_bounds = array<i64: 256, 16>}, {transform_indices = @transform_1, window_bounds = array<i64: 256, 4>}, {pipeline_mode = #tpu.pipeline_mode<synchronous>, transform_indices = @transform_2, window_bounds = array<i64: 16, 256>}, {pipeline_mode = #tpu.pipeline_mode<synchronous>, transform_indices = @transform_3, window_bounds = array<i64: 1, 256>}, {pipeline_mode = #tpu.pipeline_mode<synchronous>, transform_indices = @transform_4, window_bounds = array<i64: 256, 256>}, {pipeline_mode = #tpu.pipeline_mode<synchronous>, transform_indices = @transform_5, window_bounds = array<i64: 4, 256>}, {pipeline_mode = #tpu.pipeline_mode<synchronous>, transform_indices = @transform_6, window_bounds = array<i64: 1, 256>}, {pipeline_mode = #tpu.pipeline_mode<synchronous>, transform_indices = @transform_7, window_bounds = array<i64: 256, 128>}, {pipeline_mode = #tpu.pipeline_mode<synchronous>, transform_indices = @transform_8, window_bounds = array<i64: 1, 128>}, {pipeline_mode = #tpu.pipeline_mode<synchronous>, transform_indices = @transform_9, window_bounds = array<i64: 128, 128>}, {transform_indices = @transform_10, window_bounds = array<i64: 1>}, {transform_indices = @transform_11, window_bounds = array<i64: 256, 128>}]} {
    %c0 = arith.constant 0 : index
    %c0_0 = arith.constant 0 : index
    %0 = vector.load %arg1[%c0, %c0_0] : memref<256x16xbf16, #tpu.memory_space<vmem>>, vector<256x16xbf16>
    %c0_1 = arith.constant 0 : index
    %c0_2 = arith.constant 0 : index
    %1 = vector.load %arg3[%c0_1, %c0_2] : memref<16x256xbf16, #tpu.memory_space<vmem>>, vector<16x256xbf16>
    %cst = arith.constant dense<0.000000e+00> : vector<256x256xf32>
    %2 = tpu.matmul %0, %1, %cst {dimension_numbers = #tpu.dot_dimension_numbers<[1], [0], [0], [1], [0, 0, 1, 1], [], []>} : vector<256x16xbf16>, vector<16x256xbf16>, vector<256x256xf32> -> vector<256x256xf32>
    %c0_3 = arith.constant 0 : index
    %c0_4 = arith.constant 0 : index
    %3 = vector.load %arg4[%c0_3, %c0_4] : memref<1x256xf32, #tpu.memory_space<vmem>>, vector<1x256xf32>
    %4 = vector.broadcast %3 : vector<1x256xf32> to vector<256x256xf32>
    %5 = arith.addf %2, %4 : vector<256x256xf32>
    %cst_5 = arith.constant 0.000000e+00 : f32
    %6 = vector.broadcast %cst_5 : f32 to vector<256x256xf32>
    %7 = arith.cmpf ogt, %5, %6 : vector<256x256xf32>
    %cst_6 = arith.constant 0.00999999977 : f32
    %8 = vector.broadcast %cst_6 : f32 to vector<256x256xf32>
    %9 = arith.mulf %8, %5 : vector<256x256xf32>
    %10 = arith.select %7, %5, %9 : vector<256x256xi1>, vector<256x256xf32>
    %11 = arith.truncf %10 : vector<256x256xf32> to vector<256x256xbf16>
    %c0_7 = arith.constant 0 : index
    %c0_8 = arith.constant 0 : index
    %12 = vector.load %arg5[%c0_7, %c0_8] : memref<256x256xbf16, #tpu.memory_space<vmem>>, vector<256x256xbf16>
    %cst_9 = arith.constant dense<0.000000e+00> : vector<256x256xf32>
    %13 = tpu.matmul %11, %12, %cst_9 {dimension_numbers = #tpu.dot_dimension_numbers<[1], [0], [0], [1], [0, 0, 1, 1], [], []>} : vector<256x256xbf16>, vector<256x256xbf16>, vector<256x256xf32> -> vector<256x256xf32>
    %c0_10 = arith.constant 0 : index
    %c0_11 = arith.constant 0 : index
    %14 = vector.load %arg2[%c0_10, %c0_11] : memref<256x4xf32, #tpu.memory_space<vmem>>, vector<256x4xf32>
    %c0_12 = arith.constant 0 : index
    %c0_13 = arith.constant 0 : index
    %15 = vector.load %arg6[%c0_12, %c0_13] : memref<4x256xf32, #tpu.memory_space<vmem>>, vector<4x256xf32>
    %c0_14 = arith.constant 0 : index
    %c0_15 = arith.constant 0 : index
    %16 = vector.load %arg7[%c0_14, %c0_15] : memref<1x256xf32, #tpu.memory_space<vmem>>, vector<1x256xf32>
    %17 = vector.extract_strided_slice %14 {offsets = [0, 0], sizes = [256, 1], strides = [1, 1]} : vector<256x4xf32> to vector<256x1xf32>
    %18 = vector.extract_strided_slice %15 {offsets = [0, 0], sizes = [1, 256], strides = [1, 1]} : vector<4x256xf32> to vector<1x256xf32>
    %19 = vector.broadcast %17 : vector<256x1xf32> to vector<256x256xf32>
    %20 = vector.broadcast %18 : vector<1x256xf32> to vector<256x256xf32>
    %21 = arith.mulf %19, %20 : vector<256x256xf32>
    %22 = vector.broadcast %16 : vector<1x256xf32> to vector<256x256xf32>
    %23 = arith.addf %22, %21 : vector<256x256xf32>
    %24 = vector.extract_strided_slice %14 {offsets = [0, 1], sizes = [256, 1], strides = [1, 1]} : vector<256x4xf32> to vector<256x1xf32>
    %25 = vector.extract_strided_slice %15 {offsets = [1, 0], sizes = [1, 256], strides = [1, 1]} : vector<4x256xf32> to vector<1x256xf32>
    %26 = vector.broadcast %24 : vector<256x1xf32> to vector<256x256xf32>
    %27 = vector.broadcast %25 : vector<1x256xf32> to vector<256x256xf32>
    %28 = arith.mulf %26, %27 : vector<256x256xf32>
    %29 = arith.addf %23, %28 : vector<256x256xf32>
    %30 = vector.extract_strided_slice %14 {offsets = [0, 2], sizes = [256, 1], strides = [1, 1]} : vector<256x4xf32> to vector<256x1xf32>
    %31 = vector.extract_strided_slice %15 {offsets = [2, 0], sizes = [1, 256], strides = [1, 1]} : vector<4x256xf32> to vector<1x256xf32>
    %32 = vector.broadcast %30 : vector<256x1xf32> to vector<256x256xf32>
    %33 = vector.broadcast %31 : vector<1x256xf32> to vector<256x256xf32>
    %34 = arith.mulf %32, %33 : vector<256x256xf32>
    %35 = arith.addf %29, %34 : vector<256x256xf32>
    %36 = vector.extract_strided_slice %14 {offsets = [0, 3], sizes = [256, 1], strides = [1, 1]} : vector<256x4xf32> to vector<256x1xf32>
    %37 = vector.extract_strided_slice %15 {offsets = [3, 0], sizes = [1, 256], strides = [1, 1]} : vector<4x256xf32> to vector<1x256xf32>
    %38 = vector.broadcast %36 : vector<256x1xf32> to vector<256x256xf32>
    %39 = vector.broadcast %37 : vector<1x256xf32> to vector<256x256xf32>
    %40 = arith.mulf %38, %39 : vector<256x256xf32>
    %41 = arith.addf %35, %40 : vector<256x256xf32>
    %42 = arith.addf %13, %41 : vector<256x256xf32>
    %cst_16 = arith.constant 0.000000e+00 : f32
    %43 = vector.broadcast %cst_16 : f32 to vector<256x256xf32>
    %44 = arith.cmpf ogt, %42, %43 : vector<256x256xf32>
    %cst_17 = arith.constant 0.00999999977 : f32
    %45 = vector.broadcast %cst_17 : f32 to vector<256x256xf32>
    %46 = arith.mulf %45, %42 : vector<256x256xf32>
    %47 = arith.select %44, %42, %46 : vector<256x256xi1>, vector<256x256xf32>
    %48 = arith.truncf %47 : vector<256x256xf32> to vector<256x256xbf16>
    %c0_18 = arith.constant 0 : index
    %c0_19 = arith.constant 0 : index
    %49 = vector.load %arg8[%c0_18, %c0_19] : memref<256x128xf32, #tpu.memory_space<vmem>>, vector<256x128xf32>
    %cst_20 = arith.constant dense<0.000000e+00> : vector<256x128xf32>
    %50 = tpu.matmul %48, %49, %cst_20 {dimension_numbers = #tpu.dot_dimension_numbers<[1], [0], [0], [1], [0, 0, 1, 1], [], []>} : vector<256x256xbf16>, vector<256x128xf32>, vector<256x128xf32> -> vector<256x128xf32>
    %c0_21 = arith.constant 0 : index
    %c0_22 = arith.constant 0 : index
    %51 = vector.load %arg9[%c0_21, %c0_22] : memref<1x128xf32, #tpu.memory_space<vmem>>, vector<1x128xf32>
    %52 = vector.broadcast %51 : vector<1x128xf32> to vector<256x128xf32>
    %53 = arith.addf %50, %52 : vector<256x128xf32>
    %cst_23 = arith.constant 0.000000e+00 : f32
    %54 = vector.broadcast %cst_23 : f32 to vector<256x128xf32>
    %55 = arith.cmpf ogt, %53, %54 : vector<256x128xf32>
    %cst_24 = arith.constant 0.00999999977 : f32
    %56 = vector.broadcast %cst_24 : f32 to vector<256x128xf32>
    %57 = arith.mulf %56, %53 : vector<256x128xf32>
    %58 = arith.select %55, %53, %57 : vector<256x128xi1>, vector<256x128xf32>
    %59 = arith.truncf %58 : vector<256x128xf32> to vector<256x128xbf16>
    %c0_25 = arith.constant 0 : index
    %c0_26 = arith.constant 0 : index
    %60 = vector.load %arg10[%c0_25, %c0_26] : memref<128x128xbf16, #tpu.memory_space<vmem>>, vector<128x128xbf16>
    %cst_27 = arith.constant dense<0.000000e+00> : vector<256x128xf32>
    %61 = tpu.matmul %59, %60, %cst_27 {dimension_numbers = #tpu.dot_dimension_numbers<[1], [0], [0], [1], [0, 0, 1, 1], [], []>} : vector<256x128xbf16>, vector<128x128xbf16>, vector<256x128xf32> -> vector<256x128xf32>
    %c0_28 = arith.constant 0 : index
    %62 = memref.load %arg11[%c0_28] : memref<1xf32, #tpu.memory_space<smem>>
    %63 = vector.broadcast %62 : f32 to vector<256x128xf32>
    %64 = arith.addf %61, %63 : vector<256x128xf32>
    %c0_29 = arith.constant 0 : index
    %c0_30 = arith.constant 0 : index
    %65 = vector.load %arg12[%c0_29, %c0_30] : memref<256x128xf32, #tpu.memory_space<vmem>>, vector<256x128xf32>
    tpu.vector_store %arg12[%c0_29, %c0_30], %64 {strides = array<i32>} : memref<256x128xf32, #tpu.memory_space<vmem>>, vector<256x128xf32>,
    return
  }
  func.func @transform_0(%arg0: i32) -> (i32, i32) {
    %c0_i32 = arith.constant 0 : i32
    %c0_i32_0 = arith.constant 0 : i32
    return %arg0, %c0_i32 : i32, i32
  }
  func.func @transform_1(%arg0: i32) -> (i32, i32) {
    %c0_i32 = arith.constant 0 : i32
    %c0_i32_0 = arith.constant 0 : i32
    return %arg0, %c0_i32 : i32, i32
  }
  func.func @transform_2(%arg0: i32) -> (i32, i32) {
    %c0_i32 = arith.constant 0 : i32
    %c0_i32_0 = arith.constant 0 : i32
    %c0_i32_1 = arith.constant 0 : i32
    return %c0_i32, %c0_i32_0 : i32, i32
  }
  func.func @transform_3(%arg0: i32) -> (i32, i32) {
    %c0_i32 = arith.constant 0 : i32
    %c0_i32_0 = arith.constant 0 : i32
    %c0_i32_1 = arith.constant 0 : i32
    return %c0_i32, %c0_i32_0 : i32, i32
  }
  func.func @transform_4(%arg0: i32) -> (i32, i32) {
    %c0_i32 = arith.constant 0 : i32
    %c0_i32_0 = arith.constant 0 : i32
    %c0_i32_1 = arith.constant 0 : i32
    return %c0_i32, %c0_i32_0 : i32, i32
  }
  func.func @transform_5(%arg0: i32) -> (i32, i32) {
    %c0_i32 = arith.constant 0 : i32
    %c0_i32_0 = arith.constant 0 : i32
    %c0_i32_1 = arith.constant 0 : i32
    return %c0_i32, %c0_i32_0 : i32, i32
  }
  func.func @transform_6(%arg0: i32) -> (i32, i32) {
    %c0_i32 = arith.constant 0 : i32
    %c0_i32_0 = arith.constant 0 : i32
    %c0_i32_1 = arith.constant 0 : i32
    return %c0_i32, %c0_i32_0 : i32, i32
  }
  func.func @transform_7(%arg0: i32) -> (i32, i32) {
    %c0_i32 = arith.constant 0 : i32
    %c0_i32_0 = arith.constant 0 : i32
    %c0_i32_1 = arith.constant 0 : i32
    return %c0_i32, %c0_i32_0 : i32, i32
  }
  func.func @transform_8(%arg0: i32) -> (i32, i32) {
    %c0_i32 = arith.constant 0 : i32
    %c0_i32_0 = arith.constant 0 : i32
    %c0_i32_1 = arith.constant 0 : i32
    return %c0_i32, %c0_i32_0 : i32, i32
  }
  func.func @transform_9(%arg0: i32) -> (i32, i32) {
    %c0_i32 = arith.constant 0 : i32
    %c0_i32_0 = arith.constant 0 : i32
    %c0_i32_1 = arith.constant 0 : i32
    return %c0_i32, %c0_i32_0 : i32, i32
  }
  func.func @transform_10(%arg0: i32) -> i32 {
    %c0_i32 = arith.constant 0 : i32
    %c0_i32_0 = arith.constant 0 : i32
    return %c0_i32 : i32
  }
  func.func @transform_11(%arg0: i32) -> (i32, i32) {
    %c0_i32 = arith.constant 0 : i32
    %c0_i32_0 = arith.constant 0 : i32
    return %arg0, %c0_i32 : i32, i32
  }
}

</mosaic_0001>

<bundles_post_ra>
// kernel: critic_forward.1
= control target key start
LH: loop header
LB: loop body
LE: loop exit
PB: predicated region body
PF: predicated region fallthrough
CT: control target
= control target key end

     0   :  { %v5594_v0 = vmov 2   ;;  %v5596_v1 = vmov 1   ;;  %v5601_v7 = vmov 0   ;;  %vm176_vm0 = vcmask 130048   ;;  %s5580_s1 = inlined_call_operand.vmem [shape: f32[256,4], index: 1, kind: input, shape index: {}]   ;;  %s5581_s2 = inlined_call_operand.vmem [shape: bf16[16,256], index: 2, kind: input, shape index: {}]   ;;  %s5582_s0 = inlined_call_operand.vmem [shape: bf16[256,16], index: 0, kind: input, shape index: {}]   ;;  %s5583_s4 = inlined_call_operand.vmem [shape: bf16[256,256], index: 4, kind: input, shape index: {}]   ;;  %s5584_s5 = inlined_call_operand.vmem [shape: f32[4,256], index: 5, kind: input, shape index: {}]   ;;  %s5585_s7 = inlined_call_operand.vmem [shape: f32[256,128], index: 7, kind: input, shape index: {}]   ;;  %s5586_s3 = inlined_call_operand.vmem [shape: f32[1,256], index: 3, kind: input, shape index: {}]   ;;  %s5587_s6 = inlined_call_operand.vmem [shape: f32[1,256], index: 6, kind: input, shape index: {}]   ;;  %s5588_s9 = inlined_call_operand.vmem [shape: bf16[128,128], index: 9, kind: input, shape index: {}]   ;;  %s5589_s8 = inlined_call_operand.vmem [shape: f32[1,128], index: 8, kind: input, shape index: {}]   ;;  %s5590_s10 = inlined_call_operand.<no memory space> [shape: f32[1], index: 10, kind: input, shape index: {}]   ;;  %s5591_s11 = inlined_call_operand.vmem [shape: f32[256,128], index: 11, kind: output, shape index: {}]  }
   0x1   :  { %3344 = vset.pattern.permute.xlu0 %v5594_v0  ;;  %3343 = vset.pattern.permute.xlu1 %v5596_v1  ;;  %v3567_v2 = vld [vmem:[%s5580_s1] sm:$0xff]  ;;  %v3580_v5 = vld [vmem:[%s5580_s1 + $0x18] sm:$0xff]  ;;  %v3585_v6 = vld [vmem:[%s5580_s1 + $0x8] sm:$0xff]  ;;  %v5592_v12 = vmov 3   ;;  %v76_v22 = vlaneseq }
   0x2   :  { %1301 = vperm.xlu0 %3344, %v3567_v2   ;;  %1027 = vperm.xlu1 %3343, %v3567_v2   ;;  %v3416_v3 = vld [vmem:[%s5581_s2 + $0x4] ss:$8 sps:$4 sm:$0xff]   ;;  %v3418_v4 = vld [vmem:[%s5581_s2] ss:$8 sps:$4 sm:$0xff]   ;;  %v3596_v9 = vld [vmem:[%s5580_s1 + $0x30] sm:$0xff] }
   0x3   :  { %257 = vmatprep.mubr.bf16.mxu0 %v5601_v7  ;;  %225 = vmatprep.subr.bf16.mxu0 %v3416_v3  ;;  %v3419_v8 = vld [vmem:[%s5582_s0] sm:$0xff]   ;;  %v676_v10 = vld [vmem:[%s5580_s1 + $0x10] sm:$0xff]  ;;  %v3420_v11 = vld [vmem:[%s5582_s0 + $0x8] sm:$0xff]   ;;  %v3684_v27 = vshrl.u32 %v76_v22, 7 }
   0x4   :  { %226 = vmatpush1.bf16.msra.mxu0 %v3418_v4  ;;  %v3616_v13 = vld [vmem:[%s5580_s1 + $0x28] sm:$0xff]  ;;  %v3623_v14 = vld [vmem:[%s5580_s1 + $0x40] sm:$0xff]  ;;  %v3421_v15 = vld [vmem:[%s5582_s0 + $0x10] sm:$0xff]  }
   0x5   :  { %v3634_v16 = vld [vmem:[%s5580_s1 + $0x58] sm:$0xff]  ;;  %v3642_v17 = vld [vmem:[%s5580_s1 + $0x70] sm:$0xff]  ;;  %v3658_v19 = vld [vmem:[%s5580_s1 + $0x20] sm:$0xff]  ;;  %v875_v30 = vsub.s32 4, %v3684_v27  ;;  %v3707_v34 = vsub.s32 0, %v3684_v27 }
   0x6   :  { %1313 = vperm.xlu0 %3344, %v3580_v5   ;;  %1031 = vperm.xlu1 %3343, %v3585_v6   ;;  %v3422_v18 = vld [vmem:[%s5582_s0 + $0x18] sm:$0xff]   ;;  %v3423_v20 = vld [vmem:[%s5582_s0 + $0x20] sm:$0xff]   ;;  %v3689_v28 = vld [vmem:[%s5580_s1 + $0x50] sm:$0xff] }
   0x7   :  { %3050 = vmatmul.mubr.msk.bf16.vlgmr.msra.gmra.mrb[0].mxu0 %vm176_vm0, %v3419_v8  ;;  %v3435_v21 = vld [vmem:[%s5583_s4 + $0x4] ss:$8 sps:$4 sm:$0xff]   ;;  %v3670_v23 = vld [vmem:[%s5580_s1 + $0x38] sm:$0xff]  ;;  %v3437_v24 = vld [vmem:[%s5583_s4] ss:$8 sps:$4 sm:$0xff]  }
   0x8   :  { %267 = vmatprep.mubr.bf16.mxu0 %v5601_v7  ;;  %2008 = vmatprep.subr.bf16.mxu1 %v3435_v21  ;;  %v3438_v25 = vld [vmem:[%s5583_s4 + $0x14] ss:$8 sps:$4 sm:$0xff]   ;;  %v3440_v26 = vld [vmem:[%s5583_s4 + $0x10] ss:$8 sps:$4 sm:$0xff]   ;;  %v3424_v29 = vld [vmem:[%s5582_s0 + $0x28] sm:$0xff]  }
   0x9   :  { %2009 = vmatpush1.bf16.msra.mxu1 %v3437_v24  ;;  %v706_v31 = vld [vmem:[%s5584_s5] sm:$0xff]  ;;  %v3714_v36 = vld [vmem:[%s5580_s1 + $0x68] sm:$0xff]  ;;  %v3444_v38 = vld [vmem:[%s5583_s4 + $0x34] ss:$8 sps:$4 sm:$0xff]  }
   0xa   :  { %1325 = vperm.xlu0 %3344, %v3596_v9   ;;  %3345 = vset.pattern.permute.xlu1 %v5594_v0  ;;  %v3441_v32 = vld [vmem:[%s5583_s4 + $0x24] ss:$8 sps:$4 sm:$0xff]   ;;  %v3443_v33 = vld [vmem:[%s5583_s4 + $0x20] ss:$8 sps:$4 sm:$0xff]   ;;  %v876_v35 = vrot.slane %v706_v31, %v875_v30  ;;  %v3446_v39 = vld [vmem:[%s5583_s4 + $0x30] ss:$8 sps:$4 sm:$0xff]  }
   0xb   :  { %1305 = vperm.xlu1 %3345, %v3585_v6   ;;  %2010 = vmatprep.subr.bf16.mxu1 %v3438_v25  ;;  %v3733_v40 = vld [vmem:[%s5580_s1 + $0x80] sm:$0xff]  ;;  %v3425_v41 = vld [vmem:[%s5582_s0 + $0x30] sm:$0xff]   ;;  %v3750_v44 = vld [vmem:[%s5580_s1 + $0x98] sm:$0xff] }
   0xc   :  { %v3717_v37 = vrot.slane %v876_v35, %v3707_v34  ;;  %v3447_v42 = vld [vmem:[%s5583_s4 + $0x44] ss:$8 sps:$4 sm:$0xff]   ;;  %v3449_v43 = vld [vmem:[%s5583_s4 + $0x40] ss:$8 sps:$4 sm:$0xff]   ;;  %v3450_v45 = vld [vmem:[%s5583_s4 + $0x54] ss:$8 sps:$4 sm:$0xff]  }
   0xd   :  { %2011 = vmatpush1.bf16.msra.mxu1 %v3440_v26  ;;  %v3452_v46 = vld [vmem:[%s5583_s4 + $0x50] ss:$8 sps:$4 sm:$0xff]   ;;  %v3453_v47 = vld [vmem:[%s5583_s4 + $0x64] ss:$8 sps:$4 sm:$0xff]   ;;  %v3455_v49 = vld [vmem:[%s5583_s4 + $0x60] ss:$8 sps:$4 sm:$0xff]  }
   0xe   :  { %3357 = vset.pattern.permute.xlu0 %v5596_v1  ;;  %2012 = vmatprep.subr.bf16.mxu1 %v3441_v32  ;;  %v3426_v48 = vld [vmem:[%s5582_s0 + $0x38] sm:$0xff]   ;;  %v3427_v52 = vld [vmem:[%s5582_s0 + $0x40] sm:$0xff]   ;;  %v3428_v57 = vld [vmem:[%s5582_s0 + $0x48] sm:$0xff]  }
   0xf   :  { %1035 = vperm.xlu0 %3357, %v676_v10   ;;  %3346 = vset.pattern.permute.xlu1 %v5592_v12  ;;  %v3456_v50 = vld [vmem:[%s5583_s4 + $0x74] ss:$8 sps:$4 sm:$0xff]   ;;  %v3458_v51 = vld [vmem:[%s5583_s4 + $0x70] ss:$8 sps:$4 sm:$0xff]   ;;  %v3459_v53 = vld [vmem:[%s5583_s4 + $0x84] ss:$8 sps:$4 sm:$0xff]  }
  0x10   :  { %1575 = vperm.xlu1 %3346, %v3567_v2   ;;  %3051 = vmatmul.mubr.msk.bf16.gmra.mrb[4].mxu0 %vm176_vm0, %v3420_v11  ;;  %v3461_v54 = vld [vmem:[%s5583_s4 + $0x80] ss:$8 sps:$4 sm:$0xff]   ;;  %v3462_v55 = vld [vmem:[%s5583_s4 + $0x94] ss:$8 sps:$4 sm:$0xff]   ;;  %v3464_v56 = vld [vmem:[%s5583_s4 + $0x90] ss:$8 sps:$4 sm:$0xff]  }
  0x11   :  { %277 = vmatprep.mubr.bf16.mxu0 %v5601_v7  ;;  %2013 = vmatpush1.bf16.msra.mxu1 %v3443_v33  ;;  %v3465_v58 = vld [vmem:[%s5583_s4 + $0xa4] ss:$8 sps:$4 sm:$0xff]   ;;  %v3467_v59 = vld [vmem:[%s5583_s4 + $0xa0] ss:$8 sps:$4 sm:$0xff]   ;;  %v3468_v60 = vld [vmem:[%s5583_s4 + $0xb4] ss:$8 sps:$4 sm:$0xff]  }
  0x12   :  { %2014 = vmatprep.subr.bf16.mxu1 %v3444_v38  ;;  %v3470_v61 = vld [vmem:[%s5583_s4 + $0xb0] ss:$8 sps:$4 sm:$0xff]   ;;  %v3471_v63 = vld [vmem:[%s5583_s4 + $0xc4] ss:$8 sps:$4 sm:$0xff]   ;;  %v3474_v3 = vld [vmem:[%s5583_s4 + $0xd4] ss:$8 sps:$4 sm:$0xff]  }
  0x13   :  { %1047 = vperm.xlu0 %3357, %v3616_v13   ;;  %v3429_v62 = vld [vmem:[%s5582_s0 + $0x50] sm:$0xff]   ;;  %v3906_v21 = vld [vmem:[%s5580_s1 + $0x78] sm:$0xff]  ;;  %v3935_v25 = vld [vmem:[%s5580_s1 + $0xc0] sm:$0xff] }
  0x14   :  { %3347 = vset.pattern.permute.xlu1 %v5601_v7  ;;  %v3476_v4 = vld [vmem:[%s5583_s4 + $0xd0] ss:$8 sps:$4 sm:$0xff]   ;;  %v3480_v11 = vld [vmem:[%s5583_s4 + $0xf4] ss:$8 sps:$4 sm:$0xff]   ;;  %v3953_v31 = vld [vmem:[%s5580_s1 + $0x88] sm:$0xff] }
  0x15   :  { %720 = vperm.xlu1 %3347, %v676_v10   ;;  %2015 = vmatpush1.bf16.msra.mxu1 %v3446_v39  ;;  %v3861_v8 = vld [vmem:[%s5580_s1 + $0xb0] sm:$0xff]  ;;  %v3434_v24 = vld [vmem:[%s5582_s0 + $0x78] sm:$0xff]   ;;  %v3963_v33 = vld [vmem:[%s5580_s1 + $0xa0] sm:$0xff] }
  0x16   :  { %2016 = vmatprep.subr.bf16.mxu1 %v3447_v42  ;;  %v3433_v22 = vld [vmem:[%s5582_s0 + $0x70] sm:$0xff]   ;;  %v3978_v39 = vld [vmem:[%s5580_s1 + $0xb8] sm:$0xff] }
  0x17   :  { %1059 = vperm.xlu0 %3357, %v3623_v14  }
  0x18   :  { %3052 = vmatmul.mubr.msk.bf16.gmra.mrb[8].mxu0 %vm176_vm0, %v3421_v15  ;;  %v3482_v15 = vld [vmem:[%s5583_s4 + $0xf0] ss:$8 sps:$4 sm:$0xff]  }
  0x19   :  { %725 = vperm.xlu1 %3347, %v3580_v5   ;;  %287 = vmatprep.mubr.bf16.mxu0 %v5601_v7 }
  0x1a   :  { %2017 = vmatpush1.bf16.msra.mxu1 %v3449_v43 }
  0x1b   :  { %1071 = vperm.xlu0 %3357, %v3634_v16   ;;  %2018 = vmatprep.subr.bf16.mxu1 %v3450_v45 }
  0x1d   :  { %3348 = vset.pattern.permute.xlu1 %v5596_v1 }
  0x1e   :  { %1039 = vperm.xlu1 %3348, %v3580_v5   ;;  %2019 = vmatpush1.bf16.msra.mxu1 %v3452_v46 }
  0x1f   :  { %1083 = vperm.xlu0 %3357, %v3642_v17   ;;  %2020 = vmatprep.subr.bf16.mxu1 %v3453_v47 }
  0x20   :  { %3053 = vmatmul.mubr.msk.bf16.gmra.mrb[12].mxu0 %vm176_vm0, %v3422_v18  ;;  %v3431_v18 = vld [vmem:[%s5582_s0 + $0x60] sm:$0xff]  }
  0x21   :  { %297 = vmatprep.mubr.bf16.mxu0 %v5601_v7 }
  0x22   :  { %3349 = vset.pattern.permute.xlu1 %v5594_v0  ;;  %2021 = vmatpush1.bf16.msra.mxu1 %v3455_v49 }
  0x23   :  { %3373 = vset.pattern.permute.xlu0 %v5592_v12  ;;  %1309 = vperm.xlu1 %3349, %v676_v10  }
  0x24   :  { %1579 = vperm.xlu0 %3373, %v3585_v6   ;;  %2022 = vmatprep.subr.bf16.mxu1 %v3456_v50  ;;  %v700_v50 = vld [vmem:[%s5580_s1 + $0xd0] sm:$0xff] }
  0x26   :  { %2023 = vmatpush1.bf16.msra.mxu1 %v3458_v51 }
  0x27   :  { %3350 = vset.pattern.permute.xlu1 %v5592_v12  ;;  %2024 = vmatprep.subr.bf16.mxu1 %v3459_v53 }
  0x28   :  { %1591 = vperm.xlu0 %3373, %v3658_v19   ;;  %1583 = vperm.xlu1 %3350, %v676_v10   ;;  %v683_v10 = vld [vmem:[%s5580_s1 + $0x48] sm:$0xff] }
  0x29   :  { %3054 = vmatmul.mubr.msk.bf16.gmra.mrb[16].mxu0 %vm176_vm0, %v3423_v20  ;;  %v686_v20 = vld [vmem:[%s5580_s1 + $0x60] sm:$0xff] }
  0x2a   :  { %307 = vmatprep.mubr.bf16.mxu0 %v5601_v7  ;;  %2025 = vmatpush1.bf16.msra.mxu1 %v3461_v54 }
  0x2b   :  { %2026 = vmatprep.subr.bf16.mxu1 %v3462_v55 }
  0x2c   :  { %1603 = vperm.xlu0 %3373, %v3670_v23   ;;  %1587 = vperm.xlu1 %3350, %v3580_v5   ;;  %v3430_v5 = vld [vmem:[%s5582_s0 + $0x58] sm:$0xff]  }
  0x2e   :  { %2027 = vmatpush1.bf16.msra.mxu1 %v3464_v56 }
  0x2f   :  { %2028 = vmatprep.subr.bf16.mxu1 %v3465_v58 }
  0x30   :  { %1615 = vperm.xlu0 %3373, %v3689_v28   ;;  %3351 = vset.pattern.permute.xlu1 %v5601_v7 }
  0x31   :  { %3055 = vmatmul.mubr.msk.bf16.gmra.mrb[20].mxu0 %vm176_vm0, %v3424_v29  ;;  %735 = vperm.xlu1 %3351, %v3616_v13   ;;  %v701_v29 = vld [vmem:[%s5580_s1 + $0xd8] sm:$0xff] }
  0x32   :  { %317 = vmatprep.mubr.bf16.mxu0 %v5601_v7  ;;  %2029 = vmatpush1.bf16.msra.mxu1 %v3467_v59 }
  0x33   :  { %2030 = vmatprep.subr.bf16.mxu1 %v3468_v60 }
  0x34   :  { %1627 = vperm.xlu0 %3373, %v3714_v36  }
  0x35   :  { %3352 = vset.pattern.permute.xlu1 %v5596_v1 }
  0x36   :  { %1043 = vperm.xlu1 %3352, %v3658_v19   ;;  %2031 = vmatpush1.bf16.msra.mxu1 %v3470_v61 }
  0x37   :  { %2032 = vmatprep.subr.bf16.mxu1 %v3471_v63 }
  0x38   :  { %1639 = vperm.xlu0 %3373, %v3733_v40  }
  0x39   :  { %3056 = vmatmul.mubr.msk.bf16.gmra.mrb[24].mxu0 %vm176_vm0, %v3425_v41 }
  0x3a   :  { %3353 = vset.pattern.permute.xlu1 %v5594_v0  ;;  %327 = vmatprep.mubr.bf16.mxu0 %v5601_v7 }
  0x3b   :  { %1317 = vperm.xlu1 %3353, %v3658_v19  }
  0x3c   :  { %1651 = vperm.xlu0 %3373, %v3750_v44  }
  0x3f   :  { %1321 = vperm.xlu1 %3353, %v3616_v13  }
  0x40   :  { %3385 = vset.pattern.permute.xlu0 %v5601_v7 }
  0x41   :  { %3057 = vmatmul.mubr.msk.bf16.gmra.mrb[28].mxu0 %vm176_vm0, %v3426_v48  ;;  %710 = vperm.xlu0 %3385, %v3567_v2   ;;  %v3473_v2 = vld [vmem:[%s5583_s4 + $0xc0] ss:$8 sps:$4 sm:$0xff]  }
  0x42   :  { %337 = vmatprep.mubr.bf16.mxu0 %v5601_v7  ;;  %2033 = vmatpush1.bf16.msra.mxu1 %v3473_v2  ;;  %v2425_v2 = vld [vmem:[%s5585_s7] sm:$0xff] }
  0x43   :  { %3354 = vset.pattern.permute.xlu1 %v5592_v12  ;;  %2034 = vmatprep.subr.bf16.mxu1 %v3474_v3  ;;  %v2426_v3 = vld [vmem:[%s5585_s7 + $0x8] sm:$0xff] }
  0x44   :  { %1595 = vperm.xlu1 %3354, %v3616_v13   ;;  %v3879_v13 = vld [vmem:[%s5580_s1 + $0xc8] sm:$0xff] }
  0x45   :  { %715 = vperm.xlu0 %3385, %v3585_v6   ;;  %v3477_v6 = vld [vmem:[%s5583_s4 + $0xe4] ss:$8 sps:$4 sm:$0xff]  }
  0x46   :  { %2035 = vmatpush1.bf16.msra.mxu1 %v3476_v4  ;;  %v3309_v4 = vpack.c.bf16 %v2426_v3, %v2425_v2 }
  0x47   :  { %2036 = vmatprep.subr.bf16.mxu1 %v3477_v6 }
  0x48   :  { %3355 = vset.pattern.permute.xlu1 %v5601_v7 }
  0x49   :  { %3058 = vmatmul.mubr.msk.bf16.gmra.mrb[32].mxu0 %vm176_vm0, %v3427_v52  ;;  %740 = vperm.xlu1 %3355, %v3596_v9   ;;  %v703_v52 = vld [vmem:[%s5580_s1 + $0xe8] sm:$0xff] }
  0x4a   :  { %347 = vmatprep.mubr.bf16.mxu0 %v5601_v7  ;;  %730 = vperm.xlu0 %3385, %v3658_v19   ;;  %v3432_v19 = vld [vmem:[%s5582_s0 + $0x68] sm:$0xff]  }
  0x4d   :  { %3356 = vset.pattern.permute.xlu1 %v5596_v1 }
  0x4e   :  { %1051 = vperm.xlu1 %3356, %v3596_v9   ;;  %745 = vperm.xlu0 %3385, %v3670_v23  }
  0x51   :  { %3059 = vmatmul.mubr.msk.bf16.gmra.mrb[36].mxu0 %vm176_vm0, %v3428_v57 }
  0x52   :  { %1055 = vperm.xlu1 %3356, %v3670_v23   ;;  %357 = vmatprep.mubr.bf16.mxu0 %v5601_v7 }
  0x53   :  { %760 = vperm.xlu0 %3385, %v3689_v28  }
  0x56   :  { %3358 = vset.pattern.permute.xlu1 %v5594_v0 }
  0x57   :  { %1329 = vperm.xlu1 %3358, %v3670_v23   ;;  %775 = vperm.xlu0 %3385, %v3714_v36   ;;  %v3916_v23 = vld [vmem:[%s5580_s1 + $0x90] sm:$0xff] }
  0x59   :  { %3060 = vmatmul.mubr.msk.bf16.gmra.mrb[40].mxu0 %vm176_vm0, %v3429_v62  ;;  %v2441_v62 = vld [vmem:[%s5585_s7 + $0x80] sm:$0xff] }
  0x5a   :  { %367 = vmatprep.mubr.bf16.mxu0 %v5601_v7 }
  0x5b   :  { %3359 = vset.pattern.permute.xlu1 %v5592_v12  ;;  %790 = vperm.xlu0 %3385, %v3733_v40  }
  0x5c   :  { %1599 = vperm.xlu1 %3359, %v3596_v9   ;;  %v3479_v9 = vld [vmem:[%s5583_s4 + $0xe0] ss:$8 sps:$4 sm:$0xff]  }
  0x5d   :  { %2037 = vmatpush1.bf16.msra.mxu1 %v3479_v9 }
  0x5e   :  { %2038 = vmatprep.subr.bf16.mxu1 %v3480_v11  ;;  %v74_v11 = vld [vmem:[%s5586_s3] sm:$0x3] }
  0x5f   :  { %805 = vperm.xlu0 %3385, %v3750_v44  }
  0x60   :  { %3360 = vset.pattern.permute.xlu1 %v5601_v7 }
  0x61   :  { %3061 = vmatmul.mubr.msk.bf16.gmra.mrb[44].mxu0 %vm176_vm0, %v3430_v5  ;;  %750 = vperm.xlu1 %3360, %v3623_v14  }
  0x62   :  { %377 = vmatprep.mubr.bf16.mxu0 %v5601_v7  ;;  %2039 = vmatpush1.bf16.msra.mxu1 %v3482_v15  ;;  %v4077_v15 = vsub.s32 1, %v3684_v27 }
  0x63   :  { %820 = vperm.xlu0 %3385, %v3861_v8  }
  0x65   :  { %755 = vperm.xlu1 %3360, %v683_v10  }
  0x67   :  { %835 = vperm.xlu0 %3385, %v3879_v13  }
  0x69   :  { %3062 = vmatmul.mubr.msk.bf16.gmra.mrb[48].mxu0 %vm176_vm0, %v3431_v18  ;;  %3361 = vset.pattern.permute.xlu1 %v5596_v1  ;;  %v4081_v18 = vrot.slane %v74_v11, %v3707_v34 }
  0x6a   :  { %1063 = vperm.xlu1 %3361, %v683_v10   ;;  %387 = vmatprep.mubr.bf16.mxu0 %v5601_v7 }
  0x6b   :  { %3395 = vset.pattern.permute.xlu0 %v5594_v0 }
  0x6c   :  { %1337 = vperm.xlu0 %3395, %v683_v10  }
  0x6e   :  { %3362 = vset.pattern.permute.xlu1 %v5594_v0 }
  0x6f   :  { %1333 = vperm.xlu1 %3362, %v3623_v14  }
  0x70   :  { %1349 = vperm.xlu0 %3395, %v686_v20  }
  0x71   :  { %3063 = vmatmul.mubr.msk.bf16.gmra.mrb[52].mxu0 %vm176_vm0, %v3432_v19  ;;  %v4084_v19 = vrot.slane %v74_v11, %v4077_v15 }
  0x72   :  { %397 = vmatprep.mubr.bf16.mxu0 %v5601_v7 }
  0x73   :  { %3363 = vset.pattern.permute.xlu1 %v5592_v12 }
  0x74   :  { %1607 = vperm.xlu1 %3363, %v3623_v14   ;;  %1361 = vperm.xlu0 %3395, %v3906_v21   ;;  %v3923_v14 = vld [vmem:[%s5580_s1 + $0xa8] sm:$0xff] }
  0x78   :  { %1611 = vperm.xlu1 %3363, %v683_v10   ;;  %1373 = vperm.xlu0 %3395, %v3916_v23  }
  0x79   :  { %3064 = vmatmul.mubr.msk.bf16.gmra.mrb[56].mxu0 %vm176_vm0, %v3433_v22 }
  0x7a   :  { %407 = vmatprep.mubr.bf16.mxu0 %v5601_v7 }
  0x7c   :  { %3364 = vset.pattern.permute.xlu1 %v5601_v7  ;;  %1385 = vperm.xlu0 %3395, %v3923_v14  }
  0x7d   :  { %765 = vperm.xlu1 %3364, %v3634_v16  }
  0x80   :  { %1397 = vperm.xlu0 %3395, %v3935_v25  }
  0x81   :  { %3065 = vmatmul.mubr.msk.bf16.gmra.mrb[60].mxu0 %vm176_vm0, %v3434_v24  ;;  %3365 = vset.pattern.permute.xlu1 %v5596_v1  ;;  %v3940_v26 = vpop.permute.xlu1 %1027  ;;  %v3970_v35 = vpop.permute.xlu0 %1301  ;;  %v2427_v24 = vld [vmem:[%s5585_s7 + $0x10] sm:$0xff] }
  0x82   :  { %1067 = vperm.xlu1 %3365, %v3689_v28  }
  0x84   :  { %1409 = vperm.xlu0 %3395, %v701_v29   ;;  %v2428_v29 = vld [vmem:[%s5585_s7 + $0x18] sm:$0xff] }
  0x85   :  { %v3946_v30 = vpop.permute.xlu1 %1031  ;;  %v3981_v41 = vpop.permute.xlu0 %1313 }
  0x86   :  { %5664 = vst [vmem:[#allocation3_spill] sm:$0xff] %v3946_v30  ;;  %3366 = vset.pattern.permute.xlu1 %v5594_v0 }
  0x87   :  { %1341 = vperm.xlu1 %3366, %v3689_v28  }
  0x88   :  { %3402 = vset.pattern.permute.xlu0 %v5596_v1 }
  0x89   :  { %1095 = vperm.xlu0 %3402, %v3953_v31   ;;  %v3988_v43 = vpop.permute.xlu0 %1325 }
  0x8a   :  { %v3957_v32 = vpop.permute.xlu1 %1305  ;;  %5667 = vst [vmem:[#allocation6_spill] sm:$0xff] %v3988_v43 }
  0x8b   :  { %5665 = vst [vmem:[#allocation4_spill] sm:$0xff] %v3957_v32  ;;  %1345 = vperm.xlu1 %3366, %v3634_v16  }
  0x8d   :  { %1107 = vperm.xlu0 %3402, %v3963_v33  }
  0x8e   :  { %v3995_v46 = vpop.permute.xlu0 %1035 }
  0x8f   :  { %3367 = vset.pattern.permute.xlu1 %v5592_v12  ;;  %v3967_v28 = vpop.permute.xlu1 %1575 }
  0x90   :  { %5666 = vst [vmem:[#allocation5_spill] sm:$0xff] %v3967_v28  ;;  %1619 = vperm.xlu1 %3367, %v3634_v16  }
  0x91   :  { %1119 = vperm.xlu0 %3402, %v3978_v39  }
  0x92   :  { %v4000_v48 = vpop.permute.xlu0 %1047 }
  0x93   :  { %5670 = vst [vmem:[#allocation9_spill] sm:$0xff] %v4000_v48 }
  0x94   :  { %3368 = vset.pattern.permute.xlu1 %v5601_v7  ;;  %v3973_v38 = vpop.permute.xlu1 %720 }
  0x95   :  { %770 = vperm.xlu1 %3368, %v686_v20   ;;  %1131 = vperm.xlu0 %3402, %v700_v50  }
  0x98   :  { %v3983_v42 = vpop.permute.xlu1 %725 }
  0x99   :  { %3369 = vset.pattern.permute.xlu1 %v5596_v1  ;;  %1143 = vperm.xlu0 %3402, %v703_v52  }
  0x9a   :  { %1075 = vperm.xlu1 %3369, %v686_v20  }
  0x9d   :  { %v3986_v16 = vpop.permute.xlu1 %1039  ;;  %3406 = vset.pattern.permute.xlu0 %v5592_v12 }
  0x9e   :  { %1079 = vperm.xlu1 %3369, %v3714_v36   ;;  %1663 = vperm.xlu0 %3406, %v3861_v8  }
  0xa2   :  { %3370 = vset.pattern.permute.xlu1 %v5594_v0  ;;  %v3992_v45 = vpop.permute.xlu1 %1309  ;;  %1675 = vperm.xlu0 %3406, %v3879_v13  }
  0xa3   :  { %5668 = vst [vmem:[#allocation7_spill] sm:$0xff] %v3992_v45  ;;  %1353 = vperm.xlu1 %3370, %v3714_v36   ;;  %v4009_v36 = vpop.permute.xlu0 %1059 }
  0xa4   :  { %5672 = vst [vmem:[#allocation11_spill] sm:$0xff] %v4009_v36 }
  0xa7   :  { %3371 = vset.pattern.permute.xlu1 %v5592_v12  ;;  %v3998_v47 = vpop.permute.xlu1 %1583  ;;  %v4021_v54 = vpop.permute.xlu0 %1071 }
  0xa8   :  { %5669 = vst [vmem:[#allocation8_spill] sm:$0xff] %v3998_v47  ;;  %1623 = vperm.xlu1 %3371, %v686_v20   ;;  %5675 = vst [vmem:[#allocation14_spill] sm:$0xff] %v4021_v54  ;;  %v2444_v20 = vld [vmem:[%s5585_s7 + $0x98] sm:$0xff] }
  0xab   :  { %v4003_v49 = vpop.permute.xlu1 %1587  ;;  %v4030_v56 = vpop.permute.xlu0 %1083 }
  0xac   :  { %3372 = vset.pattern.permute.xlu1 %v5601_v7  ;;  %5671 = vst [vmem:[#allocation10_spill] sm:$0xff] %v4003_v49 }
  0xad   :  { %780 = vperm.xlu1 %3372, %v3642_v17  }
  0xaf   :  { %v4036_v58 = vpop.permute.xlu0 %1579 }
  0xb0   :  { %v4011_v51 = vpop.permute.xlu1 %735  ;;  %5678 = vst [vmem:[#allocation17_spill] sm:$0xff] %v4036_v58 }
  0xb1   :  { %5673 = vst [vmem:[#allocation12_spill] sm:$0xff] %v4011_v51  ;;  %785 = vperm.xlu1 %3372, %v3906_v21  }
  0xb3   :  { %v4041_v60 = vpop.permute.xlu0 %1591 }
  0xb4   :  { %5680 = vst [vmem:[#allocation19_spill] sm:$0xff] %v4041_v60 }
  0xb5   :  { %3374 = vset.pattern.permute.xlu1 %v5596_v1  ;;  %v4018_v53 = vpop.permute.xlu1 %1043 }
  0xb6   :  { %5674 = vst [vmem:[#allocation13_spill] sm:$0xff] %v4018_v53  ;;  %1087 = vperm.xlu1 %3374, %v3906_v21  }
  0xb7   :  { %v4062_v6 = vpop.permute.xlu0 %1603 }
  0xb8   :  { %5683 = vst [vmem:[#allocation22_spill] sm:$0xff] %v4062_v6 }
  0xba   :  { %3375 = vset.pattern.permute.xlu1 %v5594_v0  ;;  %v4026_v55 = vpop.permute.xlu1 %1317 }
  0xbb   :  { %5676 = vst [vmem:[#allocation15_spill] sm:$0xff] %v4026_v55  ;;  %1357 = vperm.xlu1 %3375, %v3642_v17   ;;  %v4069_v10 = vpop.permute.xlu0 %1615 }
  0xbc   :  { %5685 = vst [vmem:[#allocation24_spill] sm:$0xff] %v4069_v10 }
  0xbe   :  { %v4032_v57 = vpop.permute.xlu1 %1321 }
  0xbf   :  { %5677 = vst [vmem:[#allocation16_spill] sm:$0xff] %v4032_v57  ;;  %3376 = vset.pattern.permute.xlu1 %v5592_v12 }
  0xc0   :  { %1631 = vperm.xlu1 %3376, %v3642_v17   ;;  %v2442_v17 = vld [vmem:[%s5585_s7 + $0x88] sm:$0xff] }
  0xc1   :  { %v3307_v63 = vpack.c.bf16 %v2442_v17, %v2441_v62  ;;  %v3313_v62 = vpack.c.bf16 %v2428_v29, %v2427_v24 }
  0xc3   :  { %v4039_v59 = vpop.permute.xlu1 %1595  ;;  %3308 = vmatprep.subr.bf16.mxu0 %v3307_v63 }
  0xc4   :  { %1635 = vperm.xlu1 %3376, %v3906_v21   ;;  %5679 = vst [vmem:[#allocation18_spill] sm:$0xff] %v4039_v59  ;;  %3310 = vmatpush3.bf16.msra.mxu0 %v3309_v4  ;;  %v4092_v21 = vpop.permute.xlu0 %1627 }
  0xc5   :  { %5687 = vst [vmem:[#allocation26_spill] sm:$0xff] %v4092_v21 }
  0xc8   :  { %3377 = vset.pattern.permute.xlu1 %v5601_v7  ;;  %v4044_v61 = vpop.permute.xlu1 %740 }
  0xc9   :  { %5681 = vst [vmem:[#allocation20_spill] sm:$0xff] %v4044_v61  ;;  %795 = vperm.xlu1 %3377, %v3953_v31   ;;  %v5693_v61 = vmov 0  }
  0xcd   :  { %3378 = vset.pattern.permute.xlu1 %v5596_v1  ;;  %v4060_v5 = vpop.permute.xlu1 %1051 }
  0xce   :  { %5682 = vst [vmem:[#allocation21_spill] sm:$0xff] %v4060_v5  ;;  %1091 = vperm.xlu1 %3378, %v3733_v40   ;;  %v5691_v5 = vmov 1  }
  0xd1   :  { %v4065_v9 = vpop.permute.xlu1 %1055 }
  0xd2   :  { %5684 = vst [vmem:[#allocation23_spill] sm:$0xff] %v4065_v9  ;;  %3379 = vset.pattern.permute.xlu1 %v5594_v0  ;;  %v4108_v0 = vpop.permute.xlu0 %1639 }
  0xd3   :  { %1365 = vperm.xlu1 %3379, %v3733_v40   ;;  %v2443_v40 = vld [vmem:[%s5585_s7 + $0x90] sm:$0xff] }
  0xd4   :  { %v3311_v22 = vpack.c.bf16 %v2444_v20, %v2443_v40 }
  0xd6   :  { %v4074_v13 = vpop.permute.xlu1 %1329  ;;  %3312 = vmatprep.subr.bf16.mxu0 %v3311_v22  ;;  %v4119_v59 = vpop.permute.xlu0 %1651 }
  0xd7   :  { %5686 = vst [vmem:[#allocation25_spill] sm:$0xff] %v4074_v13  ;;  %1369 = vperm.xlu1 %3379, %v3953_v31   ;;  %3314 = vmatpush3.bf16.msra.mxu0 %v3313_v62 }
  0xda   :  { %v259_v50 = vpop.f32.mrb[0].mxu0 }
  0xdb   :  { %3380 = vset.pattern.permute.xlu1 %v5592_v12  ;;  %v4101_v52 = vpop.permute.xlu1 %1599  ;;  %v260_v17 = vadd.f32 %v259_v50, %v4081_v18  ;;  %v261_v63 = vpop.f32.mrb[1].mxu0 }
  0xdc   :  { %5688 = vst [vmem:[#allocation27_spill] sm:$0xff] %v4101_v52  ;;  %1643 = vperm.xlu1 %3380, %v3953_v31   ;;  %v262_v2 = vadd.f32 %v261_v63, %v4084_v19  ;;  %v263_v3 = vpop.f32.mrb[2].mxu0 }
  0xdd   :  { %v482_v4 = vmul.f32 0.01, %v260_v17  ;;  %v264_v11 = vadd.f32 %v263_v3, %v4081_v18  ;;  %v265_v40 = vpop.f32.mrb[3].mxu0  ;;  %vm418_vm1 = vcmp.gt.f32.partialorder %v260_v17, 0.0 }
  0xde   :  { %v483_v20 = vmul.f32 0.01, %v262_v2  ;;  %v266_v12 = vadd.f32 %v265_v40, %v4084_v19  ;;  %vm419_vm3 = vcmp.gt.f32.partialorder %v262_v2, 0.0 }
  0xdf   :  { %vm420_vm2 = vcmp.gt.f32.partialorder %v264_v11, 0.0  ;;  %v484_v24 = vmul.f32 0.01, %v264_v11  ;;  %v546_v29 = vsel %vm418_vm1, %v260_v17, %v482_v4 }
  0xe0   :  { %3381 = vset.pattern.permute.xlu1 %v5601_v7  ;;  %v4111_v31 = vpop.permute.xlu1 %750  ;;  %v485_v22 = vmul.f32 0.01, %v266_v12  ;;  %vm421_vm4 = vcmp.gt.f32.partialorder %v266_v12, 0.0  ;;  %v547_v63 = vsel %vm419_vm3, %v262_v2, %v483_v20  ;;  %v702_v2 = vld [vmem:[%s5580_s1 + $0xe0] sm:$0xff] }
  0xe1   :  { %5689 = vst [vmem:[#allocation28_spill] sm:$0xff] %v4111_v31  ;;  %800 = vperm.xlu1 %3381, %v3916_v23   ;;  %v548_v50 = vsel %vm420_vm2, %v264_v11, %v484_v24  ;;  %1687 = vperm.xlu0 %3406, %v702_v2   ;;  %v2445_v20 = vld [vmem:[%s5585_s7 + $0xa0] sm:$0xff] }
  0xe2   :  { %v549_v3 = vsel %vm421_vm4, %v266_v12, %v485_v22  ;;  %v610_v1 = vpack.c.bf16 %v548_v50, %v546_v29 }
  0xe3   :  { %v269_v62 = vpop.f32.mrb[4].mxu0  ;;  %v611_v13 = vpack.c.bf16 %v549_v3, %v547_v63 }
  0xe4   :  { %v270_v40 = vadd.f32 %v269_v62, %v4081_v18  ;;  %v271_v52 = vpop.f32.mrb[5].mxu0  ;;  %v4115_v9 = vpop.permute.xlu1 %755 }
  0xe5   :  { %5690 = vst [vmem:[#allocation29_spill] sm:$0xff] %v4115_v9  ;;  %v272_v7 = vadd.f32 %v271_v52, %v4084_v19  ;;  %3382 = vset.pattern.permute.xlu1 %v5691_v5  ;;  %v273_v31 = vpop.f32.mrb[6].mxu0  ;;  %2040 = vmatprep.mubr.bf16.mxu1 %v611_v13  ;;  %v2446_v13 = vld [vmem:[%s5585_s7 + $0xa8] sm:$0xff] }
  0xe6   :  { %v486_v55 = vmul.f32 0.01, %v270_v40  ;;  %v274_v17 = vadd.f32 %v273_v31, %v4081_v18  ;;  %1099 = vperm.xlu1 %3382, %v3916_v23   ;;  %v275_v12 = vpop.f32.mrb[7].mxu0  ;;  %vm422_vm5 = vcmp.gt.f32.partialorder %v270_v40, 0.0  ;;  %2041 = vmatmul.mubr.bf16.vlgmr.msra.gmra.mrb[0].mxu1 %v610_v1  ;;  %v3315_v3 = vpack.c.bf16 %v2446_v13, %v2445_v20  ;;  %v2430_v9 = vld [vmem:[%s5585_s7 + $0x28] sm:$0xff] }
  0xe7   :  { %v487_v4 = vmul.f32 0.01, %v272_v7  ;;  %v276_v52 = vadd.f32 %v275_v12, %v4084_v19  ;;  %vm423_vm6 = vcmp.gt.f32.partialorder %v272_v7, 0.0  ;;  %v2429_v12 = vld [vmem:[%s5585_s7 + $0x20] sm:$0xff]  ;;  %3408 = vset.pattern.permute.xlu0 %v5693_v61  ;;  %v5695_v20 = vmov 2  }
  0xe8   :  { %vm424_vm7 = vcmp.gt.f32.partialorder %v274_v17, 0.0  ;;  %v488_v11 = vmul.f32 0.01, %v274_v17  ;;  %v550_v22 = vsel %vm422_vm5, %v270_v40, %v486_v55  ;;  %850 = vperm.xlu0 %3408, %v702_v2   ;;  %3316 = vmatprep.subr.bf16.mxu0 %v3315_v3  ;;  %v2447_v2 = vld [vmem:[%s5585_s7 + $0xb0] sm:$0xff] }
  0xe9   :  { %vm425_vm8 = vcmp.gt.f32.partialorder %v276_v52, 0.0  ;;  %v489_v24 = vmul.f32 0.01, %v276_v52  ;;  %v4133_v31 = vpop.permute.xlu1 %1063  ;;  %v551_v50 = vsel %vm423_vm6, %v272_v7, %v487_v4 }
  0xea   :  { %5692 = vst [vmem:[#allocation30_spill] sm:$0xff] %v4133_v31  ;;  %1103 = vperm.xlu1 %3382, %v3750_v44   ;;  %v552_v1 = vsel %vm424_vm7, %v274_v17, %v488_v11  ;;  %v4143_v31 = vpop.permute.xlu0 %710 }
  0xeb   :  { %v279_v29 = vpop.f32.mrb[8].mxu0  ;;  %v553_v62 = vsel %vm425_vm8, %v276_v52, %v489_v24  ;;  %v612_v63 = vpack.c.bf16 %v552_v1, %v550_v22  ;;  %5694 = vst [vmem:[#allocation31_spill] sm:$0xff] %v4143_v31  ;;  %v3317_v22 = vpack.c.bf16 %v2430_v9, %v2429_v12  ;;  %v2431_v9 = vld [vmem:[%s5585_s7 + $0x30] sm:$0xff] }
  0xec   :  { %v280_v55 = vadd.f32 %v279_v29, %v4081_v18  ;;  %v281_v40 = vpop.f32.mrb[9].mxu0  ;;  %v613_v17 = vpack.c.bf16 %v553_v62, %v551_v50  ;;  %v2448_v62 = vld [vmem:[%s5585_s7 + $0xb8] sm:$0xff] }
  0xed   :  { %v282_v7 = vadd.f32 %v281_v40, %v4084_v19  ;;  %v283_v4 = vpop.f32.mrb[10].mxu0  ;;  %3318 = vmatpush3.bf16.msra.mxu0 %v3317_v22  ;;  %v3319_v21 = vpack.c.bf16 %v2448_v62, %v2447_v2 }
  0xee   :  { %v490_v52 = vmul.f32 0.01, %v280_v55  ;;  %v284_v11 = vadd.f32 %v283_v4, %v4081_v18  ;;  %3383 = vset.pattern.permute.xlu1 %v5695_v20  ;;  %v285_v13 = vpop.f32.mrb[11].mxu0  ;;  %2050 = vmatprep.mubr.bf16.mxu1 %v613_v17  ;;  %v4149_v24 = vpop.permute.xlu1 %1333  ;;  %vm426_vm9 = vcmp.gt.f32.partialorder %v280_v55, 0.0  ;;  %v5698_v4 = vmov 3  }
  0xef   :  { %5696 = vst [vmem:[#allocation32_spill] sm:$0xff] %v4149_v24  ;;  %vm427_vm10 = vcmp.gt.f32.partialorder %v282_v7, 0.0  ;;  %v491_v1 = vmul.f32 0.01, %v282_v7  ;;  %v286_v29 = vadd.f32 %v285_v13, %v4084_v19  ;;  %1377 = vperm.xlu1 %3383, %v3750_v44   ;;  %2051 = vmatmul.mubr.bf16.gmra.mrb[4].mxu1 %v612_v63  ;;  %v2432_v44 = vld [vmem:[%s5585_s7 + $0x38] sm:$0xff]  ;;  %v4165_v3 = vpop.permute.xlu0 %715 }
  0xf0   :  { %vm428_vm11 = vcmp.gt.f32.partialorder %v284_v11, 0.0  ;;  %v492_v50 = vmul.f32 0.01, %v284_v11  ;;  %5697 = vst [vmem:[#allocation33_spill] sm:$0xff] %v4165_v3  ;;  %v554_v40 = vsel %vm426_vm9, %v280_v55, %v490_v52  ;;  %v3321_v57 = vpack.c.bf16 %v2432_v44, %v2431_v9  ;;  %3320 = vmatprep.subr.bf16.mxu0 %v3319_v21 }
  0xf1   :  { %vm429_vm12 = vcmp.gt.f32.partialorder %v286_v29, 0.0  ;;  %v493_v63 = vmul.f32 0.01, %v286_v29  ;;  %v555_v12 = vsel %vm427_vm10, %v282_v7, %v491_v1 }
  0xf2   :  { %v556_v17 = vsel %vm428_vm11, %v284_v11, %v492_v50  ;;  %3322 = vmatpush3.bf16.msra.mxu0 %v3321_v57 }
  0xf3   :  { %3384 = vset.pattern.permute.xlu1 %v5698_v4  ;;  %v289_v13 = vpop.f32.mrb[12].mxu0  ;;  %v557_v22 = vsel %vm429_vm12, %v286_v29, %v493_v63  ;;  %v614_v24 = vpack.c.bf16 %v556_v17, %v554_v40  ;;  %v4169_v53 = vpop.permute.xlu1 %1607 }
  0xf4   :  { %5699 = vst [vmem:[#allocation34_spill] sm:$0xff] %v4169_v53  ;;  %v290_v10 = vadd.f32 %v289_v13, %v4081_v18  ;;  %1647 = vperm.xlu1 %3384, %v3916_v23   ;;  %v291_v6 = vpop.f32.mrb[13].mxu0  ;;  %v615_v60 = vpack.c.bf16 %v557_v22, %v555_v12  ;;  %v4175_v29 = vpop.permute.xlu0 %730 }
  0xf5   :  { %v292_v7 = vadd.f32 %v291_v6, %v4084_v19  ;;  %v293_v1 = vpop.f32.mrb[14].mxu0  ;;  %5700 = vst [vmem:[#allocation35_spill] sm:$0xff] %v4175_v29 }
  0xf6   :  { %v494_v55 = vmul.f32 0.01, %v290_v10  ;;  %v294_v52 = vadd.f32 %v293_v1, %v4081_v18  ;;  %v295_v11 = vpop.f32.mrb[15].mxu0  ;;  %2060 = vmatprep.mubr.bf16.mxu1 %v615_v60  ;;  %vm430_vm13 = vcmp.gt.f32.partialorder %v290_v10, 0.0 }
  0xf7   :  { %v495_v2 = vmul.f32 0.01, %v292_v7  ;;  %v296_v50 = vadd.f32 %v295_v11, %v4084_v19  ;;  %2061 = vmatmul.mubr.bf16.gmra.mrb[8].mxu1 %v614_v24  ;;  %vm431_vm14 = vcmp.gt.f32.partialorder %v292_v7, 0.0  ;;  %v4179_v6 = vpop.permute.xlu1 %1611  ;;  %v2450_v11 = vld [vmem:[%s5585_s7 + $0xc8] sm:$0xff] }
  0xf8   :  { %vm432_vm15 = vcmp.gt.f32.partialorder %v294_v52, 0.0  ;;  %v496_v23 = vmul.f32 0.01, %v294_v52  ;;  %3386 = vset.pattern.permute.xlu1 %v5693_v61  ;;  %5701 = vst [vmem:[#allocation36_spill] sm:$0xff] %v4179_v6  ;;  %v558_v60 = vsel %vm430_vm13, %v290_v10, %v494_v55  ;;  %v4182_v62 = vpop.permute.xlu0 %745 }
  0xf9   :  { %vm433_vm0 = vcmp.gt.f32.partialorder %v296_v50, 0.0  ;;  %v497_v21 = vmul.f32 0.01, %v296_v50  ;;  %810 = vperm.xlu1 %3386, %v3963_v33   ;;  %5702 = vst [vmem:[#allocation37_spill] sm:$0xff] %v4182_v62  ;;  %v559_v9 = vsel %vm431_vm14, %v292_v7, %v495_v2  ;;  %v2449_v7 = vld [vmem:[%s5585_s7 + $0xc0] sm:$0xff] }
  0xfa   :  { %v560_v57 = vsel %vm432_vm15, %v294_v52, %v496_v23 }
  0xfb   :  { %v561_v44 = vsel %vm433_vm0, %v296_v50, %v497_v21  ;;  %v616_v63 = vpack.c.bf16 %v560_v57, %v558_v60  ;;  %v3323_v57 = vpack.c.bf16 %v2450_v11, %v2449_v7 }
  0xfc   :  { %v299_v12 = vpop.f32.mrb[16].mxu0  ;;  %v617_v24 = vpack.c.bf16 %v561_v44, %v559_v9  ;;  %v4184_v40 = vpop.permute.xlu1 %765  ;;  %v2433_v9 = vld [vmem:[%s5585_s7 + $0x40] sm:$0xff]  ;;  %v2434_v44 = vld [vmem:[%s5585_s7 + $0x48] sm:$0xff] }
  0xfd   :  { %5703 = vst [vmem:[#allocation38_spill] sm:$0xff] %v4184_v40  ;;  %v300_v17 = vadd.f32 %v299_v12, %v4081_v18  ;;  %v301_v13 = vpop.f32.mrb[17].mxu0  ;;  %815 = vperm.xlu1 %3386, %v3923_v14   ;;  %v4197_v23 = vpop.permute.xlu0 %760  ;;  %3324 = vmatprep.subr.bf16.mxu0 %v3323_v57  ;;  %v3325_v7 = vpack.c.bf16 %v2434_v44, %v2433_v9 }
  0xfe   :  { %v302_v22 = vadd.f32 %v301_v13, %v4084_v19  ;;  %v303_v1 = vpop.f32.mrb[18].mxu0  ;;  %2070 = vmatprep.mubr.bf16.mxu1 %v617_v24  ;;  %5704 = vst [vmem:[#allocation39_spill] sm:$0xff] %v4197_v23 }
  0xff   :  { %v498_v10 = vmul.f32 0.01, %v300_v17  ;;  %v304_v55 = vadd.f32 %v303_v1, %v4081_v18  ;;  %v305_v52 = vpop.f32.mrb[19].mxu0  ;;  %2071 = vmatmul.mubr.bf16.gmra.mrb[12].mxu1 %v616_v63  ;;  %vm434_vm1 = vcmp.gt.f32.partialorder %v300_v17, 0.0  ;;  %3326 = vmatpush3.bf16.msra.mxu0 %v3325_v7 }
 0x100   :  { %v499_v2 = vmul.f32 0.01, %v302_v22  ;;  %v306_v50 = vadd.f32 %v305_v52, %v4084_v19  ;;  %vm435_vm2 = vcmp.gt.f32.partialorder %v302_v22, 0.0 }
 0x101   :  { %vm436_vm3 = vcmp.gt.f32.partialorder %v304_v55, 0.0  ;;  %v500_v21 = vmul.f32 0.01, %v304_v55  ;;  %3387 = vset.pattern.permute.xlu1 %v5691_v5  ;;  %v4200_v60 = vpop.permute.xlu1 %1067  ;;  %v562_v12 = vsel %vm434_vm1, %v300_v17, %v498_v10  ;;  %v4214_v17 = vpop.permute.xlu0 %775 }
 0x102   :  { %5705 = vst [vmem:[#allocation40_spill] sm:$0xff] %v4200_v60  ;;  %vm437_vm4 = vcmp.gt.f32.partialorder %v306_v50, 0.0  ;;  %v501_v63 = vmul.f32 0.01, %v306_v50  ;;  %1111 = vperm.xlu1 %3387, %v3923_v14   ;;  %v563_v1 = vsel %vm435_vm2, %v302_v22, %v499_v2  ;;  %5707 = vst [vmem:[#allocation42_spill] sm:$0xff] %v4214_v17 }
 0x103   :  { %v564_v24 = vsel %vm436_vm3, %v304_v55, %v500_v21 }
 0x104   :  { %v309_v13 = vpop.f32.mrb[20].mxu0  ;;  %v565_v52 = vsel %vm437_vm4, %v306_v50, %v501_v63  ;;  %v618_v60 = vpack.c.bf16 %v564_v24, %v562_v12 }
 0x105   :  { %v310_v11 = vadd.f32 %v309_v13, %v4081_v18  ;;  %v311_v40 = vpop.f32.mrb[21].mxu0  ;;  %v619_v6 = vpack.c.bf16 %v565_v52, %v563_v1  ;;  %v4223_v24 = vpop.permute.xlu0 %790 }
 0x106   :  { %v312_v53 = vadd.f32 %v311_v40, %v4084_v19  ;;  %v313_v23 = vpop.f32.mrb[22].mxu0  ;;  %3388 = vset.pattern.permute.xlu1 %v5695_v20  ;;  %v4212_v62 = vpop.permute.xlu1 %1341 }
 0x107   :  { %5706 = vst [vmem:[#allocation41_spill] sm:$0xff] %v4212_v62  ;;  %v502_v10 = vmul.f32 0.01, %v310_v11  ;;  %v314_v22 = vadd.f32 %v313_v23, %v4081_v18  ;;  %v315_v55 = vpop.f32.mrb[23].mxu0  ;;  %2080 = vmatprep.mubr.bf16.mxu1 %v619_v6  ;;  %1381 = vperm.xlu1 %3388, %v3963_v33   ;;  %vm438_vm5 = vcmp.gt.f32.partialorder %v310_v11, 0.0 }
 0x108   :  { %v503_v2 = vmul.f32 0.01, %v312_v53  ;;  %v316_v50 = vadd.f32 %v315_v55, %v4084_v19  ;;  %2081 = vmatmul.mubr.bf16.gmra.mrb[16].mxu1 %v618_v60  ;;  %vm439_vm6 = vcmp.gt.f32.partialorder %v312_v53, 0.0 }
 0x109   :  { %vm440_vm7 = vcmp.gt.f32.partialorder %v314_v22, 0.0  ;;  %v504_v40 = vmul.f32 0.01, %v314_v22  ;;  %v566_v9 = vsel %vm438_vm5, %v310_v11, %v502_v10 }
 0x10a   :  { %vm441_vm8 = vcmp.gt.f32.partialorder %v316_v50, 0.0  ;;  %v505_v21 = vmul.f32 0.01, %v316_v50  ;;  %v4219_v57 = vpop.permute.xlu1 %1345  ;;  %v567_v6 = vsel %vm439_vm6, %v312_v53, %v503_v2  ;;  %v2452_v2 = vld [vmem:[%s5585_s7 + $0xd8] sm:$0xff] }
 0x10b   :  { %5708 = vst [vmem:[#allocation43_spill] sm:$0xff] %v4219_v57  ;;  %3389 = vset.pattern.permute.xlu1 %v5698_v4  ;;  %v568_v23 = vsel %vm440_vm7, %v314_v22, %v504_v40  ;;  %v2451_v22 = vld [vmem:[%s5585_s7 + $0xd0] sm:$0xff] }
 0x10c   :  { %v319_v44 = vpop.f32.mrb[24].mxu0  ;;  %1655 = vperm.xlu1 %3389, %v3963_v33   ;;  %v569_v63 = vsel %vm441_vm8, %v316_v50, %v505_v21  ;;  %v620_v12 = vpack.c.bf16 %v568_v23, %v566_v9  ;;  %v2435_v50 = vld [vmem:[%s5585_s7 + $0x50] sm:$0xff]  ;;  %v3327_v9 = vpack.c.bf16 %v2452_v2, %v2451_v22  ;;  %v4244_v23 = vpop.permute.xlu0 %805 }
 0x10d   :  { %v320_v60 = vadd.f32 %v319_v44, %v4081_v18  ;;  %v321_v13 = vpop.f32.mrb[25].mxu0  ;;  %v621_v1 = vpack.c.bf16 %v569_v63, %v567_v6 }
 0x10e   :  { %v322_v52 = vadd.f32 %v321_v13, %v4084_v19  ;;  %v323_v7 = vpop.f32.mrb[26].mxu0  ;;  %3328 = vmatprep.subr.bf16.mxu0 %v3327_v9 }
 0x10f   :  { %v506_v55 = vmul.f32 0.01, %v320_v60  ;;  %v324_v57 = vadd.f32 %v323_v7, %v4081_v18  ;;  %v325_v11 = vpop.f32.mrb[27].mxu0  ;;  %2090 = vmatprep.mubr.bf16.mxu1 %v621_v1  ;;  %vm442_vm9 = vcmp.gt.f32.partialorder %v320_v60, 0.0  ;;  %v4230_v53 = vpop.permute.xlu1 %1619 }
 0x110   :  { %v507_v10 = vmul.f32 0.01, %v322_v52  ;;  %v326_v33 = vadd.f32 %v325_v11, %v4084_v19  ;;  %2091 = vmatmul.mubr.bf16.gmra.mrb[20].mxu1 %v620_v12  ;;  %1659 = vperm.xlu1 %3389, %v3923_v14   ;;  %5709 = vst [vmem:[#allocation44_spill] sm:$0xff] %v4230_v53  ;;  %vm443_vm10 = vcmp.gt.f32.partialorder %v322_v52, 0.0  ;;  %v2436_v14 = vld [vmem:[%s5585_s7 + $0x58] sm:$0xff] }
 0x111   :  { %vm444_vm11 = vcmp.gt.f32.partialorder %v324_v57, 0.0  ;;  %v508_v40 = vmul.f32 0.01, %v324_v57  ;;  %v570_v44 = vsel %vm442_vm9, %v320_v60, %v506_v55  ;;  %v3329_v63 = vpack.c.bf16 %v2436_v14, %v2435_v50  ;;  %v4264_v14 = vpop.permute.xlu0 %820 }
 0x112   :  { %vm445_vm12 = vcmp.gt.f32.partialorder %v326_v33, 0.0  ;;  %v509_v21 = vmul.f32 0.01, %v326_v33  ;;  %v571_v13 = vsel %vm443_vm10, %v322_v52, %v507_v10  ;;  %v4257_v52 = vld [vmem:[%s5580_s1 + $0xf8] sm:$0xff]  ;;  %5712 = vst [vmem:[#allocation47_spill] sm:$0xff] %v4264_v14  ;;  %v4310_v14 = vld [vmem:[%s5584_s5] sm:$0xff] }
 0x113   :  { %v572_v6 = vsel %vm444_vm11, %v324_v57, %v508_v40  ;;  %3330 = vmatpush3.bf16.msra.mxu0 %v3329_v63  ;;  %865 = vperm.xlu0 %3408, %v4257_v52  }
 0x114   :  { %v329_v12 = vpop.f32.mrb[28].mxu0  ;;  %3390 = vset.pattern.permute.xlu1 %v5693_v61  ;;  %v573_v1 = vsel %vm445_vm12, %v326_v33, %v509_v21  ;;  %v622_v7 = vpack.c.bf16 %v572_v6, %v570_v44  ;;  %v4248_v11 = vpop.permute.xlu1 %770 }
 0x115   :  { %5710 = vst [vmem:[#allocation45_spill] sm:$0xff] %v4248_v11  ;;  %v330_v53 = vadd.f32 %v329_v12, %v4081_v18  ;;  %v331_v62 = vpop.f32.mrb[29].mxu0  ;;  %825 = vperm.xlu1 %3390, %v3978_v39   ;;  %v623_v22 = vpack.c.bf16 %v573_v1, %v571_v13  ;;  %v4270_v1 = vld [vmem:[%s5580_s1 + $0xf0] sm:$0xff] }
 0x116   :  { %v332_v2 = vadd.f32 %v331_v62, %v4084_v19  ;;  %v333_v60 = vpop.f32.mrb[30].mxu0 }
 0x117   :  { %v510_v57 = vmul.f32 0.01, %v330_v53  ;;  %v334_v55 = vadd.f32 %v333_v60, %v4081_v18  ;;  %v335_v50 = vpop.f32.mrb[31].mxu0  ;;  %2100 = vmatprep.mubr.bf16.mxu1 %v623_v22  ;;  %vm446_vm13 = vcmp.gt.f32.partialorder %v330_v53, 0.0  ;;  %3412 = vset.pattern.permute.xlu0 %v5695_v20 }
 0x118   :  { %v511_v10 = vmul.f32 0.01, %v332_v2  ;;  %v336_v33 = vadd.f32 %v335_v50, %v4084_v19  ;;  %2101 = vmatmul.mubr.bf16.gmra.mrb[24].mxu1 %v622_v7  ;;  %vm447_vm14 = vcmp.gt.f32.partialorder %v332_v2, 0.0  ;;  %1421 = vperm.xlu0 %3412, %v4270_v1  }
 0x119   :  { %vm448_vm15 = vcmp.gt.f32.partialorder %v334_v55, 0.0  ;;  %v512_v62 = vmul.f32 0.01, %v334_v55  ;;  %3391 = vset.pattern.permute.xlu1 %v5691_v5  ;;  %v4262_v40 = vpop.permute.xlu1 %1075  ;;  %v574_v9 = vsel %vm446_vm13, %v330_v53, %v510_v57 }
 0x11a   :  { %5711 = vst [vmem:[#allocation46_spill] sm:$0xff] %v4262_v40  ;;  %vm449_vm0 = vcmp.gt.f32.partialorder %v336_v33, 0.0  ;;  %v513_v21 = vmul.f32 0.01, %v336_v33  ;;  %1115 = vperm.xlu1 %3391, %v3861_v8   ;;  %v575_v63 = vsel %vm447_vm14, %v332_v2, %v511_v10 }
 0x11b   :  { %v576_v44 = vsel %vm448_vm15, %v334_v55, %v512_v62 }
 0x11c   :  { %v339_v6 = vpop.f32.mrb[32].mxu0  ;;  %v577_v12 = vsel %vm449_vm0, %v336_v33, %v513_v21  ;;  %v624_v13 = vpack.c.bf16 %v576_v44, %v574_v9  ;;  %v4281_v33 = vpop.permute.xlu0 %835  ;;  %3415 = vset.pattern.permute.xlu0 %v5698_v4 }
 0x11d   :  { %v340_v7 = vadd.f32 %v339_v6, %v4081_v18  ;;  %v341_v22 = vpop.f32.mrb[33].mxu0  ;;  %v625_v60 = vpack.c.bf16 %v577_v12, %v575_v63  ;;  %v4274_v50 = vpop.permute.xlu1 %1079  ;;  %5714 = vst [vmem:[#allocation49_spill] sm:$0xff] %v4281_v33  ;;  %1699 = vperm.xlu0 %3415, %v4257_v52   ;;  %v4305_v33 = vsub.s32 2, %v3684_v27 }
 0x11e   :  { %5713 = vst [vmem:[#allocation48_spill] sm:$0xff] %v4274_v50  ;;  %v342_v53 = vadd.f32 %v341_v22, %v4084_v19  ;;  %v343_v2 = vpop.f32.mrb[34].mxu0  ;;  %3392 = vset.pattern.permute.xlu1 %v5695_v20  ;;  %v2454_v22 = vld [vmem:[%s5585_s7 + $0xe8] sm:$0xff] }
 0x11f   :  { %v514_v57 = vmul.f32 0.01, %v340_v7  ;;  %v344_v55 = vadd.f32 %v343_v2, %v4081_v18  ;;  %v345_v10 = vpop.f32.mrb[35].mxu0  ;;  %2110 = vmatprep.mubr.bf16.mxu1 %v625_v60  ;;  %1389 = vperm.xlu1 %3392, %v3861_v8   ;;  %vm450_vm1 = vcmp.gt.f32.partialorder %v340_v7, 0.0  ;;  %v1160_v8 = vsub.s32 5, %v3684_v27  ;;  %v2437_v60 = vld [vmem:[%s5585_s7 + $0x60] sm:$0xff] }
 0x120   :  { %v515_v62 = vmul.f32 0.01, %v342_v53  ;;  %v346_v21 = vadd.f32 %v345_v10, %v4084_v19  ;;  %2111 = vmatmul.mubr.bf16.gmra.mrb[28].mxu1 %v624_v13  ;;  %vm451_vm2 = vcmp.gt.f32.partialorder %v342_v53, 0.0  ;;  %v2453_v13 = vld [vmem:[%s5585_s7 + $0xe0] sm:$0xff] }
 0x121   :  { %vm452_vm3 = vcmp.gt.f32.partialorder %v344_v55, 0.0  ;;  %v516_v9 = vmul.f32 0.01, %v344_v55  ;;  %v578_v63 = vsel %vm450_vm1, %v340_v7, %v514_v57  ;;  %v3331_v40 = vpack.c.bf16 %v2454_v22, %v2453_v13  ;;  %v2438_v7 = vld [vmem:[%s5585_s7 + $0x68] sm:$0xff] }
 0x122   :  { %vm453_vm4 = vcmp.gt.f32.partialorder %v346_v21, 0.0  ;;  %v517_v44 = vmul.f32 0.01, %v346_v21  ;;  %v4285_v6 = vpop.permute.xlu1 %1353  ;;  %v579_v10 = vsel %vm451_vm2, %v342_v53, %v515_v62  ;;  %v3333_v11 = vpack.c.bf16 %v2438_v7, %v2437_v60  ;;  %v4314_v62 = vpop.permute.xlu0 %1337 }
 0x123   :  { %5715 = vst [vmem:[#allocation50_spill] sm:$0xff] %v4285_v6  ;;  %1393 = vperm.xlu1 %3392, %v3978_v39   ;;  %v580_v12 = vsel %vm452_vm3, %v344_v55, %v516_v9  ;;  %v1157_v53 = vrot.slane %v4310_v14, %v4077_v15  ;;  %5716 = vst [vmem:[#allocation51_spill] sm:$0xff] %v4314_v62  ;;  %3332 = vmatprep.subr.bf16.mxu0 %v3331_v40 }
 0x124   :  { %v349_v2 = vpop.f32.mrb[36].mxu0  ;;  %v581_v6 = vsel %vm453_vm4, %v346_v21, %v517_v44  ;;  %v626_v50 = vpack.c.bf16 %v580_v12, %v578_v63  ;;  %v872_v63 = vrot.slane %v4310_v14, %v3707_v34  ;;  %3334 = vmatpush3.bf16.msra.mxu0 %v3333_v11 }
 0x125   :  { %v350_v57 = vadd.f32 %v349_v2, %v4081_v18  ;;  %v351_v55 = vpop.f32.mrb[37].mxu0  ;;  %v627_v9 = vpack.c.bf16 %v581_v6, %v579_v10  ;;  %v1161_v6 = vrot.slane %v4310_v14, %v1160_v8  ;;  %v1434_v2 = vsub.s32 6, %v3684_v27  ;;  %v707_v8 = vld [vmem:[%s5587_s6] sm:$0x3] }
 0x126   :  { %v352_v21 = vadd.f32 %v351_v55, %v4084_v19  ;;  %v353_v44 = vpop.f32.mrb[38].mxu0  ;;  %v1431_v55 = vrot.slane %v4310_v14, %v4305_v33  ;;  %v4342_v62 = vpop.permute.xlu0 %1349  ;;  %v4345_v11 = vrot.slane %v707_v8, %v3707_v34 }
 0x127   :  { %v518_v12 = vmul.f32 0.01, %v350_v57  ;;  %v354_v13 = vadd.f32 %v353_v44, %v4081_v18  ;;  %v355_v22 = vpop.f32.mrb[39].mxu0  ;;  %2120 = vmatprep.mubr.bf16.mxu1 %v627_v9  ;;  %3393 = vset.pattern.permute.xlu1 %v5698_v4  ;;  %v4322_v60 = vpop.permute.xlu1 %1623  ;;  %vm454_vm5 = vcmp.gt.f32.partialorder %v350_v57, 0.0  ;;  %v4333_v9 = vrot.slane %v1157_v53, %v4077_v15  ;;  %5718 = vst [vmem:[#allocation53_spill] sm:$0xff] %v4342_v62 }
 0x128   :  { %5717 = vst [vmem:[#allocation52_spill] sm:$0xff] %v4322_v60  ;;  %v519_v10 = vmul.f32 0.01, %v352_v21  ;;  %v356_v40 = vadd.f32 %v355_v22, %v4084_v19  ;;  %2121 = vmatmul.mubr.bf16.gmra.mrb[32].mxu1 %v626_v50  ;;  %1667 = vperm.xlu1 %3393, %v3978_v39   ;;  %vm455_vm6 = vcmp.gt.f32.partialorder %v352_v21, 0.0  ;;  %v4336_v50 = vrot.slane %v1161_v6, %v4077_v15 }
 0x129   :  { %vm456_vm7 = vcmp.gt.f32.partialorder %v354_v13, 0.0  ;;  %v520_v7 = vmul.f32 0.01, %v354_v13  ;;  %v4339_v39 = vrot.slane %v872_v63, %v3707_v34  ;;  %v582_v22 = vsel %vm454_vm5, %v350_v57, %v518_v12 }
 0x12a   :  { %vm457_vm8 = vcmp.gt.f32.partialorder %v356_v40, 0.0  ;;  %v521_v44 = vmul.f32 0.01, %v356_v40  ;;  %v583_v53 = vsel %vm455_vm6, %v352_v21, %v519_v10  ;;  %v1435_v34 = vrot.slane %v4310_v14, %v1434_v2 }
 0x12b   :  { %v584_v60 = vsel %vm456_vm7, %v354_v13, %v520_v7  ;;  %v1200_v7 = vmul.f32 %v4333_v9, %v4030_v56  ;;  %v4357_v21 = vrot.slane %v707_v8, %v4077_v15  ;;  %v4380_v48 = vrot.slane %v1431_v55, %v4305_v33 }
 0x12c   :  { %v359_v17 = vpop.f32.mrb[40].mxu0  ;;  %3394 = vset.pattern.permute.xlu1 %v5693_v61  ;;  %v585_v29 = vsel %vm457_vm8, %v356_v40, %v521_v44  ;;  %v628_v3 = vpack.c.bf16 %v584_v60, %v582_v22  ;;  %v781_v6 = vpop.permute.xlu1 %780 }
 0x12d   :  { %v360_v58 = vadd.f32 %v359_v17, %v4081_v18  ;;  %v361_v63 = vpop.f32.mrb[41].mxu0  ;;  %830 = vperm.xlu1 %3394, %v3935_v25   ;;  %v629_v57 = vpack.c.bf16 %v585_v29, %v583_v53  ;;  %v915_v12 = vmul.f32 %v4339_v39, %v781_v6  ;;  %v916_v13 = vmul.f32 %v3717_v37, %v781_v6  ;;  %v4366_v6 = vpop.permute.xlu0 %1361 }
 0x12e   :  { %5719 = vst [vmem:[#allocation54_spill] sm:$0xff] %v4357_v21  ;;  %v362_v60 = vadd.f32 %v361_v63, %v4084_v19  ;;  %v363_v10 = vpop.f32.mrb[42].mxu0  ;;  %v1201_v17 = vmul.f32 %v4336_v50, %v4030_v56 }
 0x12f   :  { %v522_v40 = vmul.f32 0.01, %v360_v58  ;;  %v364_v29 = vadd.f32 %v363_v10, %v4081_v18  ;;  %v365_v44 = vpop.f32.mrb[43].mxu0  ;;  %2130 = vmatprep.mubr.bf16.mxu1 %v629_v57  ;;  %v990_v22 = vadd.f32 %v4345_v11, %v915_v12  ;;  %vm458_vm9 = vcmp.gt.f32.partialorder %v360_v58, 0.0 }
 0x130   :  { %v523_v2 = vmul.f32 0.01, %v362_v60  ;;  %v366_v53 = vadd.f32 %v365_v44, %v4084_v19  ;;  %2131 = vmatmul.mubr.bf16.gmra.mrb[36].mxu1 %v628_v3  ;;  %v991_v15 = vadd.f32 %v4357_v21, %v916_v13  ;;  %v786_v8 = vpop.permute.xlu1 %785  ;;  %vm459_vm10 = vcmp.gt.f32.partialorder %v362_v60, 0.0 }
 0x131   :  { %vm460_vm11 = vcmp.gt.f32.partialorder %v364_v29, 0.0  ;;  %v524_v56 = vmul.f32 0.01, %v364_v29  ;;  %3396 = vset.pattern.permute.xlu1 %v5691_v5  ;;  %v917_v63 = vmul.f32 %v4339_v39, %v786_v8  ;;  %v4371_v57 = vsub.s32 3, %v3684_v27  ;;  %v4377_v36 = vpop.permute.xlu0 %1373 }
 0x132   :  { %vm461_vm12 = vcmp.gt.f32.partialorder %v366_v53, 0.0  ;;  %v525_v12 = vmul.f32 0.01, %v366_v53  ;;  %1123 = vperm.xlu1 %3396, %v3935_v25   ;;  %v918_v3 = vmul.f32 %v3717_v37, %v786_v8  ;;  %v586_v13 = vsel %vm458_vm9, %v360_v58, %v522_v40 }
 0x133   :  { %v588_v10 = vsel %vm460_vm11, %v364_v29, %v524_v56  ;;  %v1264_v44 = vadd.f32 %v1200_v7, %v990_v22  ;;  %v1265_v62 = vadd.f32 %v1201_v17, %v991_v15  ;;  %v587_v31 = vsel %vm459_vm10, %v362_v60, %v523_v2  ;;  %v3492_v29 = vld [vmem:[%s5580_s1 + $0xc8] sm:$0xff] }
 0x134   :  { %v369_v49 = vpop.f32.mrb[44].mxu0  ;;  %v589_v47 = vsel %vm461_vm12, %v366_v53, %v525_v12  ;;  %v630_v51 = vpack.c.bf16 %v588_v10, %v586_v13  ;;  %v992_v54 = vadd.f32 %v4345_v11, %v917_v63  ;;  %v993_v58 = vadd.f32 %v4357_v21, %v918_v3 }
 0x135   :  { %v370_v25 = vadd.f32 %v369_v49, %v4081_v18  ;;  %v371_v28 = vpop.f32.mrb[45].mxu0  ;;  %v631_v8 = vpack.c.bf16 %v589_v47, %v587_v31  ;;  %v1088_v40 = vpop.permute.xlu1 %1087  ;;  %v1708_v7 = vsub.s32 7, %v3684_v27  ;;  %v4392_v49 = vrot.slane %v1435_v34, %v4305_v33  ;;  %v2455_v33 = vld [vmem:[%s5585_s7 + $0xf0] sm:$0xff]  ;;  %v2456_v34 = vld [vmem:[%s5585_s7 + $0xf8] sm:$0xff] }
 0x136   :  { %v372_v60 = vadd.f32 %v371_v28, %v4084_v19  ;;  %v373_v17 = vpop.f32.mrb[46].mxu0  ;;  %1127 = vperm.xlu1 %3396, %v3492_v29   ;;  %v1202_v55 = vmul.f32 %v4333_v9, %v1088_v40  ;;  %v1203_v22 = vmul.f32 %v4336_v50, %v1088_v40  ;;  %v1705_v47 = vrot.slane %v4310_v14, %v4371_v57  ;;  %v4408_v13 = vpop.permute.xlu0 %1385 }
 0x137   :  { %v526_v31 = vmul.f32 0.01, %v370_v25  ;;  %v374_v27 = vadd.f32 %v373_v17, %v4081_v18  ;;  %v375_v28 = vpop.f32.mrb[47].mxu0  ;;  %2140 = vmatprep.mubr.bf16.mxu1 %v631_v8  ;;  %vm462_vm13 = vcmp.gt.f32.partialorder %v370_v25, 0.0  ;;  %v1709_v12 = vrot.slane %v4310_v14, %v1708_v7  ;;  %v2439_v14 = vld [vmem:[%s5585_s7 + $0x70] sm:$0xff]  ;;  %v2440_v7 = vld [vmem:[%s5585_s7 + $0x78] sm:$0xff] }
 0x138   :  { %v527_v2 = vmul.f32 0.01, %v372_v60  ;;  %v376_v53 = vadd.f32 %v375_v28, %v4084_v19  ;;  %2141 = vmatmul.mubr.bf16.gmra.mrb[40].mxu1 %v630_v51  ;;  %v1266_v15 = vadd.f32 %v1202_v55, %v992_v54  ;;  %vm463_vm14 = vcmp.gt.f32.partialorder %v372_v60, 0.0 }
 0x139   :  { %vm464_vm15 = vcmp.gt.f32.partialorder %v374_v27, 0.0  ;;  %v528_v56 = vmul.f32 0.01, %v374_v27  ;;  %v1267_v63 = vadd.f32 %v1203_v22, %v993_v58  ;;  %v1476_v54 = vmul.f32 %v4380_v48, %v4366_v6 }
 0x13a   :  { %vm465_vm0 = vcmp.gt.f32.partialorder %v376_v53, 0.0  ;;  %v529_v3 = vmul.f32 0.01, %v376_v53  ;;  %3397 = vset.pattern.permute.xlu1 %v5695_v20  ;;  %v1358_v51 = vpop.permute.xlu1 %1357  ;;  %v590_v10 = vsel %vm462_vm13, %v370_v25, %v526_v31  ;;  %v591_v55 = vsel %vm463_vm14, %v372_v60, %v527_v2 }
 0x13b   :  { %1401 = vperm.xlu1 %3397, %v3492_v29   ;;  %v592_v8 = vsel %vm464_vm15, %v374_v27, %v528_v56  ;;  %v1474_v58 = vmul.f32 %v4380_v48, %v1358_v51  ;;  %v1475_v40 = vmul.f32 %v4392_v49, %v1358_v51  ;;  %v3335_v28 = vpack.c.bf16 %v2456_v34, %v2455_v33 }
 0x13c   :  { %v379_v17 = vpop.f32.mrb[48].mxu0  ;;  %v593_v22 = vsel %vm465_vm0, %v376_v53, %v529_v3  ;;  %v632_v29 = vpack.c.bf16 %v592_v8, %v590_v10  ;;  %v4422_v32 = vrot.slane %v1705_v47, %v4371_v57  ;;  %v1477_v30 = vmul.f32 %v4392_v49, %v4366_v6  ;;  %v3493_v6 = vld [vmem:[%s5580_s1 + $0xc0] sm:$0xff] }
 0x13d   :  { %v380_v25 = vadd.f32 %v379_v17, %v4081_v18  ;;  %v381_v31 = vpop.f32.mrb[49].mxu0  ;;  %v633_v27 = vpack.c.bf16 %v593_v22, %v591_v55  ;;  %v1538_v56 = vadd.f32 %v1474_v58, %v1264_v44  ;;  %v1539_v51 = vadd.f32 %v1475_v40, %v1265_v62  ;;  %3336 = vmatprep.subr.bf16.mxu0 %v3335_v28 }
 0x13e   :  { %v382_v45 = vadd.f32 %v381_v31, %v4084_v19  ;;  %v383_v43 = vpop.f32.mrb[50].mxu0  ;;  %v3337_v60 = vpack.c.bf16 %v2440_v7, %v2439_v14  ;;  %v4428_v2 = vrot.slane %v1709_v12, %v4371_v57  ;;  %v4437_v12 = vpop.permute.xlu0 %1397  ;;  %v1540_v10 = vadd.f32 %v1476_v54, %v1266_v15 }
 0x13f   :  { %vm466_vm1 = vcmp.gt.f32.partialorder %v380_v25, 0.0  ;;  %v530_v53 = vmul.f32 0.01, %v380_v25  ;;  %v384_v33 = vadd.f32 %v383_v43, %v4081_v18  ;;  %v385_v44 = vpop.f32.mrb[51].mxu0  ;;  %2150 = vmatprep.mubr.bf16.mxu1 %v633_v27  ;;  %3398 = vset.pattern.permute.xlu1 %v5698_v4  ;;  %v1632_v62 = vpop.permute.xlu1 %1631  ;;  %v1541_v40 = vadd.f32 %v1477_v30, %v1267_v63 }
 0x140   :  { %vm467_vm2 = vcmp.gt.f32.partialorder %v382_v45, 0.0  ;;  %v531_v47 = vmul.f32 0.01, %v382_v45  ;;  %v386_v34 = vadd.f32 %v385_v44, %v4084_v19  ;;  %2151 = vmatmul.mubr.bf16.gmra.mrb[44].mxu1 %v632_v29  ;;  %1671 = vperm.xlu1 %3398, %v3493_v6   ;;  %v1748_v57 = vmul.f32 %v4422_v32, %v1632_v62 }
 0x141   :  { %vm468_vm3 = vcmp.gt.f32.partialorder %v384_v33, 0.0  ;;  %v532_v43 = vmul.f32 0.01, %v384_v33  ;;  %v1749_v3 = vmul.f32 %v4428_v2, %v1632_v62  ;;  %3338 = vmatpush3.bf16.msra.mxu0 %v3337_v60  ;;  %v594_v58 = vsel %vm466_vm1, %v380_v25, %v530_v53 }
 0x142   :  { %vm469_vm4 = vcmp.gt.f32.partialorder %v386_v34, 0.0  ;;  %v533_v8 = vmul.f32 0.01, %v386_v34  ;;  %v595_v14 = vsel %vm467_vm2, %v382_v45, %v531_v47  ;;  %v4442_v55 = vadd.f32 %v1748_v57, %v1538_v56  ;;  %v4453_v45 = vld [vmem:[%s5580_s1 + $0xd0] sm:$0xff] }
 0x143   :  { %v596_v7 = vsel %vm468_vm3, %v384_v33, %v532_v43  ;;  %v1636_v17 = vpop.permute.xlu1 %1635  ;;  %v4444_v22 = vadd.f32 %v1749_v3, %v1539_v51  ;;  %v4457_v51 = vpop.permute.xlu0 %1409  ;;  %v919_v47 = vmul.f32 %v4339_v39, %v4223_v24  ;;  %v920_v43 = vmul.f32 %v3717_v37, %v4223_v24 }
 0x144   :  { %5720 = vst [vmem:[#allocation55_spill] sm:$0xff] %v4442_v55  ;;  %v389_v29 = vpop.f32.mrb[52].mxu0  ;;  %3399 = vset.pattern.permute.xlu1 %v5693_v61  ;;  %v597_v28 = vsel %vm469_vm4, %v386_v34, %v533_v8  ;;  %v634_v31 = vpack.c.bf16 %v596_v7, %v594_v58  ;;  %v1750_v15 = vmul.f32 %v4422_v32, %v1636_v17  ;;  %5722 = vst [vmem:[#allocation57_spill] sm:$0xff] %v4457_v51 }
 0x145   :  { %5721 = vst [vmem:[#allocation56_spill] sm:$0xff] %v4444_v22  ;;  %v1751_v54 = vmul.f32 %v4428_v2, %v1636_v17  ;;  %v390_v25 = vadd.f32 %v389_v29, %v4081_v18  ;;  %v391_v30 = vpop.f32.mrb[53].mxu0  ;;  %840 = vperm.xlu1 %3399, %v4453_v45   ;;  %v635_v63 = vpack.c.bf16 %v597_v28, %v595_v14 }
 0x146   :  { %v392_v27 = vadd.f32 %v391_v30, %v4084_v19  ;;  %v393_v56 = vpop.f32.mrb[54].mxu0  ;;  %v4459_v60 = vadd.f32 %v1750_v15, %v1540_v10  ;;  %v4472_v10 = vld [vmem:[%s5580_s1 + $0xd8] sm:$0xff]  ;;  %v994_v14 = vadd.f32 %v4345_v11, %v919_v47 }
 0x147   :  { %v4461_v53 = vadd.f32 %v1751_v54, %v1541_v40  ;;  %v534_v33 = vmul.f32 0.01, %v390_v25  ;;  %v394_v44 = vadd.f32 %v393_v56, %v4081_v18  ;;  %v395_v62 = vpop.f32.mrb[55].mxu0  ;;  %2160 = vmatprep.mubr.bf16.mxu1 %v635_v63  ;;  %vm470_vm5 = vcmp.gt.f32.partialorder %v390_v25, 0.0  ;;  %v1096_v28 = vpop.permute.xlu0 %1095 }
 0x148   :  { %5723 = vst [vmem:[#allocation58_spill] sm:$0xff] %v4459_v60  ;;  %v535_v34 = vmul.f32 0.01, %v392_v27  ;;  %v396_v6 = vadd.f32 %v395_v62, %v4084_v19  ;;  %2161 = vmatmul.mubr.bf16.gmra.mrb[48].mxu1 %v634_v31  ;;  %v796_v57 = vpop.permute.xlu1 %795  ;;  %vm471_vm6 = vcmp.gt.f32.partialorder %v392_v27, 0.0  ;;  %v995_v31 = vadd.f32 %v4357_v21, %v920_v43 }
 0x149   :  { %5724 = vst [vmem:[#allocation59_spill] sm:$0xff] %v4461_v53  ;;  %vm472_vm7 = vcmp.gt.f32.partialorder %v394_v44, 0.0  ;;  %v536_v3 = vmul.f32 0.01, %v394_v44  ;;  %845 = vperm.xlu1 %3399, %v4472_v10   ;;  %v598_v58 = vsel %vm470_vm5, %v390_v25, %v534_v33  ;;  %v921_v63 = vmul.f32 %v4339_v39, %v796_v57 }
 0x14a   :  { %vm473_vm8 = vcmp.gt.f32.partialorder %v396_v6, 0.0  ;;  %v537_v8 = vmul.f32 0.01, %v396_v6  ;;  %v599_v17 = vsel %vm471_vm6, %v392_v27, %v535_v34  ;;  %v922_v27 = vmul.f32 %v3717_v37, %v796_v57 }
 0x14b   :  { %v600_v40 = vsel %vm472_vm7, %v394_v44, %v536_v3  ;;  %v1206_v43 = vmul.f32 %v4333_v9, %v1096_v28  ;;  %v1207_v3 = vmul.f32 %v4336_v50, %v1096_v28 }
 0x14c   :  { %v399_v7 = vpop.f32.mrb[56].mxu0  ;;  %v601_v29 = vsel %vm473_vm8, %v396_v6, %v537_v8  ;;  %v636_v24 = vpack.c.bf16 %v600_v40, %v598_v58 }
 0x14d   :  { %v400_v15 = vadd.f32 %v399_v7, %v4081_v18  ;;  %v401_v54 = vpop.f32.mrb[57].mxu0  ;;  %3400 = vset.pattern.permute.xlu1 %v5691_v5  ;;  %v637_v30 = vpack.c.bf16 %v601_v29, %v599_v17  ;;  %v1092_v56 = vpop.permute.xlu1 %1091  ;;  %v996_v29 = vadd.f32 %v4345_v11, %v921_v63 }
 0x14e   :  { %v402_v25 = vadd.f32 %v401_v54, %v4084_v19  ;;  %v403_v33 = vpop.f32.mrb[58].mxu0  ;;  %1135 = vperm.xlu1 %3400, %v4472_v10   ;;  %v1204_v44 = vmul.f32 %v4333_v9, %v1092_v56  ;;  %v1205_v62 = vmul.f32 %v4336_v50, %v1092_v56  ;;  %v997_v54 = vadd.f32 %v4357_v21, %v922_v27 }
 0x14f   :  { %v538_v47 = vmul.f32 0.01, %v400_v15  ;;  %v404_v34 = vadd.f32 %v403_v33, %v4081_v18  ;;  %v405_v6 = vpop.f32.mrb[59].mxu0  ;;  %2170 = vmatprep.mubr.bf16.mxu1 %v637_v30  ;;  %vm474_vm9 = vcmp.gt.f32.partialorder %v400_v15, 0.0 }
 0x150   :  { %vm475_vm10 = vcmp.gt.f32.partialorder %v402_v25, 0.0  ;;  %v539_v8 = vmul.f32 0.01, %v402_v25  ;;  %v406_v58 = vadd.f32 %v405_v6, %v4084_v19  ;;  %2171 = vmatmul.mubr.bf16.gmra.mrb[52].mxu1 %v636_v24  ;;  %v1268_v40 = vadd.f32 %v1204_v44, %v994_v14 }
 0x151   :  { %vm476_vm11 = vcmp.gt.f32.partialorder %v404_v34, 0.0  ;;  %v540_v57 = vmul.f32 0.01, %v404_v34  ;;  %v1269_v7 = vadd.f32 %v1205_v62, %v995_v31  ;;  %v602_v28 = vsel %vm474_vm9, %v400_v15, %v538_v47 }
 0x152   :  { %vm477_vm12 = vcmp.gt.f32.partialorder %v406_v58, 0.0  ;;  %v541_v17 = vmul.f32 0.01, %v406_v58  ;;  %3401 = vset.pattern.permute.xlu1 %v5695_v20  ;;  %v1366_v30 = vpop.permute.xlu1 %1365  ;;  %v1752_v14 = vmul.f32 %v4422_v32, %v4108_v0  ;;  %v603_v44 = vsel %vm475_vm10, %v402_v25, %v539_v8 }
 0x153   :  { %1405 = vperm.xlu1 %3401, %v4453_v45   ;;  %v604_v56 = vsel %vm476_vm11, %v404_v34, %v540_v57  ;;  %v1478_v24 = vmul.f32 %v4380_v48, %v1366_v30  ;;  %v1479_v33 = vmul.f32 %v4392_v49, %v1366_v30  ;;  %v1753_v15 = vmul.f32 %v4428_v2, %v4108_v0 }
 0x154   :  { %v409_v31 = vpop.f32.mrb[60].mxu0  ;;  %v605_v62 = vsel %vm477_vm12, %v406_v58, %v541_v17  ;;  %v638_v63 = vpack.c.bf16 %v604_v56, %v602_v28  ;;  %v1270_v30 = vadd.f32 %v1206_v43, %v996_v29  ;;  %v1271_v55 = vadd.f32 %v1207_v3, %v997_v54 }
 0x155   :  { %v410_v27 = vadd.f32 %v409_v31, %v4081_v18  ;;  %v411_v6 = vpop.f32.mrb[61].mxu0  ;;  %v639_v53 = vpack.c.bf16 %v605_v62, %v603_v44  ;;  %v1542_v60 = vadd.f32 %v1478_v24, %v1268_v40  ;;  %v1543_v22 = vadd.f32 %v1479_v33, %v1269_v7 }
 0x156   :  { %v412_v47 = vadd.f32 %v411_v6, %v4084_v19  ;;  %v413_v34 = vpop.f32.mrb[62].mxu0  ;;  %v1370_v57 = vpop.permute.xlu1 %1369  ;;  %v926_v6 = vmul.f32 %v3717_v37, %v4244_v23 }
 0x157   :  { %vm478_vm13 = vcmp.gt.f32.partialorder %v410_v27, 0.0  ;;  %v542_v51 = vmul.f32 0.01, %v410_v27  ;;  %v414_v25 = vadd.f32 %v413_v34, %v4081_v18  ;;  %v415_v8 = vpop.f32.mrb[63].mxu0  ;;  %2180 = vmatprep.mubr.bf16.mxu1 %v639_v53  ;;  %3403 = vset.pattern.permute.xlu1 %v5698_v4  ;;  %v1480_v58 = vmul.f32 %v4380_v48, %v1370_v57 }
 0x158   :  { %vm479_vm14 = vcmp.gt.f32.partialorder %v412_v47, 0.0  ;;  %v543_v40 = vmul.f32 0.01, %v412_v47  ;;  %v416_v0 = vadd.f32 %v415_v8, %v4084_v19  ;;  %2181 = vmatmul.mubr.bf16.gmra.mrb[56].mxu1 %v638_v63  ;;  %1679 = vperm.xlu1 %3403, %v4453_v45   ;;  %v1481_v43 = vmul.f32 %v4392_v49, %v1370_v57 }
 0x159   :  { %vm480_vm15 = vcmp.gt.f32.partialorder %v414_v25, 0.0  ;;  %v544_v3 = vmul.f32 0.01, %v414_v25  ;;  %v4509_v7 = vadd.f32 %v1752_v14, %v1542_v60  ;;  %v606_v53 = vsel %vm478_vm13, %v410_v27, %v542_v51 }
 0x15a   :  { %vm481_vm0 = vcmp.gt.f32.partialorder %v416_v0, 0.0  ;;  %v545_v18 = vmul.f32 0.01, %v416_v0  ;;  %v4512_v17 = vadd.f32 %v1753_v15, %v1543_v22  ;;  %v607_v29 = vsel %vm479_vm14, %v412_v47, %v543_v40  ;;  %v3497_v47 = vld [vmem:[%s5580_s1 + $0xe0] sm:$0xff] }
 0x15b   :  { %5725 = vst [vmem:[#allocation60_spill] sm:$0xff] %v4509_v7  ;;  %v608_v54 = vsel %vm480_vm15, %v414_v25, %v544_v3  ;;  %v1644_v28 = vpop.permute.xlu1 %1643  ;;  %v1544_v56 = vadd.f32 %v1480_v58, %v1270_v30  ;;  %v1545_v19 = vadd.f32 %v1481_v43, %v1271_v55  ;;  %v3496_v55 = vld [vmem:[%s5580_s1 + $0xe8] sm:$0xff]  ;;  %v925_v27 = vmul.f32 %v4339_v39, %v4244_v23  ;;  %v5763_v7 = vld [vmem:[#allocation15_spill] sm:$0xff] }
 0x15c   :  { %5726 = vst [vmem:[#allocation61_spill] sm:$0xff] %v4512_v17  ;;  %1683 = vperm.xlu1 %3403, %v4472_v10   ;;  %v609_v45 = vsel %vm481_vm0, %v416_v0, %v545_v18  ;;  %v640_v24 = vpack.c.bf16 %v608_v54, %v606_v53  ;;  %v1754_v33 = vmul.f32 %v4422_v32, %v1644_v28 }
 0x15d   :  { %v1755_v60 = vmul.f32 %v4428_v2, %v1644_v28  ;;  %v641_v14 = vpack.c.bf16 %v609_v45, %v607_v29  ;;  %v1000_v8 = vadd.f32 %v4345_v11, %v925_v27  ;;  %v1001_v58 = vadd.f32 %v4357_v21, %v926_v6 }
 0x15e   :  { %v4517_v31 = vadd.f32 %v1754_v33, %v1544_v56  ;;  %v1482_v18 = vmul.f32 %v4380_v48, %v4377_v36  ;;  %v1483_v53 = vmul.f32 %v4392_v49, %v4377_v36  ;;  %v1758_v54 = vmul.f32 %v4422_v32, %v4119_v59 }
 0x15f   :  { %v4519_v44 = vadd.f32 %v1755_v60, %v1545_v19  ;;  %2190 = vmatprep.mubr.bf16.mxu1 %v641_v14  ;;  %v1759_v28 = vmul.f32 %v4428_v2, %v4119_v59 }
 0x160   :  { %5727 = vst [vmem:[#allocation62_spill] sm:$0xff] %v4517_v31  ;;  %2191 = vmatmul.mubr.bf16.gmra.mrb[60].mxu1 %v640_v24  ;;  %3404 = vset.pattern.permute.xlu1 %v5693_v61  ;;  %v801_v22 = vpop.permute.xlu1 %800  ;;  %v5761_v31 = vld [vmem:[#allocation13_spill] sm:$0xff] }
 0x161   :  { %5728 = vst [vmem:[#allocation63_spill] sm:$0xff] %v4519_v44  ;;  %855 = vperm.xlu1 %3404, %v3496_v55   ;;  %v923_v51 = vmul.f32 %v4339_v39, %v801_v22  ;;  %v924_v10 = vmul.f32 %v3717_v37, %v801_v22  ;;  %v1180_v17 = vmul.f32 %v4333_v9, %v5761_v31 }
 0x163   :  { %v998_v62 = vadd.f32 %v4345_v11, %v923_v51  ;;  %v999_v63 = vadd.f32 %v4357_v21, %v924_v10 }
 0x165   :  { %3405 = vset.pattern.permute.xlu1 %v5691_v5  ;;  %v1100_v15 = vpop.permute.xlu1 %1099 }
 0x166   :  { %1139 = vperm.xlu1 %3405, %v3497_v47   ;;  %v1208_v34 = vmul.f32 %v4333_v9, %v1100_v15  ;;  %v1209_v57 = vmul.f32 %v4336_v50, %v1100_v15 }
 0x168   :  { %v1272_v30 = vadd.f32 %v1208_v34, %v998_v62  ;;  %v1273_v25 = vadd.f32 %v1209_v57, %v999_v63  ;;  %v1108_v34 = vpop.permute.xlu0 %1107 }
 0x169   :  { %v1104_v40 = vpop.permute.xlu1 %1103 }
 0x16a   :  { %3407 = vset.pattern.permute.xlu1 %v5695_v20  ;;  %v1210_v23 = vmul.f32 %v4333_v9, %v1104_v40  ;;  %v1211_v0 = vmul.f32 %v4336_v50, %v1104_v40  ;;  %v1546_v33 = vadd.f32 %v1482_v18, %v1272_v30  ;;  %v1547_v60 = vadd.f32 %v1483_v53, %v1273_v25 }
 0x16b   :  { %1413 = vperm.xlu1 %3407, %v3497_v47   ;;  %v1213_v40 = vmul.f32 %v4336_v50, %v1108_v34 }
 0x16c   :  { %v1274_v43 = vadd.f32 %v1210_v23, %v1000_v8  ;;  %v1275_v3 = vadd.f32 %v1211_v0, %v1001_v58  ;;  %v1212_v58 = vmul.f32 %v4333_v9, %v1108_v34 }
 0x16e   :  { %v1378_v29 = vpop.permute.xlu1 %1377 }
 0x16f   :  { %1417 = vperm.xlu1 %3407, %v3496_v55   ;;  %v1484_v56 = vmul.f32 %v4380_v48, %v1378_v29  ;;  %v1485_v19 = vmul.f32 %v4392_v49, %v1378_v29 }
 0x171   :  { %v1548_v45 = vadd.f32 %v1484_v56, %v1274_v43  ;;  %v1549_v24 = vadd.f32 %v1485_v19, %v1275_v3  ;;  %v1488_v19 = vmul.f32 %v4380_v48, %v4408_v13 }
 0x173   :  { %3409 = vset.pattern.permute.xlu1 %v5698_v4  ;;  %v1648_v14 = vpop.permute.xlu1 %1647  ;;  %v4555_v36 = vadd.f32 %v1758_v54, %v1548_v45  ;;  %v4557_v22 = vadd.f32 %v1759_v28, %v1549_v24  ;;  %v1489_v45 = vmul.f32 %v4392_v49, %v4408_v13  ;;  %v892_v13 = vmul.f32 %v3717_v37, %v3973_v38 }
 0x174   :  { %1691 = vperm.xlu1 %3409, %v3496_v55   ;;  %v1756_v51 = vmul.f32 %v4422_v32, %v1648_v14  ;;  %v1757_v59 = vmul.f32 %v4428_v2, %v1648_v14 }
 0x175   :  { %5729 = vst [vmem:[#allocation64_spill] sm:$0xff] %v4555_v36  ;;  %5730 = vst [vmem:[#allocation65_spill] sm:$0xff] %v4557_v22  ;;  %v5754_v36 = vld [vmem:[#allocation35_spill] sm:$0xff] }
 0x176   :  { %v4561_v10 = vadd.f32 %v1756_v51, %v1546_v33  ;;  %v4563_v62 = vadd.f32 %v1757_v59, %v1547_v60 }
 0x178   :  { %5731 = vst [vmem:[#allocation66_spill] sm:$0xff] %v4561_v10  ;;  %5732 = vst [vmem:[#allocation67_spill] sm:$0xff] %v4563_v62  ;;  %v811_v63 = vpop.permute.xlu1 %810  ;;  %3410 = vset.pattern.permute.xlu1 %v5693_v61  ;;  %v5759_v10 = vld [vmem:[#allocation26_spill] sm:$0xff] }
 0x179   :  { %860 = vperm.xlu1 %3410, %v4270_v1   ;;  %v927_v6 = vmul.f32 %v4339_v39, %v811_v63  ;;  %v928_v15 = vmul.f32 %v3717_v37, %v811_v63  ;;  %v4780_v44 = vmul.f32 %v4422_v32, %v5759_v10 }
 0x17b   :  { %v1002_v30 = vadd.f32 %v4345_v11, %v927_v6  ;;  %v1003_v25 = vadd.f32 %v4357_v21, %v928_v15  ;;  %v4610_v15 = vmul.f32 %v4380_v48, %v3970_v35 }
 0x17c   :  { %v816_v27 = vpop.permute.xlu1 %815 }
 0x17d   :  { %v929_v55 = vmul.f32 %v4339_v39, %v816_v27  ;;  %v930_v47 = vmul.f32 %v3717_v37, %v816_v27  ;;  %3411 = vset.pattern.permute.xlu1 %v5691_v5  ;;  %v1276_v3 = vadd.f32 %v1212_v58, %v1002_v30  ;;  %v1277_v18 = vadd.f32 %v1213_v40, %v1003_v25 }
 0x17e   :  { %1147 = vperm.xlu1 %3411, %v4270_v1   ;;  %v894_v27 = vmul.f32 %v3717_v37, %v3983_v42  ;;  %v967_v30 = vadd.f32 %v4357_v21, %v892_v13  ;;  %v1178_v58 = vmul.f32 %v4333_v9, %v3986_v16  ;;  %v1452_v40 = vmul.f32 %v4380_v48, %v3981_v41 }
 0x17f   :  { %v1004_v57 = vadd.f32 %v4345_v11, %v929_v55  ;;  %v1005_v61 = vadd.f32 %v4357_v21, %v930_v47  ;;  %v4614_v55 = vmul.f32 %v4392_v49, %v3970_v35  ;;  %v4631_v35 = vmul.f32 %v4336_v50, %v3940_v26 }
 0x181   :  { %v1112_v8 = vpop.permute.xlu1 %1111 }
 0x182   :  { %v1214_v23 = vmul.f32 %v4333_v9, %v1112_v8  ;;  %v1215_v5 = vmul.f32 %v4336_v50, %v1112_v8  ;;  %1151 = vperm.xlu1 %3411, %v4257_v52   ;;  %v969_v8 = vadd.f32 %v4357_v21, %v894_v27 }
 0x184   :  { %v1278_v0 = vadd.f32 %v1214_v23, %v1004_v57  ;;  %v1279_v43 = vadd.f32 %v1215_v5, %v1005_v61  ;;  %v1177_v57 = vmul.f32 %v4336_v50, %v3995_v46  ;;  %v4627_v61 = vmul.f32 %v4333_v9, %v3940_v26  ;;  %v5737_v26 = vld [vmem:[#allocation3_spill] sm:$0xff] }
 0x185   :  { %v1453_v23 = vmul.f32 %v4392_v49, %v3981_v41  ;;  %v4646_v5 = vmul.f32 %v4333_v9, %v5737_v26 }
 0x186   :  { %v1382_v53 = vpop.permute.xlu1 %1381  ;;  %3413 = vset.pattern.permute.xlu1 %v5695_v20  ;;  %v1552_v51 = vadd.f32 %v1488_v19, %v1278_v0  ;;  %v1553_v59 = vadd.f32 %v1489_v45, %v1279_v43  ;;  %v4650_v0 = vmul.f32 %v4336_v50, %v5737_v26  ;;  %v5738_v43 = vld [vmem:[#allocation6_spill] sm:$0xff]  ;;  %v1241_v19 = vadd.f32 %v1177_v57, %v967_v30  ;;  %v5741_v45 = vld [vmem:[#allocation5_spill] sm:$0xff] }
 0x187   :  { %v1486_v29 = vmul.f32 %v4380_v48, %v1382_v53  ;;  %v1487_v54 = vmul.f32 %v4392_v49, %v1382_v53  ;;  %1425 = vperm.xlu1 %3413, %v4257_v52   ;;  %v891_v52 = vmul.f32 %v4339_v39, %v3973_v38  ;;  %v1176_v38 = vmul.f32 %v4333_v9, %v3995_v46 }
 0x188   :  { %v1179_v46 = vmul.f32 %v4336_v50, %v3986_v16  ;;  %v4658_v16 = vmul.f32 %v4392_v49, %v5738_v43 }
 0x189   :  { %v1550_v28 = vadd.f32 %v1486_v29, %v1276_v3  ;;  %v1551_v56 = vadd.f32 %v1487_v54, %v1277_v18  ;;  %v966_v47 = vadd.f32 %v4345_v11, %v891_v52  ;;  %v4654_v3 = vmul.f32 %v4380_v48, %v5738_v43  ;;  %v5739_v18 = vld [vmem:[#allocation7_spill] sm:$0xff]  ;;  %v5740_v29 = vld [vmem:[#allocation4_spill] sm:$0xff] }
 0x18a   :  { %v1450_v53 = vmul.f32 %v4380_v48, %v5739_v18  ;;  %v4664_v54 = vmul.f32 %v4380_v48, %v5740_v29  ;;  %v1243_v52 = vadd.f32 %v1179_v46, %v969_v8  ;;  %5760 = vst [vmem:[#allocation4_spill] sm:$0xff] %v4780_v44 }
 0x18b   :  { %v1656_v24 = vpop.permute.xlu1 %1655  ;;  %3414 = vset.pattern.permute.xlu1 %v5698_v4  ;;  %v893_v4 = vmul.f32 %v4339_v39, %v3983_v42  ;;  %v1240_v41 = vadd.f32 %v1176_v38, %v966_v47  ;;  %v5745_v47 = vld [vmem:[#allocation12_spill] sm:$0xff] }
 0x18c   :  { %v1760_v33 = vmul.f32 %v4422_v32, %v1656_v24  ;;  %v1761_v20 = vmul.f32 %v4428_v2, %v1656_v24  ;;  %1695 = vperm.xlu1 %3414, %v4270_v1   ;;  %v4674_v24 = vmul.f32 %v4422_v32, %v5741_v45  ;;  %v897_v57 = vmul.f32 %v4339_v39, %v5745_v47 }
 0x18d   :  { %v968_v25 = vadd.f32 %v4345_v11, %v893_v4  ;;  %v1514_v30 = vadd.f32 %v1450_v53, %v1240_v41  ;;  %v898_v46 = vmul.f32 %v3717_v37, %v5745_v47  ;;  %v1517_v53 = vadd.f32 %v1453_v23, %v1243_v52  ;;  %v5750_v41 = vld [vmem:[#allocation17_spill] sm:$0xff] }
 0x18e   :  { %v4596_v60 = vadd.f32 %v1760_v33, %v1550_v28  ;;  %v4598_v14 = vadd.f32 %v1761_v20, %v1551_v56  ;;  %v4668_v28 = vmul.f32 %v4392_v49, %v5740_v29  ;;  %v1451_v56 = vmul.f32 %v4392_v49, %v5739_v18  ;;  %v5748_v18 = vld [vmem:[#allocation31_spill] sm:$0xff]  ;;  %v5752_v23 = vld [vmem:[#allocation33_spill] sm:$0xff] }
 0x18f   :  { %v1660_v63 = vpop.permute.xlu1 %1659  ;;  %v4678_v33 = vmul.f32 %v4428_v2, %v5741_v45  ;;  %v1242_v20 = vadd.f32 %v1178_v58, %v968_v25  ;;  %v5746_v25 = vld [vmem:[#allocation8_spill] sm:$0xff]  ;;  %v887_v29 = vmul.f32 %v4339_v39, %v5748_v18  ;;  %v5749_v45 = vld [vmem:[#allocation10_spill] sm:$0xff]  ;;  %v888_v47 = vmul.f32 %v3717_v37, %v5748_v18 }
 0x190   :  { %5733 = vst [vmem:[#allocation68_spill] sm:$0xff] %v4596_v60  ;;  %5734 = vst [vmem:[#allocation69_spill] sm:$0xff] %v4598_v14  ;;  %v1762_v1 = vmul.f32 %v4422_v32, %v1660_v63  ;;  %v1763_v6 = vmul.f32 %v4428_v2, %v1660_v63  ;;  %v5743_v63 = vld [vmem:[#allocation11_spill] sm:$0xff]  ;;  %v1724_v8 = vmul.f32 %v4422_v32, %v5746_v25  ;;  %v5753_v14 = vld [vmem:[#allocation22_spill] sm:$0xff] }
 0x191   :  { %v4686_v4 = vmul.f32 %v4333_v9, %v5743_v63  ;;  %v4690_v27 = vmul.f32 %v4336_v50, %v5743_v63  ;;  %v1725_v58 = vmul.f32 %v4428_v2, %v5746_v25  ;;  %v1515_v43 = vadd.f32 %v1451_v56, %v1241_v19  ;;  %v5751_v19 = vld [vmem:[#allocation19_spill] sm:$0xff] }
 0x192   :  { %v4619_v34 = vadd.f32 %v1762_v1, %v1552_v51  ;;  %v4621_v42 = vadd.f32 %v1763_v6, %v1553_v59  ;;  %v5742_v51 = vld [vmem:[#allocation9_spill] sm:$0xff]  ;;  %v5744_v1 = vld [vmem:[#allocation14_spill] sm:$0xff]  ;;  %v1516_v63 = vadd.f32 %v1452_v40, %v1242_v20  ;;  %v4720_v25 = vmul.f32 %v4428_v2, %v5750_v41 }
 0x193   :  { %v1182_v59 = vmul.f32 %v4333_v9, %v5742_v51  ;;  %v1183_v13 = vmul.f32 %v4336_v50, %v5742_v51  ;;  %v4694_v6 = vmul.f32 %v4333_v9, %v5744_v1  ;;  %v4698_v38 = vmul.f32 %v4336_v50, %v5744_v1 }
 0x194   :  { %5735 = vst [vmem:[#allocation70_spill] sm:$0xff] %v4619_v34  ;;  %5736 = vst [vmem:[#allocation71_spill] sm:$0xff] %v4621_v42  ;;  %v4708_v26 = vpop.permute.xlu1 %825  ;;  %v1726_v51 = vmul.f32 %v4422_v32, %v5749_v45  ;;  %v4716_v1 = vmul.f32 %v4422_v32, %v5750_v41  ;;  %v1727_v56 = vmul.f32 %v4428_v2, %v5749_v45 }
 0x195   :  { %5747 = vst [vmem:[#allocation3_spill] sm:$0xff] %v4708_v26  ;;  %v4728_v42 = vmul.f32 %v4422_v32, %v5751_v19  ;;  %v4732_v40 = vmul.f32 %v4428_v2, %v5751_v19  ;;  %v889_v20 = vmul.f32 %v4339_v39, %v5752_v23  ;;  %v972_v52 = vadd.f32 %v4345_v11, %v897_v57  ;;  %v5764_v26 = vld [vmem:[#allocation18_spill] sm:$0xff] }
 0x196   :  { %v890_v41 = vmul.f32 %v3717_v37, %v5752_v23  ;;  %v973_v18 = vadd.f32 %v4357_v21, %v898_v46  ;;  %v4740_v34 = vadd.f32 %v1724_v8, %v1514_v30  ;;  %v4742_v45 = vadd.f32 %v1725_v58, %v1515_v43  ;;  %v5756_v43 = vld [vmem:[#allocation24_spill] sm:$0xff] }
 0x197   :  { %v4746_v60 = vmul.f32 %v4422_v32, %v5753_v14  ;;  %v4750_v19 = vmul.f32 %v4428_v2, %v5753_v14  ;;  %v962_v22 = vadd.f32 %v4345_v11, %v887_v29  ;;  %v4753_v57 = vadd.f32 %v1726_v51, %v1516_v63  ;;  %v5757_v51 = vld [vmem:[#allocation16_spill] sm:$0xff] }
 0x198   :  { %v963_v23 = vadd.f32 %v4357_v21, %v888_v47  ;;  %v895_v30 = vmul.f32 %v4339_v39, %v5754_v36  ;;  %v896_v8 = vmul.f32 %v3717_v37, %v5754_v36  ;;  %v4762_v46 = vadd.f32 %v1727_v56, %v1517_v53 }
 0x199   :  { %v4760_v58 = vpop.permute.xlu1 %1115  ;;  %v4766_v14 = vmul.f32 %v4422_v32, %v5756_v43  ;;  %v964_v29 = vadd.f32 %v4345_v11, %v889_v20  ;;  %v1456_v63 = vmul.f32 %v4380_v48, %v5757_v51  ;;  %v1246_v47 = vadd.f32 %v1182_v59, %v972_v52 }
 0x19a   :  { %5755 = vst [vmem:[#allocation6_spill] sm:$0xff] %v4760_v58  ;;  %v4773_v62 = vmul.f32 %v4428_v2, %v5756_v43  ;;  %v965_v36 = vadd.f32 %v4357_v21, %v890_v41  ;;  %v1457_v53 = vmul.f32 %v4392_v49, %v5757_v51  ;;  %v1247_v56 = vadd.f32 %v1183_v13, %v973_v18  ;;  %v5762_v51 = vld [vmem:[#allocation20_spill] sm:$0xff] }
 0x19b   :  { %v1236_v20 = vadd.f32 %v4627_v61, %v962_v22  ;;  %v1181_v59 = vmul.f32 %v4336_v50, %v5761_v31  ;;  %v1237_v52 = vadd.f32 %v4631_v35, %v963_v23  ;;  %v970_v41 = vadd.f32 %v4345_v11, %v895_v30 }
 0x19c   :  { %5758 = vst [vmem:[#allocation7_spill] sm:$0xff] %v4773_v62  ;;  %v971_v43 = vadd.f32 %v4357_v21, %v896_v8  ;;  %v899_v13 = vmul.f32 %v4339_v39, %v5762_v51  ;;  %v1238_v18 = vadd.f32 %v4646_v5, %v964_v29  ;;  %v1454_v22 = vmul.f32 %v4380_v48, %v5763_v7  ;;  %v5766_v29 = vld [vmem:[#allocation37_spill] sm:$0xff] }
 0x19d   :  { %v900_v61 = vmul.f32 %v3717_v37, %v5762_v51  ;;  %v1520_v58 = vadd.f32 %v1456_v63, %v1246_v47  ;;  %v1239_v31 = vadd.f32 %v4650_v0, %v965_v36  ;;  %v1730_v35 = vmul.f32 %v4422_v32, %v5764_v26 }
 0x19e   :  { %v1731_v23 = vmul.f32 %v4428_v2, %v5764_v26  ;;  %v4802_v30 = vpop.permute.xlu1 %1389  ;;  %v1521_v8 = vadd.f32 %v1457_v53, %v1247_v56  ;;  %v1455_v5 = vmul.f32 %v4392_v49, %v5763_v7  ;;  %v901_v44 = vmul.f32 %v4339_v39, %v5766_v29  ;;  %v5767_v53 = vld [vmem:[#allocation21_spill] sm:$0xff] }
 0x19f   :  { %5765 = vst [vmem:[#allocation5_spill] sm:$0xff] %v4802_v30  ;;  %v902_v63 = vmul.f32 %v3717_v37, %v5766_v29  ;;  %v1510_v0 = vadd.f32 %v4610_v15, %v1236_v20  ;;  %v1244_v47 = vadd.f32 %v1180_v17, %v970_v41  ;;  %v1245_v36 = vadd.f32 %v1181_v59, %v971_v43 }
 0x1a0   :  { %v974_v51 = vadd.f32 %v4345_v11, %v899_v13  ;;  %v1511_v26 = vadd.f32 %v4614_v55, %v1237_v52  ;;  %v975_v30 = vadd.f32 %v4357_v21, %v900_v61  ;;  %v1184_v56 = vmul.f32 %v4333_v9, %v5767_v53  ;;  %v5768_v55 = vld [vmem:[#allocation23_spill] sm:$0xff] }
 0x1a1   :  { %v1185_v7 = vmul.f32 %v4336_v50, %v5767_v53  ;;  %v1512_v62 = vadd.f32 %v4664_v54, %v1238_v18  ;;  %v4821_v29 = vmul.f32 %v4428_v2, %v5759_v10  ;;  %v1513_v17 = vadd.f32 %v4668_v28, %v1239_v31  ;;  %v5770_v31 = vld [vmem:[#allocation39_spill] sm:$0xff] }
 0x1a2   :  { %v4824_v15 = vadd.f32 %v1730_v35, %v1520_v58  ;;  %v4826_v20 = vadd.f32 %v1731_v23, %v1521_v8  ;;  %v1186_v59 = vmul.f32 %v4333_v9, %v5768_v55  ;;  %v1187_v52 = vmul.f32 %v4336_v50, %v5768_v55  ;;  %v4834_v43 = vpop.permute.xlu1 %1393  ;;  %v5771_v8 = vld [vmem:[#allocation29_spill] sm:$0xff] }
 0x1a3   :  { %v976_v41 = vadd.f32 %v4345_v11, %v901_v44  ;;  %v977_v54 = vadd.f32 %v4357_v21, %v902_v63  ;;  %5769 = vst [vmem:[#allocation9_spill] sm:$0xff] %v4834_v43  ;;  %v1784_v10 = vadd.f32 %v4674_v24, %v1510_v0  ;;  %v4838_v28 = vadd.f32 %v4678_v33, %v1511_v26 }
 0x1a4   :  { %v1518_v58 = vadd.f32 %v1454_v22, %v1244_v47  ;;  %v1519_v13 = vadd.f32 %v1455_v5, %v1245_v36  ;;  %v1248_v18 = vadd.f32 %v1184_v56, %v974_v51  ;;  %v1249_v61 = vadd.f32 %v1185_v7, %v975_v30  ;;  %v5772_v5 = vld [vmem:[#allocation25_spill] sm:$0xff]  ;;  %v5774_v36 = vld [vmem:[#allocation28_spill] sm:$0xff] }
 0x1a5   :  { %v907_v35 = vmul.f32 %v4339_v39, %v5770_v31  ;;  %v4843_v23 = vadd.f32 %v4716_v1, %v1512_v62  ;;  %v908_v44 = vmul.f32 %v3717_v37, %v5770_v31  ;;  %v905_v63 = vmul.f32 %v4339_v39, %v5771_v8  ;;  %v5773_v1 = vld [vmem:[#allocation42_spill] sm:$0xff] }
 0x1a6   :  { %v906_v24 = vmul.f32 %v3717_v37, %v5771_v8  ;;  %v4852_v33 = vadd.f32 %v4720_v25, %v1513_v17  ;;  %v1250_v22 = vadd.f32 %v1186_v59, %v976_v41  ;;  %v1251_v30 = vadd.f32 %v1187_v52, %v977_v54  ;;  %v5775_v52 = vld [vmem:[#allocation30_spill] sm:$0xff] }
 0x1a7   :  { %v1460_v0 = vmul.f32 %v4380_v48, %v5772_v5  ;;  %v1461_v62 = vmul.f32 %v4392_v49, %v5772_v5  ;;  %v913_v47 = vmul.f32 %v4339_v39, %v5773_v1  ;;  %v903_v51 = vmul.f32 %v4339_v39, %v5774_v36  ;;  %v4881_v41 = vpop.permute.xlu1 %1667 }
 0x1a8   :  { %v4863_v26 = vadd.f32 %v4728_v42, %v1518_v58  ;;  %v4866_v25 = vadd.f32 %v4732_v40, %v1519_v13  ;;  %v4869_v53 = vadd.f32 %v4345_v11, %v907_v35  ;;  %v904_v56 = vmul.f32 %v3717_v37, %v5774_v36  ;;  %5776 = vst [vmem:[#allocation11_spill] sm:$0xff] %v4881_v41  ;;  %v5777_v13 = vld [vmem:[#allocation27_spill] sm:$0xff] }
 0x1a9   :  { %v1522_v7 = vadd.f32 %v4654_v3, %v1248_v18  ;;  %v1523_v17 = vadd.f32 %v4658_v16, %v1249_v61  ;;  %v980_v55 = vadd.f32 %v4345_v11, %v905_v63  ;;  %v981_v59 = vadd.f32 %v4357_v21, %v906_v24  ;;  %v5778_v35 = vld [vmem:[#allocation47_spill] sm:$0xff]  ;;  %v5779_v24 = vld [vmem:[#allocation49_spill] sm:$0xff] }
 0x1aa   :  { %v1190_v42 = vmul.f32 %v4333_v9, %v5775_v52  ;;  %v1191_v40 = vmul.f32 %v4336_v50, %v5775_v52  ;;  %v4884_v54 = vadd.f32 %v4357_v21, %v908_v44  ;;  %v914_v3 = vmul.f32 %v3717_v37, %v5773_v1 }
 0x1ab   :  { %v1524_v58 = vadd.f32 %v1460_v0, %v1250_v22  ;;  %v1525_v16 = vadd.f32 %v1461_v62, %v1251_v30  ;;  %v1732_v18 = vmul.f32 %v4422_v32, %v5777_v13  ;;  %v4891_v61 = vadd.f32 %v4345_v11, %v913_v47  ;;  %v5780_v62 = vld [vmem:[#allocation51_spill] sm:$0xff] }
 0x1ac   :  { %v978_v31 = vadd.f32 %v4345_v11, %v903_v51  ;;  %v931_v8 = vmul.f32 %v4339_v39, %v5778_v35  ;;  %v979_v63 = vadd.f32 %v4357_v21, %v904_v56  ;;  %v932_v44 = vmul.f32 %v3717_v37, %v5778_v35 }
 0x1ad   :  { %v937_v22 = vmul.f32 %v4339_v39, %v5779_v24  ;;  %v938_v30 = vmul.f32 %v3717_v37, %v5779_v24  ;;  %v1254_v5 = vadd.f32 %v1190_v42, %v980_v55  ;;  %v1255_v0 = vadd.f32 %v1191_v40, %v981_v59  ;;  %v5781_v59 = vld [vmem:[#allocation32_spill] sm:$0xff]  ;;  %v4923_v40 = vpop.permute.xlu1 %830 }
 0x1ae   :  { %v1464_v1 = vmul.f32 %v4380_v48, %v5780_v62  ;;  %v1465_v47 = vmul.f32 %v4392_v49, %v5780_v62  ;;  %v1733_v36 = vmul.f32 %v4428_v2, %v5777_v13  ;;  %v4910_v51 = vadd.f32 %v4357_v21, %v914_v3  ;;  %5782 = vst [vmem:[#allocation14_spill] sm:$0xff] %v4923_v40 }
 0x1af   :  { %v4913_v56 = vadd.f32 %v4746_v60, %v1524_v58  ;;  %v4916_v52 = vadd.f32 %v4750_v19, %v1525_v16  ;;  %v4919_v55 = vadd.f32 %v4345_v11, %v931_v8  ;;  %v1462_v42 = vmul.f32 %v4380_v48, %v5781_v59 }
 0x1b0   :  { %v4925_v35 = vadd.f32 %v1732_v18, %v1522_v7  ;;  %v1252_v13 = vadd.f32 %v4686_v4, %v978_v31  ;;  %v4929_v3 = vadd.f32 %v4357_v21, %v932_v44  ;;  %v1463_v60 = vmul.f32 %v4392_v49, %v5781_v59  ;;  %v5786_v4 = vld [vmem:[#allocation34_spill] sm:$0xff]  ;;  %v5787_v44 = vld [vmem:[#allocation53_spill] sm:$0xff] }
 0x1b1   :  { %v4934_v19 = vadd.f32 %v4345_v11, %v937_v22  ;;  %v4937_v58 = vadd.f32 %v4357_v21, %v938_v30  ;;  %v1528_v8 = vadd.f32 %v1464_v1, %v1254_v5  ;;  %v1529_v24 = vadd.f32 %v1465_v47, %v1255_v0  ;;  %v5788_v5 = vld [vmem:[#allocation36_spill] sm:$0xff] }
 0x1b2   :  { %5783 = vst [vmem:[#allocation12_spill] sm:$0xff] %v4929_v3  ;;  %v1253_v18 = vadd.f32 %v4690_v27, %v979_v63  ;;  %v1736_v31 = vmul.f32 %v4422_v32, %v5786_v4  ;;  %v4944_v41 = vmul.f32 %v4380_v48, %v5787_v44  ;;  %v4948_v22 = vmul.f32 %v4392_v49, %v5787_v44  ;;  %v5791_v3 = vld [vmem:[#allocation40_spill] sm:$0xff] }
 0x1b3   :  { %5784 = vst [vmem:[#allocation8_spill] sm:$0xff] %v4934_v19  ;;  %5785 = vst [vmem:[#allocation31_spill] sm:$0xff] %v4937_v58  ;;  %v1738_v27 = vmul.f32 %v4422_v32, %v5788_v5  ;;  %v4955_v0 = vadd.f32 %v1733_v36, %v1523_v17  ;;  %v1526_v1 = vadd.f32 %v1462_v42, %v1252_v13  ;;  %v5790_v36 = vld [vmem:[#allocation38_spill] sm:$0xff] }
 0x1b4   :  { %v909_v42 = vmul.f32 %v4339_v39, %v5790_v36 }
 0x1b5   :  { %v4967_v13 = vadd.f32 %v1736_v31, %v1526_v1 }
 0x1b9   :  { %v2042_v16 = vpop.f32.mrb[0].mxu1 }
 0x1ba   :  { %v2043_v62 = vadd.f32 %v2042_v16, %v1784_v10  ;;  %v2044_v7 = vpop.f32.mrb[1].mxu1  ;;  %v1737_v10 = vmul.f32 %v4428_v2, %v5786_v4  ;;  %v1527_v4 = vadd.f32 %v1463_v60, %v1253_v18 }
 0x1bb   :  { %v2045_v30 = vadd.f32 %v2044_v7, %v4838_v28  ;;  %v2046_v59 = vpop.f32.mrb[2].mxu1  ;;  %v1739_v28 = vmul.f32 %v4428_v2, %v5788_v5  ;;  %v4961_v7 = vpop.permute.xlu1 %1123 }
 0x1bc   :  { %v2048_v63 = vpop.f32.mrb[3].mxu1  ;;  %v2265_v47 = vmul.f32 0.01, %v2043_v62  ;;  %v2047_v58 = vadd.f32 %v2046_v59, %v4843_v23  ;;  %5789 = vst [vmem:[#allocation10_spill] sm:$0xff] %v4961_v7  ;;  %vm2201_vm1 = vcmp.gt.f32.partialorder %v2043_v62, 0.0  ;;  %v910_v23 = vmul.f32 %v3717_v37, %v5790_v36  ;;  %v3483_v59 = vld [vmem:[%s5588_s9] sm:$0xff]   ;;  %v4974_v5 = vpop.permute.xlu0 %1119 }
 0x1bd   :  { %v2266_v16 = vmul.f32 0.01, %v2045_v30  ;;  %v2049_v44 = vadd.f32 %v2048_v63, %v4852_v33  ;;  %vm2202_vm2 = vcmp.gt.f32.partialorder %v2045_v30, 0.0  ;;  %v4969_v33 = vadd.f32 %v1738_v27, %v1528_v8  ;;  %v3484_v36 = vld [vmem:[%s5588_s9 + $0x8] sm:$0xff]   ;;  %3259 = vmatprep.subr.bf16.mxu1 %v3483_v59 }
 0x1be   :  { %vm2203_vm3 = vcmp.gt.f32.partialorder %v2047_v58, 0.0  ;;  %v2267_v19 = vmul.f32 0.01, %v2047_v58  ;;  %v2329_v60 = vsel %vm2201_vm1, %v2043_v62, %v2265_v47  ;;  %v4981_v43 = vadd.f32 %v1739_v28, %v1529_v24  ;;  %3260 = vmatpush3.bf16.msra.mxu1 %v3483_v59 }
 0x1bf   :  { %vm2204_vm4 = vcmp.gt.f32.partialorder %v2049_v44, 0.0  ;;  %v2268_v17 = vmul.f32 0.01, %v2049_v44  ;;  %v2330_v7 = vsel %vm2202_vm2, %v2045_v30, %v2266_v16  ;;  %v1192_v62 = vmul.f32 %v4333_v9, %v5791_v3  ;;  %3261 = vmatprep.subr.bf16.mxu1 %v3484_v36 }
 0x1c0   :  { %v2331_v18 = vsel %vm2203_vm3, %v2047_v58, %v2267_v19  ;;  %v1193_v19 = vmul.f32 %v4336_v50, %v5791_v3  ;;  %v4988_v47 = vadd.f32 %v1737_v10, %v1527_v4  ;;  %v984_v16 = vadd.f32 %v4345_v11, %v909_v42 }
 0x1c1   :  { %v2332_v40 = vsel %vm2204_vm4, %v2049_v44, %v2268_v17  ;;  %v2393_v31 = vpack.c.bf16 %v2331_v18, %v2329_v60  ;;  %v5000_v3 = vmul.f32 %v4380_v48, %v4437_v12  ;;  %v5005_v4 = vmul.f32 %v4392_v49, %v4437_v12  ;;  %v5795_v60 = vld [vmem:[#allocation57_spill] sm:$0xff] }
 0x1c2   :  { %v2052_v63 = vpop.f32.mrb[4].mxu1  ;;  %v2394_v1 = vpack.c.bf16 %v2332_v40, %v2330_v7  ;;  %v4992_v40 = vpop.permute.xlu1 %1127  ;;  %v1256_v17 = vadd.f32 %v1192_v62, %v4869_v53  ;;  %v5009_v42 = vadd.f32 %v1193_v19, %v4884_v54  ;;  %3262 = vmatpush3.bf16.msra.mxu1 %v3484_v36  ;;  %v5018_v12 = vmul.f32 %v4380_v48, %v5795_v60  ;;  %v5797_v54 = vld [vmem:[#allocation45_spill] sm:$0xff] }
 0x1c3   :  { %v2053_v8 = vadd.f32 %v2052_v63, %v4740_v34  ;;  %v2054_v27 = vpop.f32.mrb[5].mxu1  ;;  %v985_v34 = vadd.f32 %v4357_v21, %v910_v23  ;;  %5792 = vst [vmem:[#allocation17_spill] sm:$0xff] %v4992_v40  ;;  %5793 = vst [vmem:[#allocation19_spill] sm:$0xff] %v5000_v3  ;;  %v5011_v23 = vpop.permute.xlu0 %1131  ;;  %v1258_v53 = vadd.f32 %v4694_v6, %v984_v16  ;;  %v5805_v40 = vld [vmem:[#allocation44_spill] sm:$0xff] }
 0x1c4   :  { %v2055_v58 = vadd.f32 %v2054_v27, %v4742_v45  ;;  %v2056_v30 = vpop.f32.mrb[6].mxu1  ;;  %2528 = vmatprep.mubr.bf16.mxu0 %v2394_v1  ;;  %v3485_v45 = vld [vmem:[%s5588_s9 + $0x10] sm:$0xff]   ;;  %5794 = vst [vmem:[#allocation33_spill] sm:$0xff] %v5005_v4  ;;  %5796 = vst [vmem:[#allocation22_spill] sm:$0xff] %v5018_v12  ;;  %v912_v19 = vmul.f32 %v3717_v37, %v5797_v54 }
 0x1c5   :  { %v2269_v24 = vmul.f32 0.01, %v2053_v8  ;;  %v2057_v44 = vadd.f32 %v2056_v30, %v4753_v57  ;;  %v2058_v28 = vpop.f32.mrb[7].mxu1  ;;  %vm2205_vm5 = vcmp.gt.f32.partialorder %v2053_v8, 0.0  ;;  %2529 = vmatmul.mubr.bf16.vlgmr.msra.gmra.mrb[64].mxu0 %v2393_v31  ;;  %3263 = vmatprep.subr.bf16.mxu1 %v3485_v45  ;;  %v911_v31 = vmul.f32 %v4339_v39, %v5797_v54 }
 0x1c6   :  { %v2270_v10 = vmul.f32 0.01, %v2055_v58  ;;  %v2059_v7 = vadd.f32 %v2058_v28, %v4762_v46  ;;  %vm2206_vm6 = vcmp.gt.f32.partialorder %v2055_v58, 0.0  ;;  %v3486_v46 = vld [vmem:[%s5588_s9 + $0x18] sm:$0xff]   ;;  %v5029_v30 = vmul.f32 %v4392_v49, %v5795_v60  ;;  %3264 = vmatpush3.bf16.msra.mxu1 %v3485_v45 }
 0x1c7   :  { %vm2207_vm7 = vcmp.gt.f32.partialorder %v2057_v44, 0.0  ;;  %v2271_v57 = vmul.f32 0.01, %v2057_v44  ;;  %v2333_v18 = vsel %vm2205_vm5, %v2053_v8, %v2269_v24  ;;  %v5031_v8 = vpop.permute.xlu1 %1401  ;;  %v1259_v54 = vadd.f32 %v4698_v38, %v985_v34  ;;  %3265 = vmatprep.subr.bf16.mxu1 %v3486_v46 }
 0x1c8   :  { %vm2208_vm8 = vcmp.gt.f32.partialorder %v2059_v7, 0.0  ;;  %v2272_v59 = vmul.f32 0.01, %v2059_v7  ;;  %v2334_v36 = vsel %vm2206_vm6, %v2055_v58, %v2270_v10  ;;  %5798 = vst [vmem:[#allocation35_spill] sm:$0xff] %v5029_v30  ;;  %5799 = vst [vmem:[#allocation24_spill] sm:$0xff] %v5031_v8  ;;  %v5801_v10 = vld [vmem:[#allocation43_spill] sm:$0xff]  ;;  %v987_v45 = vadd.f32 %v4357_v21, %v912_v19 }
 0x1c9   :  { %v2335_v63 = vsel %vm2207_vm7, %v2057_v44, %v2271_v57  ;;  %v5800_v44 = vld [vmem:[#allocation41_spill] sm:$0xff]  ;;  %v1469_v60 = vmul.f32 %v4392_v49, %v5801_v10  ;;  %v1742_v21 = vmul.f32 %v4422_v32, %v5805_v40 }
 0x1ca   :  { %v2062_v27 = vpop.f32.mrb[8].mxu1  ;;  %v2336_v1 = vsel %vm2208_vm8, %v2059_v7, %v2272_v59  ;;  %v2395_v62 = vpack.c.bf16 %v2335_v63, %v2333_v18  ;;  %v1466_v28 = vmul.f32 %v4380_v48, %v5800_v44  ;;  %v1467_v58 = vmul.f32 %v4392_v49, %v5800_v44  ;;  %3266 = vmatpush3.bf16.msra.mxu1 %v3486_v46  ;;  %v5804_v44 = vld [vmem:[#allocation48_spill] sm:$0xff] }
 0x1cb   :  { %v2063_v6 = vadd.f32 %v2062_v27, %v4863_v26  ;;  %v2064_v16 = vpop.f32.mrb[9].mxu1  ;;  %v2396_v24 = vpack.c.bf16 %v2336_v1, %v2334_v36  ;;  %v1468_v7 = vmul.f32 %v4380_v48, %v5801_v10  ;;  %v986_v27 = vadd.f32 %v4345_v11, %v911_v31  ;;  %v5046_v36 = vpop.permute.xlu0 %1143 }
 0x1cc   :  { %v2065_v57 = vadd.f32 %v2064_v16, %v4866_v25  ;;  %v2066_v59 = vpop.f32.mrb[10].mxu1  ;;  %v5050_v16 = vpop.permute.xlu1 %1671  ;;  %v1531_v46 = vadd.f32 %v1467_v58, %v5009_v42 }
 0x1cd   :  { %v2273_v18 = vmul.f32 0.01, %v2063_v6  ;;  %v2067_v26 = vadd.f32 %v2066_v59, %v4824_v15  ;;  %v2068_v63 = vpop.f32.mrb[11].mxu1  ;;  %2536 = vmatprep.mubr.bf16.mxu0 %v2396_v24  ;;  %vm2209_vm9 = vcmp.gt.f32.partialorder %v2063_v6, 0.0  ;;  %5802 = vst [vmem:[#allocation16_spill] sm:$0xff] %v5050_v16  ;;  %v5803_v24 = vld [vmem:[#allocation46_spill] sm:$0xff]  ;;  %v1530_v16 = vadd.f32 %v1466_v28, %v1256_v17 }
 0x1ce   :  { %v2274_v1 = vmul.f32 0.01, %v2065_v57  ;;  %v2069_v25 = vadd.f32 %v2068_v63, %v4826_v20  ;;  %2537 = vmatmul.mubr.bf16.gmra.mrb[68].mxu0 %v2395_v62  ;;  %vm2210_vm10 = vcmp.gt.f32.partialorder %v2065_v57, 0.0  ;;  %v1196_v38 = vmul.f32 %v4333_v9, %v5803_v24 }
 0x1cf   :  { %vm2211_vm11 = vcmp.gt.f32.partialorder %v2067_v26, 0.0  ;;  %v2275_v15 = vmul.f32 0.01, %v2067_v26  ;;  %v1197_v34 = vmul.f32 %v4336_v50, %v5803_v24  ;;  %v1198_v20 = vmul.f32 %v4333_v9, %v5804_v44 }
 0x1d0   :  { %vm2212_vm12 = vcmp.gt.f32.partialorder %v2069_v25, 0.0  ;;  %v2276_v31 = vmul.f32 0.01, %v2069_v25  ;;  %v1199_v62 = vmul.f32 %v4336_v50, %v5804_v44  ;;  %v2337_v19 = vsel %vm2209_vm9, %v2063_v6, %v2273_v18  ;;  %v5067_v6 = vpop.permute.xlu0 %1663  ;;  %v5072_v42 = vpop.permute.xlu1 %840 }
 0x1d1   :  { %v2339_v10 = vsel %vm2211_vm11, %v2067_v26, %v2275_v15  ;;  %v2338_v63 = vsel %vm2210_vm10, %v2065_v57, %v2274_v1  ;;  %v1532_v8 = vadd.f32 %v1468_v7, %v1258_v53  ;;  %v1743_v44 = vmul.f32 %v4428_v2, %v5805_v40 }
 0x1d2   :  { %v2072_v59 = vpop.f32.mrb[12].mxu1  ;;  %v2340_v30 = vsel %vm2212_vm12, %v2069_v25, %v2276_v31  ;;  %v2397_v12 = vpack.c.bf16 %v2339_v10, %v2337_v19  ;;  %v1533_v26 = vadd.f32 %v1469_v60, %v1259_v54  ;;  %v1260_v17 = vadd.f32 %v1196_v38, %v986_v27 }
 0x1d3   :  { %v2073_v4 = vadd.f32 %v2072_v59, %v4925_v35  ;;  %v2074_v24 = vpop.f32.mrb[13].mxu1  ;;  %v2398_v3 = vpack.c.bf16 %v2340_v30, %v2338_v63  ;;  %v1261_v28 = vadd.f32 %v1197_v34, %v987_v45  ;;  %v1262_v35 = vadd.f32 %v1198_v20, %v4891_v61 }
 0x1d4   :  { %v2075_v57 = vadd.f32 %v2074_v24, %v4955_v0  ;;  %v2076_v18 = vpop.f32.mrb[14].mxu1  ;;  %v1263_v30 = vadd.f32 %v1199_v62, %v4910_v51  ;;  %v5806_v0 = vld [vmem:[#allocation50_spill] sm:$0xff]  ;;  %v1676_v25 = vpop.permute.xlu0 %1675  ;;  %v1804_v10 = vadd.f32 %v4766_v14, %v1530_v16  ;;  %v1807_v14 = vadd.f32 %v1743_v44, %v1533_v26 }
 0x1d5   :  { %v2078_v53 = vpop.f32.mrb[15].mxu1  ;;  %2544 = vmatprep.mubr.bf16.mxu0 %v2398_v3  ;;  %v2277_v58 = vmul.f32 0.01, %v2073_v4  ;;  %v2077_v40 = vadd.f32 %v2076_v18, %v4913_v56  ;;  %v1472_v60 = vmul.f32 %v4380_v48, %v5806_v0  ;;  %v1473_v54 = vmul.f32 %v4392_v49, %v5806_v0  ;;  %v5807_v3 = vld [vmem:[#allocation52_spill] sm:$0xff]  ;;  %v5086_v31 = vpop.permute.xlu1 %845  ;;  %v5808_v18 = vld [vmem:[#allocation7_spill] sm:$0xff] }
 0x1d6   :  { %v2278_v7 = vmul.f32 0.01, %v2075_v57  ;;  %v2079_v1 = vadd.f32 %v2078_v53, %v4916_v52  ;;  %2545 = vmatmul.mubr.bf16.gmra.mrb[72].mxu0 %v2397_v12  ;;  %vm2213_vm13 = vcmp.gt.f32.partialorder %v2073_v4, 0.0  ;;  %vm2214_vm14 = vcmp.gt.f32.partialorder %v2075_v57, 0.0 }
 0x1d7   :  { %vm2215_vm15 = vcmp.gt.f32.partialorder %v2077_v40, 0.0  ;;  %v2279_v61 = vmul.f32 0.01, %v2077_v40  ;;  %v1744_v27 = vmul.f32 %v4422_v32, %v5807_v3  ;;  %v1745_v56 = vmul.f32 %v4428_v2, %v5807_v3 }
 0x1d8   :  { %vm2216_vm0 = vcmp.gt.f32.partialorder %v2079_v1, 0.0  ;;  %v2280_v51 = vmul.f32 0.01, %v2079_v1  ;;  %v1534_v52 = vadd.f32 %v4944_v41, %v1260_v17  ;;  %v1535_v12 = vadd.f32 %v4948_v22, %v1261_v28  ;;  %v5100_v16 = vpop.permute.xlu0 %1687 }
 0x1d9   :  { %v2342_v45 = vsel %vm2214_vm14, %v2075_v57, %v2278_v7  ;;  %v2341_v38 = vsel %vm2213_vm13, %v2073_v4, %v2277_v58  ;;  %v2343_v34 = vsel %vm2215_vm15, %v2077_v40, %v2279_v61  ;;  %v1536_v59 = vadd.f32 %v1472_v60, %v1262_v35  ;;  %v5809_v58 = vld [vmem:[#allocation4_spill] sm:$0xff]  ;;  %v5122_v40 = vpop.permute.xlu1 %1135 }
 0x1da   :  { %v2344_v15 = vsel %vm2216_vm0, %v2079_v1, %v2280_v51  ;;  %v2399_v19 = vpack.c.bf16 %v2343_v34, %v2341_v38  ;;  %v1805_v41 = vadd.f32 %v5808_v18, %v1531_v46  ;;  %v1806_v17 = vadd.f32 %v1742_v21, %v1532_v8  ;;  %v5811_v34 = vld [vmem:[#allocation6_spill] sm:$0xff] }
 0x1db   :  { %v2082_v20 = vpop.f32.mrb[16].mxu1  ;;  %v2400_v62 = vpack.c.bf16 %v2344_v15, %v2342_v45  ;;  %v1537_v22 = vadd.f32 %v1473_v54, %v1263_v30  ;;  %v5093_v57 = vmul.f32 %v4333_v9, %v4974_v5  ;;  %v5097_v4 = vmul.f32 %v4336_v50, %v4974_v5  ;;  %v5810_v15 = vld [vmem:[#allocation3_spill] sm:$0xff] }
 0x1dc   :  { %v2083_v63 = vadd.f32 %v2082_v20, %v4967_v13  ;;  %v2084_v24 = vpop.f32.mrb[17].mxu1  ;;  %v5103_v8 = vadd.f32 %v1744_v27, %v1534_v52  ;;  %v5105_v35 = vadd.f32 %v1745_v56, %v1535_v12  ;;  %v5120_v7 = vmul.f32 %v4336_v50, %v5011_v23  ;;  %v851_v27 = vpop.permute.xlu0 %850 }
 0x1dd   :  { %v2085_v28 = vadd.f32 %v2084_v24, %v4988_v47  ;;  %v2086_v53 = vpop.f32.mrb[18].mxu1  ;;  %2552 = vmatprep.mubr.bf16.mxu0 %v2400_v62  ;;  %v5109_v47 = vadd.f32 %v5809_v58, %v1536_v59  ;;  %v5112_v26 = vadd.f32 %v4821_v29, %v1537_v22  ;;  %v5126_v1 = vmul.f32 %v4333_v9, %v5046_v36  ;;  %v5153_v22 = vpop.permute.xlu1 %1405  ;;  %v5813_v58 = vld [vmem:[#allocation5_spill] sm:$0xff] }
 0x1de   :  { %v2281_v13 = vmul.f32 0.01, %v2083_v63  ;;  %v2087_v46 = vadd.f32 %v2086_v53, %v4969_v33  ;;  %v2088_v21 = vpop.f32.mrb[19].mxu1  ;;  %2553 = vmatmul.mubr.bf16.gmra.mrb[76].mxu0 %v2399_v19  ;;  %vm2217_vm1 = vcmp.gt.f32.partialorder %v2083_v63, 0.0  ;;  %v5116_v33 = vmul.f32 %v4333_v9, %v5011_v23 }
 0x1df   :  { %v2282_v30 = vmul.f32 0.01, %v2085_v28  ;;  %v2089_v5 = vadd.f32 %v2088_v21, %v4981_v43  ;;  %vm2218_vm2 = vcmp.gt.f32.partialorder %v2085_v28, 0.0  ;;  %v5130_v29 = vmul.f32 %v4336_v50, %v5046_v36 }
 0x1e0   :  { %vm2219_vm3 = vcmp.gt.f32.partialorder %v2087_v46, 0.0  ;;  %v2283_v44 = vmul.f32 0.01, %v2087_v46  ;;  %v2345_v0 = vsel %vm2217_vm1, %v2083_v63, %v2281_v13  ;;  %v5134_v54 = vmul.f32 %v4422_v32, %v5067_v6 }
 0x1e1   :  { %vm2220_vm4 = vcmp.gt.f32.partialorder %v2089_v5, 0.0  ;;  %v2284_v43 = vmul.f32 0.01, %v2089_v5  ;;  %v2346_v61 = vsel %vm2218_vm2, %v2085_v28, %v2282_v30  ;;  %v5138_v56 = vmul.f32 %v4428_v2, %v5067_v6  ;;  %v5812_v30 = vld [vmem:[#allocation12_spill] sm:$0xff] }
 0x1e2   :  { %v2347_v60 = vsel %vm2219_vm3, %v2087_v46, %v2283_v44  ;;  %v5141_v52 = vmul.f32 %v4422_v32, %v1676_v25  ;;  %v933_v38 = vmul.f32 %v4339_v39, %v5810_v15  ;;  %v1216_v20 = vmul.f32 %v4333_v9, %v5811_v34 }
 0x1e3   :  { %v2092_v23 = vpop.f32.mrb[20].mxu1  ;;  %v2348_v51 = vsel %vm2220_vm4, %v2089_v5, %v2284_v43  ;;  %v2401_v3 = vpack.c.bf16 %v2347_v60, %v2345_v0  ;;  %v5148_v62 = vmul.f32 %v4428_v2, %v1676_v25  ;;  %v1217_v6 = vmul.f32 %v4336_v50, %v5811_v34  ;;  %v5175_v34 = vpop.permute.xlu1 %1679 }
 0x1e4   :  { %v2093_v36 = vadd.f32 %v2092_v23, %v1804_v10  ;;  %v2094_v12 = vpop.f32.mrb[21].mxu1  ;;  %v2402_v45 = vpack.c.bf16 %v2348_v51, %v2346_v61  ;;  %v943_v10 = vmul.f32 %v4339_v39, %v851_v27  ;;  %v944_v25 = vmul.f32 %v3717_v37, %v851_v27 }
 0x1e5   :  { %v2095_v19 = vadd.f32 %v2094_v12, %v1805_v41  ;;  %v2096_v59 = vpop.f32.mrb[22].mxu1  ;;  %v934_v41 = vmul.f32 %v3717_v37, %v5810_v15  ;;  %v1280_v46 = vadd.f32 %v1216_v20, %v4919_v55  ;;  %v1281_v5 = vadd.f32 %v1217_v6, %v5812_v30  ;;  %v5814_v15 = vld [vmem:[#allocation54_spill] sm:$0xff] }
 0x1e6   :  { %v2285_v63 = vmul.f32 0.01, %v2093_v36  ;;  %v2097_v24 = vadd.f32 %v2096_v59, %v1806_v17  ;;  %v2098_v18 = vpop.f32.mrb[23].mxu1  ;;  %2560 = vmatprep.mubr.bf16.mxu0 %v2402_v45  ;;  %vm2221_vm5 = vcmp.gt.f32.partialorder %v2093_v36, 0.0  ;;  %v1008_v17 = vadd.f32 %v4345_v11, %v933_v38 }
 0x1e7   :  { %v2286_v28 = vmul.f32 0.01, %v2095_v19  ;;  %v2099_v53 = vadd.f32 %v2098_v18, %v1807_v14  ;;  %2561 = vmatmul.mubr.bf16.gmra.mrb[80].mxu0 %v2401_v3  ;;  %vm2222_vm6 = vcmp.gt.f32.partialorder %v2095_v19, 0.0  ;;  %v1490_v14 = vmul.f32 %v4380_v48, %v5813_v58 }
 0x1e8   :  { %vm2223_vm7 = vcmp.gt.f32.partialorder %v2097_v24, 0.0  ;;  %v2287_v13 = vmul.f32 0.01, %v2097_v24  ;;  %v2349_v44 = vsel %vm2221_vm5, %v2093_v36, %v2285_v63  ;;  %v1491_v0 = vmul.f32 %v4392_v49, %v5813_v58  ;;  %v866_v36 = vpop.permute.xlu0 %865 }
 0x1e9   :  { %vm2224_vm8 = vcmp.gt.f32.partialorder %v2099_v53, 0.0  ;;  %v2288_v21 = vmul.f32 0.01, %v2099_v53  ;;  %v2350_v23 = vsel %vm2222_vm6, %v2095_v19, %v2286_v28  ;;  %v5168_v12 = vmul.f32 %v4422_v32, %v5100_v16 }
 0x1ea   :  { %v2351_v43 = vsel %vm2223_vm7, %v2097_v24, %v2287_v13  ;;  %v5172_v45 = vmul.f32 %v4428_v2, %v5100_v16  ;;  %v1009_v38 = vadd.f32 %v5814_v15, %v934_v41  ;;  %v5182_v59 = vadd.f32 %v5814_v15, %v944_v25 }
 0x1eb   :  { %v2102_v60 = vpop.f32.mrb[24].mxu1  ;;  %v2352_v61 = vsel %vm2224_vm8, %v2099_v53, %v2288_v21  ;;  %v2403_v51 = vpack.c.bf16 %v2351_v43, %v2349_v44  ;;  %v1554_v6 = vadd.f32 %v1490_v14, %v1280_v46  ;;  %v1282_v63 = vadd.f32 %v5093_v57, %v1008_v17 }
 0x1ec   :  { %v2103_v3 = vadd.f32 %v2102_v60, %v5103_v8  ;;  %v2104_v27 = vpop.f32.mrb[25].mxu1  ;;  %v2404_v55 = vpack.c.bf16 %v2352_v61, %v2350_v23  ;;  %v5179_v8 = vadd.f32 %v4345_v11, %v943_v10  ;;  %v1555_v28 = vadd.f32 %v1491_v0, %v1281_v5  ;;  %v1422_v30 = vpop.permute.xlu0 %1421  ;;  %v5816_v0 = vld [vmem:[#allocation55_spill] sm:$0xff] }
 0x1ed   :  { %v2105_v20 = vadd.f32 %v2104_v27, %v5105_v35  ;;  %v2106_v19 = vpop.f32.mrb[26].mxu1  ;;  %v949_v25 = vmul.f32 %v4339_v39, %v866_v36  ;;  %v1283_v41 = vadd.f32 %v5097_v4, %v1009_v38  ;;  %v950_v13 = vmul.f32 %v3717_v37, %v866_v36  ;;  %v5194_v5 = vpop.permute.xlu1 %1683  ;;  %v5817_v27 = vld [vmem:[#allocation14_spill] sm:$0xff]  ;;  %v5818_v36 = vld [vmem:[#allocation56_spill] sm:$0xff] }
 0x1ee   :  { %v2289_v24 = vmul.f32 0.01, %v2103_v3  ;;  %v2107_v16 = vadd.f32 %v2106_v19, %v5109_v47  ;;  %v2108_v18 = vpop.f32.mrb[27].mxu1  ;;  %2568 = vmatprep.mubr.bf16.mxu0 %v2404_v55  ;;  %vm2225_vm9 = vcmp.gt.f32.partialorder %v2103_v3, 0.0  ;;  %v5815_v47 = vld [vmem:[#allocation9_spill] sm:$0xff]  ;;  %v5197_v4 = vadd.f32 %v5134_v54, %v1554_v6 }
 0x1ef   :  { %v2290_v53 = vmul.f32 0.01, %v2105_v20  ;;  %v2109_v35 = vadd.f32 %v2108_v18, %v5112_v26  ;;  %2569 = vmatmul.mubr.bf16.gmra.mrb[84].mxu0 %v2403_v51  ;;  %vm2226_vm10 = vcmp.gt.f32.partialorder %v2105_v20, 0.0  ;;  %v1492_v17 = vmul.f32 %v4380_v48, %v5815_v47 }
 0x1f0   :  { %vm2227_vm11 = vcmp.gt.f32.partialorder %v2107_v16, 0.0  ;;  %v2291_v10 = vmul.f32 0.01, %v2107_v16  ;;  %v1493_v46 = vmul.f32 %v4392_v49, %v5815_v47  ;;  %v2353_v21 = vsel %vm2225_vm9, %v2103_v3, %v2289_v24  ;;  %v5821_v24 = vld [vmem:[#allocation58_spill] sm:$0xff] }
 0x1f1   :  { %vm2228_vm12 = vcmp.gt.f32.partialorder %v2109_v35, 0.0  ;;  %v2292_v57 = vmul.f32 0.01, %v2109_v35  ;;  %v2354_v14 = vsel %vm2226_vm10, %v2105_v20, %v2290_v53  ;;  %v5201_v51 = vadd.f32 %v5138_v56, %v1555_v28  ;;  %v5219_v53 = vpop.permute.xlu1 %855 }
 0x1f2   :  { %v2355_v26 = vsel %vm2227_vm11, %v2107_v16, %v2291_v10  ;;  %v5204_v3 = vadd.f32 %v4345_v11, %v949_v25  ;;  %v935_v55 = vmul.f32 %v4339_v39, %v5817_v27  ;;  %v5210_v19 = vadd.f32 %v5814_v15, %v950_v13  ;;  %v5823_v10 = vld [vmem:[#allocation59_spill] sm:$0xff] }
 0x1f3   :  { %v2112_v58 = vpop.f32.mrb[28].mxu1  ;;  %v2356_v44 = vsel %vm2228_vm12, %v2109_v35, %v2292_v57  ;;  %v2405_v43 = vpack.c.bf16 %v2355_v26, %v2353_v21  ;;  %v5213_v54 = vmul.f32 %v4380_v48, %v1422_v30  ;;  %v1556_v18 = vadd.f32 %v1492_v17, %v1282_v63  ;;  %v5824_v21 = vld [vmem:[#allocation11_spill] sm:$0xff] }
 0x1f4   :  { %v2113_v60 = vadd.f32 %v2112_v58, %v5816_v0  ;;  %v2114_v23 = vpop.f32.mrb[29].mxu1  ;;  %v2406_v61 = vpack.c.bf16 %v2356_v44, %v2354_v14  ;;  %5819 = vst [vmem:[#allocation26_spill] sm:$0xff] %v5210_v19  ;;  %v5217_v28 = vmul.f32 %v4392_v49, %v1422_v30  ;;  %v1557_v57 = vadd.f32 %v1493_v46, %v1283_v41  ;;  %v5825_v30 = vld [vmem:[#allocation10_spill] sm:$0xff]  ;;  %v5826_v14 = vld [vmem:[#allocation17_spill] sm:$0xff] }
 0x1f5   :  { %v2115_v38 = vadd.f32 %v2114_v23, %v5818_v36  ;;  %v2116_v20 = vpop.f32.mrb[30].mxu1  ;;  %5820 = vst [vmem:[#allocation13_spill] sm:$0xff] %v5213_v54  ;;  %v936_v13 = vmul.f32 %v3717_v37, %v5817_v27  ;;  %v1766_v63 = vmul.f32 %v4422_v32, %v5824_v21  ;;  %v1010_v17 = vadd.f32 %v4345_v11, %v935_v55 }
 0x1f6   :  { %v2293_v6 = vmul.f32 0.01, %v2113_v60  ;;  %v2117_v16 = vadd.f32 %v2116_v20, %v5821_v24  ;;  %v2118_v56 = vpop.f32.mrb[31].mxu1  ;;  %2576 = vmatprep.mubr.bf16.mxu0 %v2406_v61  ;;  %5822 = vst [vmem:[#allocation20_spill] sm:$0xff] %v5217_v28  ;;  %vm2229_vm13 = vcmp.gt.f32.partialorder %v2113_v60, 0.0  ;;  %v1220_v58 = vmul.f32 %v4333_v9, %v5825_v30  ;;  %v5827_v20 = vld [vmem:[#allocation60_spill] sm:$0xff] }
 0x1f7   :  { %v2294_v35 = vmul.f32 0.01, %v2115_v38  ;;  %v2119_v25 = vadd.f32 %v2118_v56, %v5823_v10  ;;  %2577 = vmatmul.mubr.bf16.gmra.mrb[88].mxu0 %v2405_v43  ;;  %vm2230_vm14 = vcmp.gt.f32.partialorder %v2115_v38, 0.0  ;;  %v1222_v44 = vmul.f32 %v4333_v9, %v5826_v14  ;;  %v5833_v28 = vld [vmem:[#allocation63_spill] sm:$0xff] }
 0x1f8   :  { %vm2231_vm15 = vcmp.gt.f32.partialorder %v2117_v16, 0.0  ;;  %v2295_v47 = vmul.f32 0.01, %v2117_v16  ;;  %v2357_v41 = vsel %vm2229_vm13, %v2113_v60, %v2293_v6  ;;  %v1223_v43 = vmul.f32 %v4336_v50, %v5826_v14  ;;  %v5828_v6 = vld [vmem:[#allocation24_spill] sm:$0xff] }
 0x1f9   :  { %vm2232_vm0 = vcmp.gt.f32.partialorder %v2119_v25, 0.0  ;;  %v2296_v26 = vmul.f32 0.01, %v2119_v25  ;;  %v2358_v23 = vsel %vm2230_vm14, %v2115_v38, %v2294_v35  ;;  %v1011_v36 = vadd.f32 %v5814_v15, %v936_v13  ;;  %v5243_v35 = vpop.permute.xlu1 %1139 }
 0x1fa   :  { %v2359_v46 = vsel %vm2231_vm15, %v2117_v16, %v2295_v47  ;;  %v1221_v55 = vmul.f32 %v4336_v50, %v5825_v30  ;;  %v1767_v60 = vmul.f32 %v4428_v2, %v5824_v21  ;;  %v1496_v16 = vmul.f32 %v4380_v48, %v5828_v6  ;;  %v5830_v30 = vld [vmem:[#allocation8_spill] sm:$0xff]  ;;  %v5832_v21 = vld [vmem:[#allocation31_spill] sm:$0xff] }
 0x1fb   :  { %v2122_v0 = vpop.f32.mrb[32].mxu1  ;;  %v2360_v61 = vsel %vm2232_vm0, %v2119_v25, %v2296_v26  ;;  %v2407_v27 = vpack.c.bf16 %v2359_v46, %v2357_v41  ;;  %v1497_v38 = vmul.f32 %v4392_v49, %v5828_v6  ;;  %v5829_v25 = vld [vmem:[#allocation61_spill] sm:$0xff]  ;;  %v1284_v26 = vadd.f32 %v1220_v58, %v1010_v17  ;;  %v5831_v46 = vld [vmem:[#allocation62_spill] sm:$0xff]  ;;  %v5250_v6 = vpop.permute.xlu0 %1699 }
 0x1fc   :  { %v2123_v24 = vadd.f32 %v2122_v0, %v5827_v20  ;;  %v2124_v56 = vpop.f32.mrb[33].mxu1  ;;  %v2408_v10 = vpack.c.bf16 %v2360_v61, %v2358_v23  ;;  %v1286_v14 = vadd.f32 %v1222_v44, %v5830_v30  ;;  %v1287_v61 = vadd.f32 %v1223_v43, %v5832_v21  ;;  %v5838_v21 = vld [vmem:[#allocation67_spill] sm:$0xff] }
 0x1fd   :  { %v2125_v13 = vadd.f32 %v2124_v56, %v5829_v25  ;;  %v2126_v47 = vpop.f32.mrb[34].mxu1  ;;  %v1285_v19 = vadd.f32 %v1221_v55, %v1011_v36  ;;  %v5256_v43 = vmul.f32 %v4422_v32, %v5250_v6 }
 0x1fe   :  { %v2297_v41 = vmul.f32 0.01, %v2123_v24  ;;  %v2127_v0 = vadd.f32 %v2126_v47, %v5831_v46  ;;  %v2128_v23 = vpop.f32.mrb[35].mxu1  ;;  %2584 = vmatprep.mubr.bf16.mxu0 %v2408_v10  ;;  %vm2233_vm1 = vcmp.gt.f32.partialorder %v2123_v24, 0.0  ;;  %v1560_v58 = vadd.f32 %v1496_v16, %v1286_v14  ;;  %v5835_v16 = vld [vmem:[#allocation66_spill] sm:$0xff] }
 0x1ff   :  { %v2298_v20 = vmul.f32 0.01, %v2125_v13  ;;  %v2129_v54 = vadd.f32 %v2128_v23, %v5833_v28  ;;  %2585 = vmatmul.mubr.bf16.gmra.mrb[92].mxu0 %v2407_v27  ;;  %vm2234_vm2 = vcmp.gt.f32.partialorder %v2125_v13, 0.0  ;;  %v1561_v44 = vadd.f32 %v1497_v38, %v1287_v61  ;;  %5834 = vst [vmem:[#allocation15_spill] sm:$0xff] %v5256_v43  ;;  %v5258_v28 = vpop.permute.xlu1 %1413 }
 0x200   :  { %vm2235_vm3 = vcmp.gt.f32.partialorder %v2127_v0, 0.0  ;;  %v2299_v17 = vmul.f32 0.01, %v2127_v0  ;;  %v2361_v25 = vsel %vm2233_vm1, %v2123_v24, %v2297_v41  ;;  %v5252_v10 = vadd.f32 %v1766_v63, %v1556_v18  ;;  %v5836_v24 = vld [vmem:[#allocation19_spill] sm:$0xff]  ;;  %v5837_v18 = vld [vmem:[#allocation33_spill] sm:$0xff] }
 0x201   :  { %vm2236_vm4 = vcmp.gt.f32.partialorder %v2129_v54, 0.0  ;;  %v2300_v56 = vmul.f32 0.01, %v2129_v54  ;;  %v2362_v30 = vsel %vm2234_vm2, %v2125_v13, %v2298_v20  ;;  %v5260_v46 = vadd.f32 %v1767_v60, %v1557_v57 }
 0x202   :  { %v2363_v47 = vsel %vm2235_vm3, %v2127_v0, %v2299_v17  ;;  %v1558_v41 = vadd.f32 %v5836_v24, %v1284_v26  ;;  %v5265_v63 = vadd.f32 %v5837_v18, %v1285_v19  ;;  %v939_v0 = vmul.f32 %v4339_v39, %v5072_v42  ;;  %v5839_v26 = vld [vmem:[#allocation64_spill] sm:$0xff] }
 0x203   :  { %v2132_v27 = vpop.f32.mrb[36].mxu1  ;;  %v2364_v36 = vsel %vm2236_vm4, %v2129_v54, %v2300_v56  ;;  %v2409_v55 = vpack.c.bf16 %v2363_v47, %v2361_v25  ;;  %v5271_v54 = vadd.f32 %v5141_v52, %v1560_v58  ;;  %v5274_v57 = vadd.f32 %v5148_v62, %v1561_v44  ;;  %v5840_v25 = vld [vmem:[#allocation16_spill] sm:$0xff]  ;;  %v5841_v58 = vld [vmem:[#allocation65_spill] sm:$0xff] }
 0x204   :  { %v2133_v38 = vadd.f32 %v2132_v27, %v5835_v16  ;;  %v2134_v14 = vpop.f32.mrb[37].mxu1  ;;  %v2410_v23 = vpack.c.bf16 %v2364_v36, %v2362_v30  ;;  %v940_v60 = vmul.f32 %v3717_v37, %v5072_v42  ;;  %v941_v13 = vmul.f32 %v4339_v39, %v5086_v31  ;;  %v5289_v36 = vpop.permute.xlu1 %1417 }
 0x205   :  { %v2135_v61 = vadd.f32 %v2134_v14, %v5838_v21  ;;  %v2136_v17 = vpop.f32.mrb[38].mxu1  ;;  %v1768_v47 = vmul.f32 %v4422_v32, %v5840_v25  ;;  %v942_v62 = vmul.f32 %v3717_v37, %v5086_v31  ;;  %v1769_v44 = vmul.f32 %v4428_v2, %v5840_v25  ;;  %v5842_v25 = vld [vmem:[#allocation68_spill] sm:$0xff] }
 0x206   :  { %v2301_v19 = vmul.f32 0.01, %v2133_v38  ;;  %v2137_v20 = vadd.f32 %v2136_v17, %v5839_v26  ;;  %v2138_v56 = vpop.f32.mrb[39].mxu1  ;;  %2592 = vmatprep.mubr.bf16.mxu0 %v2410_v23  ;;  %vm2237_vm5 = vcmp.gt.f32.partialorder %v2133_v38, 0.0  ;;  %v1014_v30 = vadd.f32 %v4345_v11, %v939_v0 }
 0x207   :  { %v2302_v52 = vmul.f32 0.01, %v2135_v61  ;;  %v2139_v27 = vadd.f32 %v2138_v56, %v5841_v58  ;;  %2593 = vmatmul.mubr.bf16.gmra.mrb[96].mxu0 %v2409_v55  ;;  %vm2238_vm6 = vcmp.gt.f32.partialorder %v2135_v61, 0.0  ;;  %v1015_v14 = vadd.f32 %v5814_v15, %v940_v60 }
 0x208   :  { %vm2239_vm7 = vcmp.gt.f32.partialorder %v2137_v20, 0.0  ;;  %v2303_v42 = vmul.f32 0.01, %v2137_v20  ;;  %v1016_v23 = vadd.f32 %v4345_v11, %v941_v13  ;;  %v2365_v55 = vsel %vm2237_vm5, %v2133_v38, %v2301_v19  ;;  %v5843_v19 = vld [vmem:[#allocation69_spill] sm:$0xff] }
 0x209   :  { %vm2240_vm8 = vcmp.gt.f32.partialorder %v2139_v27, 0.0  ;;  %v2304_v16 = vmul.f32 0.01, %v2139_v27  ;;  %v1226_v31 = vmul.f32 %v4333_v9, %v5122_v40  ;;  %v2366_v21 = vsel %vm2238_vm6, %v2135_v61, %v2302_v52 }
 0x20a   :  { %v2367_v24 = vsel %vm2239_vm7, %v2137_v20, %v2303_v42  ;;  %v1017_v56 = vadd.f32 %v5814_v15, %v942_v62  ;;  %v1227_v0 = vmul.f32 %v4336_v50, %v5122_v40  ;;  %v1288_v13 = vadd.f32 %v5116_v33, %v1014_v30  ;;  %v5844_v62 = vld [vmem:[#allocation70_spill] sm:$0xff]  ;;  %v5309_v33 = vpop.permute.xlu1 %1691 }
 0x20b   :  { %v2142_v18 = vpop.f32.mrb[40].mxu1  ;;  %v2368_v17 = vsel %vm2240_vm8, %v2139_v27, %v2304_v16  ;;  %v2411_v26 = vpack.c.bf16 %v2367_v24, %v2365_v55  ;;  %v1498_v38 = vmul.f32 %v4380_v48, %v5153_v22  ;;  %v5303_v61 = vadd.f32 %v1768_v47, %v1558_v41 }
 0x20c   :  { %v2143_v58 = vadd.f32 %v2142_v18, %v5842_v25  ;;  %v2144_v43 = vpop.f32.mrb[41].mxu1  ;;  %v2412_v60 = vpack.c.bf16 %v2368_v17, %v2366_v21  ;;  %v1289_v52 = vadd.f32 %v5120_v7, %v1015_v14  ;;  %v1499_v27 = vmul.f32 %v4392_v49, %v5153_v22  ;;  %v5845_v18 = vld [vmem:[#allocation71_spill] sm:$0xff] }
 0x20d   :  { %v2145_v20 = vadd.f32 %v2144_v43, %v5843_v19  ;;  %v2146_v42 = vpop.f32.mrb[42].mxu1  ;;  %v1290_v24 = vadd.f32 %v1226_v31, %v1016_v23  ;;  %v1291_v41 = vadd.f32 %v1227_v0, %v1017_v56  ;;  %v1562_v47 = vadd.f32 %v1498_v38, %v1288_v13 }
 0x20e   :  { %v2305_v40 = vmul.f32 0.01, %v2143_v58  ;;  %v2147_v16 = vadd.f32 %v2146_v42, %v5844_v62  ;;  %v2148_v55 = vpop.f32.mrb[43].mxu1  ;;  %2600 = vmatprep.mubr.bf16.mxu0 %v2412_v60  ;;  %vm2241_vm9 = vcmp.gt.f32.partialorder %v2143_v58, 0.0  ;;  %v1772_v22 = vmul.f32 %v4422_v32, %v5175_v34  ;;  %v5316_v60 = vpop.permute.xlu1 %860  ;;  %v5846_v62 = vld [vmem:[#allocation22_spill] sm:$0xff] }
 0x20f   :  { %v2306_v30 = vmul.f32 0.01, %v2145_v20  ;;  %v2149_v43 = vadd.f32 %v2148_v55, %v5845_v18  ;;  %2601 = vmatmul.mubr.bf16.gmra.mrb[100].mxu0 %v2411_v26  ;;  %vm2242_vm10 = vcmp.gt.f32.partialorder %v2145_v20, 0.0  ;;  %v1563_v21 = vadd.f32 %v1499_v27, %v1289_v52  ;;  %v5847_v52 = vld [vmem:[#allocation35_spill] sm:$0xff] }
 0x210   :  { %vm2243_vm11 = vcmp.gt.f32.partialorder %v2147_v16, 0.0  ;;  %v2307_v7 = vmul.f32 0.01, %v2147_v16  ;;  %v1773_v23 = vmul.f32 %v4428_v2, %v5175_v34  ;;  %v2369_v31 = vsel %vm2241_vm9, %v2143_v58, %v2305_v40 }
 0x211   :  { %vm2244_vm12 = vcmp.gt.f32.partialorder %v2149_v43, 0.0  ;;  %v2308_v14 = vmul.f32 0.01, %v2149_v43  ;;  %v2370_v26 = vsel %vm2242_vm10, %v2145_v20, %v2306_v30  ;;  %v1833_v19 = vadd.f32 %v1769_v44, %v5265_v63 }
 0x212   :  { %v2371_v17 = vsel %vm2243_vm11, %v2147_v16, %v2307_v7  ;;  %v1564_v55 = vadd.f32 %v5846_v62, %v1290_v24  ;;  %v5322_v27 = vadd.f32 %v5847_v52, %v1291_v41  ;;  %v945_v34 = vmul.f32 %v4339_v39, %v5219_v53 }
 0x213   :  { %v2152_v25 = vpop.f32.mrb[44].mxu1  ;;  %v2372_v56 = vsel %vm2244_vm12, %v2149_v43, %v2308_v14  ;;  %v2413_v0 = vpack.c.bf16 %v2371_v17, %v2369_v31  ;;  %v946_v58 = vmul.f32 %v3717_v37, %v5219_v53  ;;  %v5329_v16 = vadd.f32 %v1772_v22, %v1562_v47  ;;  %v5343_v22 = vpop.permute.xlu1 %1147 }
 0x214   :  { %v2153_v13 = vadd.f32 %v2152_v25, %v5197_v4  ;;  %v2154_v38 = vpop.f32.mrb[45].mxu1  ;;  %v2414_v42 = vpack.c.bf16 %v2372_v56, %v2370_v26  ;;  %v1228_v4 = vmul.f32 %v4333_v9, %v5243_v35  ;;  %v5334_v30 = vadd.f32 %v1773_v23, %v1563_v21 }
 0x215   :  { %v2155_v20 = vadd.f32 %v2154_v38, %v5201_v51  ;;  %v2156_v40 = vpop.f32.mrb[46].mxu1  ;;  %v1774_v18 = vmul.f32 %v4422_v32, %v5194_v5  ;;  %v1229_v43 = vmul.f32 %v4336_v50, %v5243_v35  ;;  %v1021_v7 = vadd.f32 %v5814_v15, %v946_v58  ;;  %v3487_v58 = vld [vmem:[%s5588_s9 + $0x20] sm:$0xff]  }
 0x216   :  { %v2309_v63 = vmul.f32 0.01, %v2153_v13  ;;  %v2157_v44 = vadd.f32 %v2156_v40, %v5252_v10  ;;  %v2158_v24 = vpop.f32.mrb[47].mxu1  ;;  %2608 = vmatprep.mubr.bf16.mxu0 %v2414_v42  ;;  %vm2245_vm13 = vcmp.gt.f32.partialorder %v2153_v13, 0.0  ;;  %v1020_v10 = vadd.f32 %v4345_v11, %v945_v34  ;;  %3267 = vmatprep.subr.bf16.mxu1 %v3487_v58 }
 0x217   :  { %v2310_v53 = vmul.f32 0.01, %v2155_v20  ;;  %v2159_v51 = vadd.f32 %v2158_v24, %v5260_v46  ;;  %2609 = vmatmul.mubr.bf16.gmra.mrb[104].mxu0 %v2413_v0  ;;  %vm2246_vm14 = vcmp.gt.f32.partialorder %v2155_v20, 0.0  ;;  %v1502_v14 = vmul.f32 %v4380_v48, %v5258_v28  ;;  %3268 = vmatpush3.bf16.msra.mxu1 %v3487_v58 }
 0x218   :  { %vm2247_vm15 = vcmp.gt.f32.partialorder %v2157_v44, 0.0  ;;  %v2311_v41 = vmul.f32 0.01, %v2157_v44  ;;  %v1292_v46 = vadd.f32 %v1228_v4, %v5179_v8  ;;  %v2373_v21 = vsel %vm2245_vm13, %v2153_v13, %v2309_v63 }
 0x219   :  { %vm2248_vm0 = vcmp.gt.f32.partialorder %v2159_v51, 0.0  ;;  %v2312_v47 = vmul.f32 0.01, %v2159_v51  ;;  %v1775_v35 = vmul.f32 %v4428_v2, %v5194_v5  ;;  %v2374_v17 = vsel %vm2246_vm14, %v2155_v20, %v2310_v53 }
 0x21a   :  { %v2375_v23 = vsel %vm2247_vm15, %v2157_v44, %v2311_v41  ;;  %v1503_v56 = vmul.f32 %v4392_v49, %v5258_v28  ;;  %v1293_v0 = vadd.f32 %v1229_v43, %v5182_v59  ;;  %v1294_v8 = vadd.f32 %v5126_v1, %v1020_v10 }
 0x21b   :  { %v2162_v31 = vpop.f32.mrb[48].mxu1  ;;  %v2376_v25 = vsel %vm2248_vm0, %v2159_v51, %v2312_v47  ;;  %v2415_v26 = vpack.c.bf16 %v2375_v23, %v2373_v21  ;;  %v1295_v13 = vadd.f32 %v5130_v29, %v1021_v7  ;;  %v1838_v5 = vadd.f32 %v1774_v18, %v1564_v55 }
 0x21c   :  { %v2163_v38 = vadd.f32 %v2162_v31, %v5303_v61  ;;  %v2164_v42 = vpop.f32.mrb[49].mxu1  ;;  %v2416_v62 = vpack.c.bf16 %v2376_v25, %v2374_v17  ;;  %v1504_v28 = vmul.f32 %v4380_v48, %v5289_v36  ;;  %v1566_v40 = vadd.f32 %v1502_v14, %v1292_v46 }
 0x21d   :  { %v2165_v52 = vadd.f32 %v2164_v42, %v1833_v19  ;;  %v2166_v34 = vpop.f32.mrb[50].mxu1  ;;  %v1505_v1 = vmul.f32 %v4392_v49, %v5289_v36  ;;  %v1152_v19 = vpop.permute.xlu1 %1151  ;;  %v1567_v63 = vadd.f32 %v1503_v56, %v1293_v0  ;;  %v1839_v24 = vadd.f32 %v1775_v35, %v5322_v27  ;;  %v3488_v36 = vld [vmem:[%s5588_s9 + $0x28] sm:$0xff]  }
 0x21e   :  { %v2313_v20 = vmul.f32 0.01, %v2163_v38  ;;  %v2167_v59 = vadd.f32 %v2166_v34, %v5271_v54  ;;  %v2168_v61 = vpop.f32.mrb[51].mxu1  ;;  %2616 = vmatprep.mubr.bf16.mxu0 %v2416_v62  ;;  %vm2249_vm1 = vcmp.gt.f32.partialorder %v2163_v38, 0.0  ;;  %v947_v54 = vmul.f32 %v4339_v39, %v5316_v60  ;;  %3269 = vmatprep.subr.bf16.mxu1 %v3488_v36 }
 0x21f   :  { %v2314_v29 = vmul.f32 0.01, %v2165_v52  ;;  %v2169_v55 = vadd.f32 %v2168_v61, %v5274_v57  ;;  %2617 = vmatmul.mubr.bf16.gmra.mrb[108].mxu0 %v2415_v26  ;;  %vm2250_vm2 = vcmp.gt.f32.partialorder %v2165_v52, 0.0  ;;  %v1568_v18 = vadd.f32 %v1504_v28, %v1294_v8  ;;  %3270 = vmatpush3.bf16.msra.mxu1 %v3488_v36  ;;  %v5850_v36 = vld [vmem:[#allocation20_spill] sm:$0xff] }
 0x220   :  { %vm2251_vm3 = vcmp.gt.f32.partialorder %v2167_v59, 0.0  ;;  %v2315_v4 = vmul.f32 0.01, %v2167_v59  ;;  %v948_v57 = vmul.f32 %v3717_v37, %v5316_v60  ;;  %v2377_v53 = vsel %vm2249_vm1, %v2163_v38, %v2313_v20 }
 0x221   :  { %vm2252_vm4 = vcmp.gt.f32.partialorder %v2169_v55, 0.0  ;;  %v2316_v44 = vmul.f32 0.01, %v2169_v55  ;;  %v1569_v43 = vadd.f32 %v1505_v1, %v1295_v13  ;;  %v2378_v10 = vsel %vm2250_vm2, %v2165_v52, %v2314_v29  ;;  %v1426_v35 = vpop.permute.xlu1 %1425 }
 0x222   :  { %v2379_v51 = vsel %vm2251_vm3, %v2167_v59, %v2315_v4  ;;  %v1840_v46 = vadd.f32 %v5168_v12, %v1566_v40  ;;  %v1841_v21 = vadd.f32 %v5172_v45, %v1567_v63  ;;  %v1778_v37 = vmul.f32 %v4422_v32, %v5309_v33  ;;  %v5849_v63 = vld [vmem:[#allocation13_spill] sm:$0xff] }
 0x223   :  { %v2172_v41 = vpop.f32.mrb[52].mxu1  ;;  %v2380_v39 = vsel %vm2252_vm4, %v2169_v55, %v2316_v44  ;;  %v2417_v7 = vpack.c.bf16 %v2379_v51, %v2377_v53  ;;  %v1022_v60 = vadd.f32 %v4345_v11, %v947_v54  ;;  %v1232_v23 = vmul.f32 %v4333_v9, %v5343_v22 }
 0x224   :  { %v2173_v27 = vadd.f32 %v2172_v41, %v5329_v16  ;;  %v2174_v47 = vpop.f32.mrb[53].mxu1  ;;  %v2418_v14 = vpack.c.bf16 %v2380_v39, %v2378_v10  ;;  %v3489_v16 = vld [vmem:[%s5588_s9 + $0x30] sm:$0xff]   ;;  %v1023_v12 = vadd.f32 %v5814_v15, %v948_v57  ;;  %v1233_v45 = vmul.f32 %v4336_v50, %v5343_v22 }
 0x225   :  { %v2175_v31 = vadd.f32 %v2174_v47, %v5334_v30  ;;  %v2176_v17 = vpop.f32.mrb[54].mxu1  ;;  %v1779_v11 = vmul.f32 %v4428_v2, %v5309_v33  ;;  %3271 = vmatprep.subr.bf16.mxu1 %v3489_v16  ;;  %v1234_v38 = vmul.f32 %v4333_v9, %v1152_v19  ;;  %v1296_v42 = vadd.f32 %v1232_v23, %v1022_v60  ;;  %v3490_v33 = vld [vmem:[%s5588_s9 + $0x38] sm:$0xff]  }
 0x226   :  { %v2317_v25 = vmul.f32 0.01, %v2173_v27  ;;  %v2177_v26 = vadd.f32 %v2176_v17, %v1838_v5  ;;  %v2178_v56 = vpop.f32.mrb[55].mxu1  ;;  %2624 = vmatprep.mubr.bf16.mxu0 %v2418_v14  ;;  %vm2253_vm5 = vcmp.gt.f32.partialorder %v2173_v27, 0.0  ;;  %3272 = vmatpush3.bf16.msra.mxu1 %v3489_v16  ;;  %v1235_v22 = vmul.f32 %v4336_v50, %v1152_v19  ;;  %v1696_v5 = vpop.permute.xlu1 %1695  ;;  %v5848_v19 = vld [vmem:[#allocation26_spill] sm:$0xff]  ;;  %v5851_v17 = vld [vmem:[#allocation15_spill] sm:$0xff] }
 0x227   :  { %v2318_v0 = vmul.f32 0.01, %v2175_v31  ;;  %v2179_v30 = vadd.f32 %v2178_v56, %v1839_v24  ;;  %2625 = vmatmul.mubr.bf16.gmra.mrb[112].mxu0 %v2417_v7  ;;  %vm2254_vm6 = vcmp.gt.f32.partialorder %v2175_v31, 0.0  ;;  %v1297_v8 = vadd.f32 %v1233_v45, %v1023_v12  ;;  %3273 = vmatprep.subr.bf16.mxu1 %v3490_v33 }
 0x228   :  { %vm2255_vm7 = vcmp.gt.f32.partialorder %v2177_v26, 0.0  ;;  %v2319_v15 = vmul.f32 0.01, %v2177_v26  ;;  %v1842_v13 = vadd.f32 %v1778_v37, %v1568_v18  ;;  %v2381_v52 = vsel %vm2253_vm5, %v2173_v27, %v2317_v25 }
 0x229   :  { %vm2256_vm8 = vcmp.gt.f32.partialorder %v2179_v30, 0.0  ;;  %v2320_v62 = vmul.f32 0.01, %v2179_v30  ;;  %v1843_v58 = vadd.f32 %v1779_v11, %v1569_v43  ;;  %v2382_v28 = vsel %vm2254_vm6, %v2175_v31, %v2318_v0 }
 0x22a   :  { %v2383_v34 = vsel %vm2255_vm7, %v2177_v26, %v2319_v15  ;;  %v1298_v50 = vadd.f32 %v1234_v38, %v5204_v3  ;;  %v1508_v61 = vmul.f32 %v4380_v48, %v1426_v35  ;;  %3274 = vmatpush3.bf16.msra.mxu1 %v3490_v33  ;;  %v1299_v55 = vadd.f32 %v1235_v22, %v5848_v19 }
 0x22b   :  { %v2182_v9 = vpop.f32.mrb[56].mxu1  ;;  %v2384_v20 = vsel %vm2256_vm8, %v2179_v30, %v2320_v62  ;;  %v2419_v59 = vpack.c.bf16 %v2383_v34, %v2381_v52  ;;  %v1509_v4 = vmul.f32 %v4392_v49, %v1426_v35  ;;  %v1570_v54 = vadd.f32 %v5849_v63, %v1296_v42  ;;  %v5413_v52 = vld [vmem:[%s5589_s8] ss:$0 sm:$0xff] }
 0x22c   :  { %v2183_v40 = vadd.f32 %v2182_v9, %v1840_v46  ;;  %v2184_v1 = vpop.f32.mrb[57].mxu1  ;;  %v2420_v29 = vpack.c.bf16 %v2384_v20, %v2382_v28  ;;  %v1571_v18 = vadd.f32 %v5850_v36, %v1297_v8  ;;  %v1780_v57 = vmul.f32 %v4422_v32, %v1696_v5 }
 0x22d   :  { %v2185_v44 = vadd.f32 %v2184_v1, %v1841_v21  ;;  %v2186_v24 = vpop.f32.mrb[58].mxu1  ;;  %v1781_v48 = vmul.f32 %v4428_v2, %v1696_v5  ;;  %v1572_v10 = vadd.f32 %v1508_v61, %v1298_v50  ;;  %v1573_v39 = vadd.f32 %v1509_v4, %v1299_v55 }
 0x22e   :  { %v2321_v53 = vmul.f32 0.01, %v2183_v40  ;;  %v2187_v3 = vadd.f32 %v2186_v24, %v1842_v13  ;;  %v2188_v51 = vpop.f32.mrb[59].mxu1  ;;  %2632 = vmatprep.mubr.bf16.mxu0 %v2420_v29  ;;  %vm2257_vm9 = vcmp.gt.f32.partialorder %v2183_v40, 0.0  ;;  %v1783_v7 = vmul.f32 %v4428_v2, %v5250_v6 }
 0x22f   :  { %v2322_v43 = vmul.f32 0.01, %v2185_v44  ;;  %v2189_v41 = vadd.f32 %v2188_v51, %v1843_v58  ;;  %2633 = vmatmul.mubr.bf16.gmra.mrb[116].mxu0 %v2419_v59  ;;  %vm2258_vm10 = vcmp.gt.f32.partialorder %v2185_v44, 0.0  ;;  %v1844_v27 = vadd.f32 %v1780_v57, %v1570_v54 }
 0x230   :  { %vm2259_vm11 = vcmp.gt.f32.partialorder %v2187_v3, 0.0  ;;  %v2323_v49 = vmul.f32 0.01, %v2187_v3  ;;  %v2385_v47 = vsel %vm2257_vm9, %v2183_v40, %v2321_v53  ;;  %v1845_v21 = vadd.f32 %v1781_v48, %v1571_v18 }
 0x231   :  { %vm2260_vm12 = vcmp.gt.f32.partialorder %v2189_v41, 0.0  ;;  %v2324_v32 = vmul.f32 0.01, %v2189_v41  ;;  %v2386_v37 = vsel %vm2258_vm10, %v2185_v44, %v2322_v43  ;;  %v1846_v16 = vadd.f32 %v5851_v17, %v1572_v10 }
 0x232   :  { %v2387_v14 = vsel %vm2259_vm11, %v2187_v3, %v2323_v49  ;;  %v1847_v26 = vadd.f32 %v1783_v7, %v1573_v39 }
 0x233   :  { %v2192_v46 = vpop.f32.mrb[60].mxu1  ;;  %v2388_v60 = vsel %vm2260_vm12, %v2189_v41, %v2324_v32  ;;  %v2421_v23 = vpack.c.bf16 %v2387_v14, %v2385_v47 }
 0x234   :  { %v2193_v35 = vadd.f32 %v2192_v46, %v1844_v27  ;;  %v2194_v31 = vpop.f32.mrb[61].mxu1  ;;  %v2422_v12 = vpack.c.bf16 %v2388_v60, %v2386_v37 }
 0x235   :  { %v2195_v45 = vadd.f32 %v2194_v31, %v1845_v21  ;;  %v2196_v25 = vpop.f32.mrb[62].mxu1 }
 0x236   :  { %v2325_v56 = vmul.f32 0.01, %v2193_v35  ;;  %v2197_v2 = vadd.f32 %v2196_v25, %v1846_v16  ;;  %v2198_v6 = vpop.f32.mrb[63].mxu1  ;;  %2640 = vmatprep.mubr.bf16.mxu0 %v2422_v12  ;;  %vm2261_vm13 = vcmp.gt.f32.partialorder %v2193_v35, 0.0 }
 0x237   :  { %v2326_v11 = vmul.f32 0.01, %v2195_v45  ;;  %v2199_v0 = vadd.f32 %v2198_v6, %v1847_v26  ;;  %2641 = vmatmul.mubr.bf16.gmra.mrb[120].mxu0 %v2421_v23  ;;  %vm2262_vm14 = vcmp.gt.f32.partialorder %v2195_v45, 0.0 }
 0x238   :  { %vm2263_vm15 = vcmp.gt.f32.partialorder %v2197_v2, 0.0  ;;  %v2327_v30 = vmul.f32 0.01, %v2197_v2  ;;  %v2389_v15 = vsel %vm2261_vm13, %v2193_v35, %v2325_v56 }
 0x239   :  { %vm2264_vm0 = vcmp.gt.f32.partialorder %v2199_v0, 0.0  ;;  %v2328_v38 = vmul.f32 0.01, %v2199_v0  ;;  %v2390_v22 = vsel %vm2262_vm14, %v2195_v45, %v2326_v11 }
 0x23a   :  { %v2391_v42 = vsel %vm2263_vm15, %v2197_v2, %v2327_v30 }
 0x23b   :  { %v2392_v62 = vsel %vm2264_vm0, %v2199_v0, %v2328_v38  ;;  %v2423_v33 = vpack.c.bf16 %v2391_v42, %v2389_v15 }
 0x23c   :  { %v2424_v8 = vpack.c.bf16 %v2392_v62, %v2390_v22 }
 0x23e   :  { %2648 = vmatprep.mubr.bf16.mxu0 %v2424_v8 }
 0x23f   :  { %2649 = vmatmul.mubr.bf16.gmra.mrb[124].mxu0 %v2423_v33 }
 0x298   :  { %v3139_v13 = vpop.f32.mrb[64].mxu0 }
 0x299   :  { %v3140_v34 = vpop.f32.mrb[65].mxu0 }
 0x29a   :  { %v3141_v5 = vadd.f32 %v3140_v34, %v3139_v13  ;;  %v3142_v9 = vpop.f32.mrb[66].mxu0 }
 0x29b   :  { %v3143_v58 = vpop.f32.mrb[67].mxu0 }
 0x29c   :  { %v2531_v28 = vadd.f32 %v3141_v5, %v5413_v52  ;;  %v3144_v20 = vadd.f32 %v3143_v58, %v3142_v9 }
 0x29e   :  { %v2689_v59 = vmul.f32 0.01, %v2531_v28  ;;  %v2534_v50 = vadd.f32 %v3144_v20, %v5413_v52  ;;  %vm2657_vm1 = vcmp.gt.f32.partialorder %v2531_v28, 0.0 }
 0x2a0   :  { %vm2658_vm2 = vcmp.gt.f32.partialorder %v2534_v50, 0.0  ;;  %v2690_v61 = vmul.f32 0.01, %v2534_v50  ;;  %v2721_v55 = vsel %vm2657_vm1, %v2531_v28, %v2689_v59 }
 0x2a1   :  { %v3145_v40 = vpop.f32.mrb[68].mxu0 }
 0x2a2   :  { %v3146_v1 = vpop.f32.mrb[69].mxu0  ;;  %v2722_v4 = vsel %vm2658_vm2, %v2534_v50, %v2690_v61 }
 0x2a3   :  { %v3147_v29 = vadd.f32 %v3146_v1, %v3145_v40  ;;  %v3148_v19 = vpop.f32.mrb[70].mxu0  ;;  %v2753_v54 = vpack.c.bf16 %v2722_v4, %v2721_v55 }
 0x2a4   :  { %v3149_v63 = vpop.f32.mrb[71].mxu0 }
 0x2a5   :  { %v2539_v44 = vadd.f32 %v3147_v29, %v5413_v52  ;;  %v3150_v24 = vadd.f32 %v3149_v63, %v3148_v19  ;;  %3275 = vmatprep.mubr.bf16.mxu1 %v2753_v54 }
 0x2a7   :  { %v2691_v36 = vmul.f32 0.01, %v2539_v44  ;;  %v2542_v18 = vadd.f32 %v3150_v24, %v5413_v52  ;;  %vm2659_vm3 = vcmp.gt.f32.partialorder %v2539_v44, 0.0 }
 0x2a9   :  { %vm2660_vm4 = vcmp.gt.f32.partialorder %v2542_v18, 0.0  ;;  %v2692_v57 = vmul.f32 0.01, %v2542_v18  ;;  %v3151_v53 = vpop.f32.mrb[72].mxu0  ;;  %v2723_v51 = vsel %vm2659_vm3, %v2539_v44, %v2691_v36 }
 0x2aa   :  { %v3152_v3 = vpop.f32.mrb[73].mxu0 }
 0x2ab   :  { %v2724_v48 = vsel %vm2660_vm4, %v2542_v18, %v2692_v57  ;;  %v3153_v43 = vadd.f32 %v3152_v3, %v3151_v53  ;;  %v3154_v41 = vpop.f32.mrb[74].mxu0 }
 0x2ac   :  { %v2754_v10 = vpack.c.bf16 %v2724_v48, %v2723_v51  ;;  %v3155_v49 = vpop.f32.mrb[75].mxu0 }
 0x2ad   :  { %v2547_v39 = vadd.f32 %v3153_v43, %v5413_v52  ;;  %v3156_v7 = vadd.f32 %v3155_v49, %v3154_v41 }
 0x2ae   :  { %3276 = vmatmul.mubr.bf16.vlgmr.msra.gmra.mrb[64].mxu1 %v2754_v10 }
 0x2af   :  { %v2693_v32 = vmul.f32 0.01, %v2547_v39  ;;  %v2550_v27 = vadd.f32 %v3156_v7, %v5413_v52  ;;  %vm2661_vm5 = vcmp.gt.f32.partialorder %v2547_v39, 0.0 }
 0x2b1   :  { %vm2662_vm6 = vcmp.gt.f32.partialorder %v2550_v27, 0.0  ;;  %v2694_v47 = vmul.f32 0.01, %v2550_v27  ;;  %v3157_v14 = vpop.f32.mrb[76].mxu0  ;;  %v2725_v60 = vsel %vm2661_vm5, %v2547_v39, %v2693_v32 }
 0x2b2   :  { %v3158_v46 = vpop.f32.mrb[77].mxu0 }
 0x2b3   :  { %v3159_v21 = vadd.f32 %v3158_v46, %v3157_v14  ;;  %v3160_v37 = vpop.f32.mrb[78].mxu0  ;;  %v2726_v23 = vsel %vm2662_vm6, %v2550_v27, %v2694_v47 }
 0x2b4   :  { %v3161_v35 = vpop.f32.mrb[79].mxu0  ;;  %v2755_v31 = vpack.c.bf16 %v2726_v23, %v2725_v60 }
 0x2b5   :  { %v2555_v17 = vadd.f32 %v3159_v21, %v5413_v52  ;;  %v3162_v16 = vadd.f32 %v3161_v35, %v3160_v37 }
 0x2b6   :  { %3279 = vmatprep.mubr.bf16.mxu1 %v2755_v31 }
 0x2b7   :  { %v2695_v12 = vmul.f32 0.01, %v2555_v17  ;;  %v2558_v45 = vadd.f32 %v3162_v16, %v5413_v52  ;;  %vm2663_vm7 = vcmp.gt.f32.partialorder %v2555_v17, 0.0 }
 0x2b9   :  { %vm2664_vm8 = vcmp.gt.f32.partialorder %v2558_v45, 0.0  ;;  %v2696_v25 = vmul.f32 0.01, %v2558_v45  ;;  %v2727_v2 = vsel %vm2663_vm7, %v2555_v17, %v2695_v12 }
 0x2ba   :  { %v3163_v26 = vpop.f32.mrb[80].mxu0 }
 0x2bb   :  { %v3164_v56 = vpop.f32.mrb[81].mxu0  ;;  %v2728_v6 = vsel %vm2664_vm8, %v2558_v45, %v2696_v25 }
 0x2bc   :  { %v3165_v11 = vadd.f32 %v3164_v56, %v3163_v26  ;;  %v3166_v0 = vpop.f32.mrb[82].mxu0  ;;  %v2756_v30 = vpack.c.bf16 %v2728_v6, %v2727_v2 }
 0x2bd   :  { %v3167_v38 = vpop.f32.mrb[83].mxu0 }
 0x2be   :  { %v2563_v15 = vadd.f32 %v3165_v11, %v5413_v52  ;;  %v3168_v42 = vadd.f32 %v3167_v38, %v3166_v0  ;;  %3280 = vmatmul.mubr.bf16.gmra.mrb[68].mxu1 %v2756_v30 }
 0x2c0   :  { %v2697_v22 = vmul.f32 0.01, %v2563_v15  ;;  %v2566_v62 = vadd.f32 %v3168_v42, %v5413_v52  ;;  %vm2665_vm9 = vcmp.gt.f32.partialorder %v2563_v15, 0.0 }
 0x2c2   :  { %vm2666_vm10 = vcmp.gt.f32.partialorder %v2566_v62, 0.0  ;;  %v2698_v33 = vmul.f32 0.01, %v2566_v62  ;;  %v3169_v8 = vpop.f32.mrb[84].mxu0  ;;  %v2729_v9 = vsel %vm2665_vm9, %v2563_v15, %v2697_v22 }
 0x2c3   :  { %v3170_v13 = vpop.f32.mrb[85].mxu0 }
 0x2c4   :  { %v3171_v34 = vadd.f32 %v3170_v13, %v3169_v8  ;;  %v3172_v5 = vpop.f32.mrb[86].mxu0  ;;  %v2730_v58 = vsel %vm2666_vm10, %v2566_v62, %v2698_v33 }
 0x2c5   :  { %v3173_v28 = vpop.f32.mrb[87].mxu0  ;;  %v2757_v20 = vpack.c.bf16 %v2730_v58, %v2729_v9 }
 0x2c6   :  { %v2571_v59 = vadd.f32 %v3171_v34, %v5413_v52  ;;  %v3174_v50 = vadd.f32 %v3173_v28, %v3172_v5 }
 0x2c7   :  { %3283 = vmatprep.mubr.bf16.mxu1 %v2757_v20 }
 0x2c8   :  { %v2699_v61 = vmul.f32 0.01, %v2571_v59  ;;  %v2574_v40 = vadd.f32 %v3174_v50, %v5413_v52  ;;  %vm2667_vm11 = vcmp.gt.f32.partialorder %v2571_v59, 0.0 }
 0x2ca   :  { %vm2668_vm12 = vcmp.gt.f32.partialorder %v2574_v40, 0.0  ;;  %v2700_v1 = vmul.f32 0.01, %v2574_v40  ;;  %v3175_v29 = vpop.f32.mrb[88].mxu0  ;;  %v2731_v63 = vsel %vm2667_vm11, %v2571_v59, %v2699_v61 }
 0x2cb   :  { %v3176_v19 = vpop.f32.mrb[89].mxu0 }
 0x2cc   :  { %v3177_v55 = vadd.f32 %v3176_v19, %v3175_v29  ;;  %v3178_v4 = vpop.f32.mrb[90].mxu0  ;;  %v2732_v54 = vsel %vm2668_vm12, %v2574_v40, %v2700_v1 }
 0x2cd   :  { %v3179_v44 = vpop.f32.mrb[91].mxu0  ;;  %v2758_v24 = vpack.c.bf16 %v2732_v54, %v2731_v63 }
 0x2ce   :  { %v2579_v36 = vadd.f32 %v3177_v55, %v5413_v52  ;;  %v3180_v18 = vadd.f32 %v3179_v44, %v3178_v4 }
 0x2cf   :  { %3284 = vmatmul.mubr.bf16.gmra.mrb[72].mxu1 %v2758_v24 }
 0x2d0   :  { %v2701_v57 = vmul.f32 0.01, %v2579_v36  ;;  %v2582_v53 = vadd.f32 %v3180_v18, %v5413_v52  ;;  %vm2669_vm13 = vcmp.gt.f32.partialorder %v2579_v36, 0.0 }
 0x2d2   :  { %vm2670_vm14 = vcmp.gt.f32.partialorder %v2582_v53, 0.0  ;;  %v2702_v3 = vmul.f32 0.01, %v2582_v53  ;;  %v3181_v51 = vpop.f32.mrb[92].mxu0  ;;  %v2733_v10 = vsel %vm2669_vm13, %v2579_v36, %v2701_v57 }
 0x2d3   :  { %v3182_v48 = vpop.f32.mrb[93].mxu0 }
 0x2d4   :  { %v3183_v43 = vadd.f32 %v3182_v48, %v3181_v51  ;;  %v3184_v41 = vpop.f32.mrb[94].mxu0  ;;  %v2734_v49 = vsel %vm2670_vm14, %v2582_v53, %v2702_v3 }
 0x2d5   :  { %v3185_v39 = vpop.f32.mrb[95].mxu0  ;;  %v2759_v7 = vpack.c.bf16 %v2734_v49, %v2733_v10 }
 0x2d6   :  { %v2587_v32 = vadd.f32 %v3183_v43, %v5413_v52  ;;  %v3186_v27 = vadd.f32 %v3185_v39, %v3184_v41 }
 0x2d7   :  { %3287 = vmatprep.mubr.bf16.mxu1 %v2759_v7 }
 0x2d8   :  { %v2703_v47 = vmul.f32 0.01, %v2587_v32  ;;  %v2590_v14 = vadd.f32 %v3186_v27, %v5413_v52  ;;  %vm2671_vm15 = vcmp.gt.f32.partialorder %v2587_v32, 0.0 }
 0x2da   :  { %vm2672_vm0 = vcmp.gt.f32.partialorder %v2590_v14, 0.0  ;;  %v2704_v46 = vmul.f32 0.01, %v2590_v14  ;;  %v3187_v21 = vpop.f32.mrb[96].mxu0  ;;  %v2735_v35 = vsel %vm2671_vm15, %v2587_v32, %v2703_v47 }
 0x2db   :  { %v3188_v37 = vpop.f32.mrb[97].mxu0 }
 0x2dc   :  { %v3189_v60 = vadd.f32 %v3188_v37, %v3187_v21  ;;  %v3190_v23 = vpop.f32.mrb[98].mxu0  ;;  %v2736_v31 = vsel %vm2672_vm0, %v2590_v14, %v2704_v46 }
 0x2dd   :  { %v3191_v17 = vpop.f32.mrb[99].mxu0  ;;  %v2760_v16 = vpack.c.bf16 %v2736_v31, %v2735_v35 }
 0x2de   :  { %v2595_v12 = vadd.f32 %v3189_v60, %v5413_v52  ;;  %v3192_v45 = vadd.f32 %v3191_v17, %v3190_v23 }
 0x2df   :  { %3288 = vmatmul.mubr.bf16.gmra.mrb[76].mxu1 %v2760_v16 }
 0x2e0   :  { %v2705_v25 = vmul.f32 0.01, %v2595_v12  ;;  %v2598_v26 = vadd.f32 %v3192_v45, %v5413_v52  ;;  %vm2673_vm1 = vcmp.gt.f32.partialorder %v2595_v12, 0.0 }
 0x2e2   :  { %vm2674_vm2 = vcmp.gt.f32.partialorder %v2598_v26, 0.0  ;;  %v2706_v56 = vmul.f32 0.01, %v2598_v26  ;;  %v3193_v2 = vpop.f32.mrb[100].mxu0  ;;  %v2737_v30 = vsel %vm2673_vm1, %v2595_v12, %v2705_v25 }
 0x2e3   :  { %v3194_v6 = vpop.f32.mrb[101].mxu0 }
 0x2e4   :  { %v3195_v11 = vadd.f32 %v3194_v6, %v3193_v2  ;;  %v3196_v0 = vpop.f32.mrb[102].mxu0  ;;  %v2738_v38 = vsel %vm2674_vm2, %v2598_v26, %v2706_v56 }
 0x2e5   :  { %v3197_v15 = vpop.f32.mrb[103].mxu0  ;;  %v2761_v42 = vpack.c.bf16 %v2738_v38, %v2737_v30 }
 0x2e6   :  { %v2603_v22 = vadd.f32 %v3195_v11, %v5413_v52  ;;  %v3198_v62 = vadd.f32 %v3197_v15, %v3196_v0 }
 0x2e7   :  { %3291 = vmatprep.mubr.bf16.mxu1 %v2761_v42 }
 0x2e8   :  { %v2707_v33 = vmul.f32 0.01, %v2603_v22  ;;  %v2606_v8 = vadd.f32 %v3198_v62, %v5413_v52  ;;  %vm2675_vm3 = vcmp.gt.f32.partialorder %v2603_v22, 0.0 }
 0x2ea   :  { %vm2676_vm4 = vcmp.gt.f32.partialorder %v2606_v8, 0.0  ;;  %v2708_v13 = vmul.f32 0.01, %v2606_v8  ;;  %v3199_v34 = vpop.f32.mrb[104].mxu0  ;;  %v2739_v28 = vsel %vm2675_vm3, %v2603_v22, %v2707_v33 }
 0x2eb   :  { %v3200_v5 = vpop.f32.mrb[105].mxu0 }
 0x2ec   :  { %v3201_v9 = vadd.f32 %v3200_v5, %v3199_v34  ;;  %v3202_v58 = vpop.f32.mrb[106].mxu0  ;;  %v2740_v20 = vsel %vm2676_vm4, %v2606_v8, %v2708_v13 }
 0x2ed   :  { %v3203_v59 = vpop.f32.mrb[107].mxu0  ;;  %v2762_v50 = vpack.c.bf16 %v2740_v20, %v2739_v28 }
 0x2ee   :  { %v2611_v61 = vadd.f32 %v3201_v9, %v5413_v52  ;;  %v3204_v40 = vadd.f32 %v3203_v59, %v3202_v58 }
 0x2ef   :  { %3292 = vmatmul.mubr.bf16.gmra.mrb[80].mxu1 %v2762_v50 }
 0x2f0   :  { %v2709_v1 = vmul.f32 0.01, %v2611_v61  ;;  %v2614_v29 = vadd.f32 %v3204_v40, %v5413_v52  ;;  %vm2677_vm5 = vcmp.gt.f32.partialorder %v2611_v61, 0.0 }
 0x2f2   :  { %vm2678_vm6 = vcmp.gt.f32.partialorder %v2614_v29, 0.0  ;;  %v2710_v19 = vmul.f32 0.01, %v2614_v29  ;;  %v3205_v55 = vpop.f32.mrb[108].mxu0  ;;  %v2741_v44 = vsel %vm2677_vm5, %v2611_v61, %v2709_v1 }
 0x2f3   :  { %v3206_v4 = vpop.f32.mrb[109].mxu0 }
 0x2f4   :  { %v3207_v63 = vadd.f32 %v3206_v4, %v3205_v55  ;;  %v3208_v54 = vpop.f32.mrb[110].mxu0  ;;  %v2742_v24 = vsel %vm2678_vm6, %v2614_v29, %v2710_v19 }
 0x2f5   :  { %v3209_v36 = vpop.f32.mrb[111].mxu0  ;;  %v2763_v18 = vpack.c.bf16 %v2742_v24, %v2741_v44  ;;  %v5450_v24 = vstv %s5590_s10 }
 0x2f6   :  { %v2619_v57 = vadd.f32 %v3207_v63, %v5413_v52  ;;  %v3210_v53 = vadd.f32 %v3209_v36, %v3208_v54 }
 0x2f7   :  { %3295 = vmatprep.mubr.bf16.mxu1 %v2763_v18 }
 0x2f8   :  { %v2711_v3 = vmul.f32 0.01, %v2619_v57  ;;  %v2622_v51 = vadd.f32 %v3210_v53, %v5413_v52  ;;  %vm2679_vm7 = vcmp.gt.f32.partialorder %v2619_v57, 0.0 }
 0x2fa   :  { %vm2680_vm8 = vcmp.gt.f32.partialorder %v2622_v51, 0.0  ;;  %v2712_v48 = vmul.f32 0.01, %v2622_v51  ;;  %v3211_v43 = vpop.f32.mrb[112].mxu0  ;;  %v2743_v39 = vsel %vm2679_vm7, %v2619_v57, %v2711_v3 }
 0x2fb   :  { %v3212_v41 = vpop.f32.mrb[113].mxu0 }
 0x2fc   :  { %v3213_v10 = vadd.f32 %v3212_v41, %v3211_v43  ;;  %v3214_v49 = vpop.f32.mrb[114].mxu0  ;;  %v2744_v7 = vsel %vm2680_vm8, %v2622_v51, %v2712_v48 }
 0x2fd   :  { %v3215_v32 = vpop.f32.mrb[115].mxu0  ;;  %v2764_v27 = vpack.c.bf16 %v2744_v7, %v2743_v39 }
 0x2fe   :  { %v2627_v47 = vadd.f32 %v3213_v10, %v5413_v52  ;;  %v3216_v14 = vadd.f32 %v3215_v32, %v3214_v49 }
 0x2ff   :  { %3296 = vmatmul.mubr.bf16.gmra.mrb[84].mxu1 %v2764_v27 }
 0x300   :  { %v2713_v46 = vmul.f32 0.01, %v2627_v47  ;;  %v2630_v21 = vadd.f32 %v3216_v14, %v5413_v52  ;;  %vm2681_vm9 = vcmp.gt.f32.partialorder %v2627_v47, 0.0 }
 0x302   :  { %vm2682_vm10 = vcmp.gt.f32.partialorder %v2630_v21, 0.0  ;;  %v2714_v37 = vmul.f32 0.01, %v2630_v21  ;;  %v3217_v60 = vpop.f32.mrb[116].mxu0  ;;  %v2745_v17 = vsel %vm2681_vm9, %v2627_v47, %v2713_v46 }
 0x303   :  { %v3218_v23 = vpop.f32.mrb[117].mxu0 }
 0x304   :  { %v3219_v35 = vadd.f32 %v3218_v23, %v3217_v60  ;;  %v3220_v31 = vpop.f32.mrb[118].mxu0  ;;  %v2746_v16 = vsel %vm2682_vm10, %v2630_v21, %v2714_v37 }
 0x305   :  { %v3221_v12 = vpop.f32.mrb[119].mxu0  ;;  %v2765_v45 = vpack.c.bf16 %v2746_v16, %v2745_v17 }
 0x306   :  { %v2635_v25 = vadd.f32 %v3219_v35, %v5413_v52  ;;  %v3222_v26 = vadd.f32 %v3221_v12, %v3220_v31 }
 0x307   :  { %3299 = vmatprep.mubr.bf16.mxu1 %v2765_v45 }
 0x308   :  { %v2715_v56 = vmul.f32 0.01, %v2635_v25  ;;  %v2638_v2 = vadd.f32 %v3222_v26, %v5413_v52  ;;  %vm2683_vm11 = vcmp.gt.f32.partialorder %v2635_v25, 0.0 }
 0x30a   :  { %vm2684_vm12 = vcmp.gt.f32.partialorder %v2638_v2, 0.0  ;;  %v2716_v6 = vmul.f32 0.01, %v2638_v2  ;;  %v3223_v11 = vpop.f32.mrb[120].mxu0  ;;  %v2747_v15 = vsel %vm2683_vm11, %v2635_v25, %v2715_v56 }
 0x30b   :  { %v3224_v0 = vpop.f32.mrb[121].mxu0 }
 0x30c   :  { %v3225_v30 = vadd.f32 %v3224_v0, %v3223_v11  ;;  %v3226_v38 = vpop.f32.mrb[122].mxu0  ;;  %v2748_v42 = vsel %vm2684_vm12, %v2638_v2, %v2716_v6 }
 0x30d   :  { %v3227_v22 = vpop.f32.mrb[123].mxu0  ;;  %v2766_v62 = vpack.c.bf16 %v2748_v42, %v2747_v15 }
 0x30e   :  { %v2643_v33 = vadd.f32 %v3225_v30, %v5413_v52  ;;  %v3228_v8 = vadd.f32 %v3227_v22, %v3226_v38 }
 0x30f   :  { %3300 = vmatmul.mubr.bf16.gmra.mrb[88].mxu1 %v2766_v62 }
 0x310   :  { %v2717_v13 = vmul.f32 0.01, %v2643_v33  ;;  %v2646_v34 = vadd.f32 %v3228_v8, %v5413_v52  ;;  %vm2685_vm13 = vcmp.gt.f32.partialorder %v2643_v33, 0.0 }
 0x312   :  { %vm2686_vm14 = vcmp.gt.f32.partialorder %v2646_v34, 0.0  ;;  %v2718_v5 = vmul.f32 0.01, %v2646_v34  ;;  %v3229_v9 = vpop.f32.mrb[124].mxu0  ;;  %v2749_v59 = vsel %vm2685_vm13, %v2643_v33, %v2717_v13 }
 0x313   :  { %v3230_v58 = vpop.f32.mrb[125].mxu0 }
 0x314   :  { %v3231_v28 = vadd.f32 %v3230_v58, %v3229_v9  ;;  %v3232_v20 = vpop.f32.mrb[126].mxu0  ;;  %v2750_v50 = vsel %vm2686_vm14, %v2646_v34, %v2718_v5 }
 0x315   :  { %v3233_v61 = vpop.f32.mrb[127].mxu0  ;;  %v2767_v40 = vpack.c.bf16 %v2750_v50, %v2749_v59 }
 0x316   :  { %v2651_v1 = vadd.f32 %v3231_v28, %v5413_v52  ;;  %v3234_v29 = vadd.f32 %v3233_v61, %v3232_v20 }
 0x317   :  { %3303 = vmatprep.mubr.bf16.mxu1 %v2767_v40 }
 0x318   :  { %v2719_v19 = vmul.f32 0.01, %v2651_v1  ;;  %v2654_v55 = vadd.f32 %v3234_v29, %v5413_v52  ;;  %vm2687_vm15 = vcmp.gt.f32.partialorder %v2651_v1, 0.0 }
 0x31a   :  { %vm2688_vm0 = vcmp.gt.f32.partialorder %v2654_v55, 0.0  ;;  %v2720_v4 = vmul.f32 0.01, %v2654_v55  ;;  %v2751_v63 = vsel %vm2687_vm15, %v2651_v1, %v2719_v19 }
 0x31c   :  { %v2752_v54 = vsel %vm2688_vm0, %v2654_v55, %v2720_v4 }
 0x31d   :  { %v2768_v44 = vpack.c.bf16 %v2752_v54, %v2751_v63 }
 0x31f   :  { %3304 = vmatmul.mubr.bf16.gmra.mrb[92].mxu1 %v2768_v44 }
 0x381   :  { %v3277_v36 = vpop.f32.mrb[64].mxu1 }
 0x382   :  { %v2878_v18 = vadd.f32 %v3277_v36, %v5450_v24  ;;  %v2869_v57 = vpop.f32.mrb[65].mxu1 }
 0x383   :  { %v2870_v53 = vadd.f32 %v2869_v57, %v5450_v24  ;;  %v3278_v3 = vpop.f32.mrb[66].mxu1 }
 0x384   :  { %2998 = vst [vmem:[%s5591_s11 + $0x10] sm:$0xff] %v2878_v18  ;;  %v2881_v52 = vadd.f32 %v3278_v3, %v5450_v24  ;;  %v2872_v51 = vpop.f32.mrb[67].mxu1 }
 0x385   :  { %2996 = vst [vmem:[%s5591_s11] sm:$0xff] %v2870_v53  ;;  %v2873_v48 = vadd.f32 %v2872_v51, %v5450_v24 }
 0x386   :  { %2999 = vst [vmem:[%s5591_s11 + $0x18] sm:$0xff] %v2881_v52 }
 0x387   :  { %2997 = vst [vmem:[%s5591_s11 + $0x8] sm:$0xff] %v2873_v48 }
 0x391   :  { %v3281_v43 = vpop.f32.mrb[68].mxu1 }
 0x392   :  { %v2894_v41 = vadd.f32 %v3281_v43, %v5450_v24  ;;  %v2885_v10 = vpop.f32.mrb[69].mxu1 }
 0x393   :  { %v2886_v49 = vadd.f32 %v2885_v10, %v5450_v24  ;;  %v3282_v39 = vpop.f32.mrb[70].mxu1 }
 0x394   :  { %3002 = vst [vmem:[%s5591_s11 + $0x30] sm:$0xff] %v2894_v41  ;;  %v2897_v7 = vadd.f32 %v3282_v39, %v5450_v24  ;;  %v2888_v32 = vpop.f32.mrb[71].mxu1 }
 0x395   :  { %3000 = vst [vmem:[%s5591_s11 + $0x20] sm:$0xff] %v2886_v49  ;;  %v2889_v27 = vadd.f32 %v2888_v32, %v5450_v24 }
 0x396   :  { %3003 = vst [vmem:[%s5591_s11 + $0x38] sm:$0xff] %v2897_v7 }
 0x397   :  { %3001 = vst [vmem:[%s5591_s11 + $0x28] sm:$0xff] %v2889_v27 }
 0x3a2   :  { %v3285_v47 = vpop.f32.mrb[72].mxu1 }
 0x3a3   :  { %v2910_v14 = vadd.f32 %v3285_v47, %v5450_v24  ;;  %v2901_v46 = vpop.f32.mrb[73].mxu1 }
 0x3a4   :  { %v2902_v21 = vadd.f32 %v2901_v46, %v5450_v24  ;;  %v3286_v37 = vpop.f32.mrb[74].mxu1 }
 0x3a5   :  { %3006 = vst [vmem:[%s5591_s11 + $0x50] sm:$0xff] %v2910_v14  ;;  %v2913_v60 = vadd.f32 %v3286_v37, %v5450_v24  ;;  %v2904_v23 = vpop.f32.mrb[75].mxu1 }
 0x3a6   :  { %3004 = vst [vmem:[%s5591_s11 + $0x40] sm:$0xff] %v2902_v21  ;;  %v2905_v35 = vadd.f32 %v2904_v23, %v5450_v24 }
 0x3a7   :  { %3007 = vst [vmem:[%s5591_s11 + $0x58] sm:$0xff] %v2913_v60 }
 0x3a8   :  { %3005 = vst [vmem:[%s5591_s11 + $0x48] sm:$0xff] %v2905_v35 }
 0x3b2   :  { %v3289_v31 = vpop.f32.mrb[76].mxu1 }
 0x3b3   :  { %v2926_v17 = vadd.f32 %v3289_v31, %v5450_v24  ;;  %v2917_v16 = vpop.f32.mrb[77].mxu1 }
 0x3b4   :  { %v2918_v12 = vadd.f32 %v2917_v16, %v5450_v24  ;;  %v3290_v45 = vpop.f32.mrb[78].mxu1 }
 0x3b5   :  { %3010 = vst [vmem:[%s5591_s11 + $0x70] sm:$0xff] %v2926_v17  ;;  %v2929_v25 = vadd.f32 %v3290_v45, %v5450_v24  ;;  %v2920_v26 = vpop.f32.mrb[79].mxu1 }
 0x3b6   :  { %3008 = vst [vmem:[%s5591_s11 + $0x60] sm:$0xff] %v2918_v12  ;;  %v2921_v56 = vadd.f32 %v2920_v26, %v5450_v24 }
 0x3b7   :  { %3011 = vst [vmem:[%s5591_s11 + $0x78] sm:$0xff] %v2929_v25 }
 0x3b8   :  { %3009 = vst [vmem:[%s5591_s11 + $0x68] sm:$0xff] %v2921_v56 }
 0x3c2   :  { %v3293_v2 = vpop.f32.mrb[80].mxu1 }
 0x3c3   :  { %v2942_v6 = vadd.f32 %v3293_v2, %v5450_v24  ;;  %v2933_v11 = vpop.f32.mrb[81].mxu1 }
 0x3c4   :  { %v2934_v0 = vadd.f32 %v2933_v11, %v5450_v24  ;;  %v3294_v30 = vpop.f32.mrb[82].mxu1 }
 0x3c5   :  { %3014 = vst [vmem:[%s5591_s11 + $0x90] sm:$0xff] %v2942_v6  ;;  %v2945_v38 = vadd.f32 %v3294_v30, %v5450_v24  ;;  %v2936_v15 = vpop.f32.mrb[83].mxu1 }
 0x3c6   :  { %3012 = vst [vmem:[%s5591_s11 + $0x80] sm:$0xff] %v2934_v0  ;;  %v2937_v42 = vadd.f32 %v2936_v15, %v5450_v24 }
 0x3c7   :  { %3015 = vst [vmem:[%s5591_s11 + $0x98] sm:$0xff] %v2945_v38 }
 0x3c8   :  { %3013 = vst [vmem:[%s5591_s11 + $0x88] sm:$0xff] %v2937_v42 }
 0x3d2   :  { %v3297_v22 = vpop.f32.mrb[84].mxu1 }
 0x3d3   :  { %v2958_v62 = vadd.f32 %v3297_v22, %v5450_v24  ;;  %v2949_v33 = vpop.f32.mrb[85].mxu1 }
 0x3d4   :  { %v2950_v8 = vadd.f32 %v2949_v33, %v5450_v24  ;;  %v3298_v13 = vpop.f32.mrb[86].mxu1 }
 0x3d5   :  { %3018 = vst [vmem:[%s5591_s11 + $0xb0] sm:$0xff] %v2958_v62  ;;  %v2961_v34 = vadd.f32 %v3298_v13, %v5450_v24  ;;  %v2952_v5 = vpop.f32.mrb[87].mxu1 }
 0x3d6   :  { %3016 = vst [vmem:[%s5591_s11 + $0xa0] sm:$0xff] %v2950_v8  ;;  %v2953_v9 = vadd.f32 %v2952_v5, %v5450_v24 }
 0x3d7   :  { %3019 = vst [vmem:[%s5591_s11 + $0xb8] sm:$0xff] %v2961_v34 }
 0x3d8   :  { %3017 = vst [vmem:[%s5591_s11 + $0xa8] sm:$0xff] %v2953_v9 }
 0x3e2   :  { %v3301_v58 = vpop.f32.mrb[88].mxu1 }
 0x3e3   :  { %v2974_v28 = vadd.f32 %v3301_v58, %v5450_v24  ;;  %v2965_v20 = vpop.f32.mrb[89].mxu1 }
 0x3e4   :  { %v2966_v59 = vadd.f32 %v2965_v20, %v5450_v24  ;;  %v3302_v50 = vpop.f32.mrb[90].mxu1 }
 0x3e5   :  { %3022 = vst [vmem:[%s5591_s11 + $0xd0] sm:$0xff] %v2974_v28  ;;  %v2977_v61 = vadd.f32 %v3302_v50, %v5450_v24  ;;  %v2968_v40 = vpop.f32.mrb[91].mxu1 }
 0x3e6   :  { %3020 = vst [vmem:[%s5591_s11 + $0xc0] sm:$0xff] %v2966_v59  ;;  %v2969_v1 = vadd.f32 %v2968_v40, %v5450_v24 }
 0x3e7   :  { %3023 = vst [vmem:[%s5591_s11 + $0xd8] sm:$0xff] %v2977_v61 }
 0x3e8   :  { %3021 = vst [vmem:[%s5591_s11 + $0xc8] sm:$0xff] %v2969_v1 }
 0x3f2   :  { %v3305_v29 = vpop.f32.mrb[92].mxu1 }
 0x3f3   :  { %v2990_v19 = vadd.f32 %v3305_v29, %v5450_v24  ;;  %v2981_v55 = vpop.f32.mrb[93].mxu1 }
 0x3f4   :  { %v2982_v4 = vadd.f32 %v2981_v55, %v5450_v24  ;;  %v3306_v63 = vpop.f32.mrb[94].mxu1 }
 0x3f5   :  { %3026 = vst [vmem:[%s5591_s11 + $0xf0] sm:$0xff] %v2990_v19  ;;  %v2993_v54 = vadd.f32 %v3306_v63, %v5450_v24  ;;  %v2984_v44 = vpop.f32.mrb[95].mxu1 }
 0x3f6   :  { %3024 = vst [vmem:[%s5591_s11 + $0xe0] sm:$0xff] %v2982_v4  ;;  %v2985_v36 = vadd.f32 %v2984_v44, %v5450_v24 }
 0x3f7   :  { %3027 = vst [vmem:[%s5591_s11 + $0xf8] sm:$0xff] %v2993_v54 }
 0x3f8   :  { %3025 = vst [vmem:[%s5591_s11 + $0xe8] sm:$0xff] %v2985_v36 }

</bundles_post_ra>
